<compile_context>
chip_gen: v6e
topology: v6e:2x2x1
jax: 0.10.0
libtpu: 0.0.40
codegen_flags: <defaults>
</compile_context>

<pallas_src>
import functools

import jax
import jax.numpy as jnp
from jax.experimental import pallas as pl
from jax.experimental.pallas import tpu as pltpu

BN_EPS = 1e-5
LANE = 128
VMEM_LIMIT = 48 * 1024 * 1024  # < 64 MiB physical on v7x; plenty for these tiles.


def _round_up(c, mult=LANE):
    return ((c + mult - 1) // mult) * mult


def _pick_tile_m(m, target=256):
    """Largest tile <= target (multiple of 16 for bf16 sublanes) dividing M."""
    if m <= target:
        return m
    for t in range(target, 15, -16):
        if m % t == 0:
            return t
    return m


def _cparams(*sem):
    return pltpu.CompilerParams(dimension_semantics=sem,
                                vmem_limit_bytes=VMEM_LIMIT)


# ---------------------------------------------------------------------------
# In-kernel helpers
# ---------------------------------------------------------------------------
def _bn_scale_shift(stats, gb, inv_m):
    """stats = [[sum],[sumsq]] (2,C), gb = [[gamma],[beta]] (2,C) -> (1,C) scale/shift."""
    mean = stats[0:1, :] * inv_m
    var = jnp.maximum(stats[1:2, :] * inv_m - mean * mean, 0.0)   # biased variance
    scale = gb[0:1, :] * jax.lax.rsqrt(var + BN_EPS)
    shift = gb[1:2, :] - mean * scale
    return scale, shift


def _accum_stats(s_ref, y, is_first):
    """Accumulate per-channel sum / sum-of-squares across the grid (resident block)."""
    sums = jnp.concatenate(
        [jnp.sum(y, axis=0, keepdims=True),
         jnp.sum(y * y, axis=0, keepdims=True)], axis=0)

    @pl.when(is_first)
    def _():
        s_ref[...] = jnp.zeros_like(s_ref)

    s_ref[...] += sums


# ---------------------------------------------------------------------------
# Kernels
# ---------------------------------------------------------------------------
def _conv_stats_kernel(x_ref, w_ref, y_ref, s_ref):
    """Phase 1 of rb1: tiled 1x1 conv (bf16 MXU) + global BN-stat accumulation."""
    xb = x_ref[...].astype(jnp.bfloat16)
    y = jnp.dot(xb, w_ref[...], preferred_element_type=jnp.float32)
    y_ref[...] = y.astype(y_ref.dtype)
    _accum_stats(s_ref, y, pl.program_id(0) == 0)


def _dual_conv_stats_kernel(x_ref, wa_ref, wb_ref, ya_ref, yb_ref, sa_ref, sb_ref):
    """rb1 and rbr fused: one read of x, two matmuls, two stat accumulators."""
    xb = x_ref[...].astype(jnp.bfloat16)
    first = pl.program_id(0) == 0
    ya = jnp.dot(xb, wa_ref[...], preferred_element_type=jnp.float32)
    ya_ref[...] = ya.astype(ya_ref.dtype)
    _accum_stats(sa_ref, ya, first)
    yb = jnp.dot(xb, wb_ref[...], preferred_element_type=jnp.float32)
    yb_ref[...] = yb.astype(yb_ref.dtype)
    _accum_stats(sb_ref, yb, first)


def _bn_relu_conv_stats_kernel(u_ref, sin_ref, gb_ref, w_ref, y_ref, s_ref, *, inv_m):
    """Apply previous layer's BN+ReLU (global stats), then tiled 1x1 conv + stats."""
    scale, shift = _bn_scale_shift(sin_ref[...], gb_ref[...], inv_m)
    a = jnp.maximum(u_ref[...].astype(jnp.float32) * scale + shift, 0.0)
    y = jnp.dot(a.astype(jnp.bfloat16), w_ref[...], preferred_element_type=jnp.float32)
    y_ref[...] = y.astype(y_ref.dtype)
    _accum_stats(s_ref, y, pl.program_id(0) == 0)


def _bn_relu_conv3x3_stats_kernel(u_ref, sin_ref, gb_ref, w_ref, y_ref, s_ref, *, inv_m):
    """Per-image: BN1+ReLU, zero-pad spatially in VMEM, 9 shifted bf16 matmuls
    accumulated in f32 (no HBM im2col), plus BN2 stat accumulation."""
    _, h, wdim, c1p = u_ref.shape
    c2p = w_ref.shape[2]
    scale, shift = _bn_scale_shift(sin_ref[...], gb_ref[...], inv_m)
    a = jnp.maximum(u_ref[0].astype(jnp.float32) * scale + shift, 0.0)   # (H, W, C1p)

    # Spatial zero padding (padding=1) built in VMEM.
    zr = jnp.zeros((1, wdim, c1p), jnp.float32)
    ap = jnp.concatenate([zr, a, zr], axis=0)                 # (H+2, W,   C1p)
    zc = jnp.zeros((h + 2, 1, c1p), jnp.float32)
    ap = jnp.concatenate([zc, ap, zc], axis=1)                # (H+2, W+2, C1p)

    acc = jnp.zeros((h * wdim, c2p), jnp.float32)
    for dy in range(3):
        for dx in range(3):
            v = ap[dy:dy + h, dx:dx + wdim, :].reshape(h * wdim, c1p)
            acc = acc + jnp.dot(v.astype(jnp.bfloat16), w_ref[dy * 3 + dx],
                                preferred_element_type=jnp.float32)

    y_ref[0] = acc.astype(y_ref.dtype)
    _accum_stats(s_ref, acc, pl.program_id(0) == 0)


def _bn_relu_add_kernel(u3_ref, s3_ref, gb3_ref, res_ref, o_ref, *, inv_m):
    """Finalize (right=False): relu(x + relu(bn3(u3))), fully fused, tiled."""
    scale, shift = _bn_scale_shift(s3_ref[...], gb3_ref[...], inv_m)
    y = jnp.maximum(u3_ref[...].astype(jnp.float32) * scale + shift, 0.0)
    o_ref[...] = jnp.maximum(res_ref[...].astype(jnp.float32) + y, 0.0).astype(o_ref.dtype)


def _bn_relu_add_bn_kernel(u3_ref, s3_ref, gb3_ref, ur_ref, sr_ref, gbr_ref, o_ref, *, inv_m):
    """Finalize (right=True): relu(bnr(ur) + relu(bn3(u3))), fully fused, tiled."""
    sc3, sh3 = _bn_scale_shift(s3_ref[...], gb3_ref[...], inv_m)
    y = jnp.maximum(u3_ref[...].astype(jnp.float32) * sc3 + sh3, 0.0)
    scr, shr = _bn_scale_shift(sr_ref[...], gbr_ref[...], inv_m)
    xr = ur_ref[...].astype(jnp.float32) * scr + shr
    o_ref[...] = jnp.maximum(xr + y, 0.0).astype(o_ref.dtype)


# ---------------------------------------------------------------------------
# pallas_call wrappers
# ---------------------------------------------------------------------------
def conv1x1_stats(x2d, w, *, tile_m):
    m, cin = x2d.shape
    cout = w.shape[1]
    return pl.pallas_call(
        _conv_stats_kernel,
        out_shape=(jax.ShapeDtypeStruct((m, cout), jnp.bfloat16),
                   jax.ShapeDtypeStruct((2, cout), jnp.float32)),
        grid=(m // tile_m,),
        in_specs=[pl.BlockSpec((tile_m, cin), lambda i: (i, 0)),
                  pl.BlockSpec((cin, cout), lambda i: (0, 0))],
        out_specs=(pl.BlockSpec((tile_m, cout), lambda i: (i, 0)),
                   pl.BlockSpec((2, cout), lambda i: (0, 0))),
        compiler_params=_cparams("arbitrary"),
    )(x2d, w)


def dual_conv1x1_stats(x2d, wa, wb, *, tile_m):
    m, cin = x2d.shape
    ca, cb = wa.shape[1], wb.shape[1]
    return pl.pallas_call(
        _dual_conv_stats_kernel,
        out_shape=(jax.ShapeDtypeStruct((m, ca), jnp.bfloat16),
                   jax.ShapeDtypeStruct((m, cb), jnp.bfloat16),
                   jax.ShapeDtypeStruct((2, ca), jnp.float32),
                   jax.ShapeDtypeStruct((2, cb), jnp.float32)),
        grid=(m // tile_m,),
        in_specs=[pl.BlockSpec((tile_m, cin), lambda i: (i, 0)),
                  pl.BlockSpec((cin, ca), lambda i: (0, 0)),
                  pl.BlockSpec((cin, cb), lambda i: (0, 0))],
        out_specs=(pl.BlockSpec((tile_m, ca), lambda i: (i, 0)),
                   pl.BlockSpec((tile_m, cb), lambda i: (i, 0)),
                   pl.BlockSpec((2, ca), lambda i: (0, 0)),
                   pl.BlockSpec((2, cb), lambda i: (0, 0))),
        compiler_params=_cparams("arbitrary"),
    )(x2d, wa, wb)


def bn_relu_conv1x1_stats(u, stats, gb, w, *, tile_m, m_rows):
    m, cin = u.shape
    cout = w.shape[1]
    kern = functools.partial(_bn_relu_conv_stats_kernel, inv_m=1.0 / m_rows)
    return pl.pallas_call(
        kern,
        out_shape=(jax.ShapeDtypeStruct((m, cout), jnp.bfloat16),
                   jax.ShapeDtypeStruct((2, cout), jnp.float32)),
        grid=(m // tile_m,),
        in_specs=[pl.BlockSpec((tile_m, cin), lambda i: (i, 0)),
                  pl.BlockSpec((2, cin), lambda i: (0, 0)),
                  pl.BlockSpec((2, cin), lambda i: (0, 0)),
                  pl.BlockSpec((cin, cout), lambda i: (0, 0))],
        out_specs=(pl.BlockSpec((tile_m, cout), lambda i: (i, 0)),
                   pl.BlockSpec((2, cout), lambda i: (0, 0))),
        compiler_params=_cparams("arbitrary"),
    )(u, stats, gb, w)


def bn_relu_conv3x3_stats(u_nhwc, stats, gb, w9, *, m_rows):
    n, h, wdim, c1p = u_nhwc.shape
    c2p = w9.shape[2]
    kern = functools.partial(_bn_relu_conv3x3_stats_kernel, inv_m=1.0 / m_rows)
    y, s = pl.pallas_call(
        kern,
        out_shape=(jax.ShapeDtypeStruct((n, h * wdim, c2p), jnp.bfloat16),
                   jax.ShapeDtypeStruct((2, c2p), jnp.float32)),
        grid=(n,),
        in_specs=[pl.BlockSpec((1, h, wdim, c1p), lambda i: (i, 0, 0, 0)),
                  pl.BlockSpec((2, c1p), lambda i: (0, 0)),
                  pl.BlockSpec((2, c1p), lambda i: (0, 0)),
                  pl.BlockSpec((9, c1p, c2p), lambda i: (0, 0, 0))],
        out_specs=(pl.BlockSpec((1, h * wdim, c2p), lambda i: (i, 0, 0)),
                   pl.BlockSpec((2, c2p), lambda i: (0, 0))),
        compiler_params=_cparams("arbitrary"),
    )(u_nhwc, stats, gb, w9)
    return y.reshape(n * h * wdim, c2p), s


def bn_relu_add(u3, s3, gb3, res, *, tile_m, m_rows):
    m, c = u3.shape
    kern = functools.partial(_bn_relu_add_kernel, inv_m=1.0 / m_rows)
    return pl.pallas_call(
        kern,
        out_shape=jax.ShapeDtypeStruct((m, c), jnp.float32),
        grid=(m // tile_m,),
        in_specs=[pl.BlockSpec((tile_m, c), lambda i: (i, 0)),
                  pl.BlockSpec((2, c), lambda i: (0, 0)),
                  pl.BlockSpec((2, c), lambda i: (0, 0)),
                  pl.BlockSpec((tile_m, c), lambda i: (i, 0))],
        out_specs=pl.BlockSpec((tile_m, c), lambda i: (i, 0)),
        compiler_params=_cparams("parallel"),
    )(u3, s3, gb3, res)


def bn_relu_add_bn(u3, s3, gb3, ur, sr, gbr, *, tile_m, m_rows):
    m, c = u3.shape
    kern = functools.partial(_bn_relu_add_bn_kernel, inv_m=1.0 / m_rows)
    return pl.pallas_call(
        kern,
        out_shape=jax.ShapeDtypeStruct((m, c), jnp.float32),
        grid=(m // tile_m,),
        in_specs=[pl.BlockSpec((tile_m, c), lambda i: (i, 0)),
                  pl.BlockSpec((2, c), lambda i: (0, 0)),
                  pl.BlockSpec((2, c), lambda i: (0, 0)),
                  pl.BlockSpec((tile_m, c), lambda i: (i, 0)),
                  pl.BlockSpec((2, c), lambda i: (0, 0)),
                  pl.BlockSpec((2, c), lambda i: (0, 0))],
        out_specs=pl.BlockSpec((tile_m, c), lambda i: (i, 0)),
        compiler_params=_cparams("parallel"),
    )(u3, s3, gb3, ur, sr, gbr)


# ---------------------------------------------------------------------------
# Parameters (Conv2d-style init; bias omitted: cancelled by training-mode BN)
# ---------------------------------------------------------------------------
def make_params(key, nb_filters):
    c0, c1, c2, c3 = nb_filters
    c0p, c1p, c2p, c3p = (_round_up(c) for c in nb_filters)
    k1, k2, k3, kr = jax.random.split(key, 4)

    def conv_w(k, cin, cout, ksz):
        bound = 1.0 / float(cin * ksz * ksz) ** 0.5
        return jax.random.uniform(k, (ksz, ksz, cin, cout), jnp.float32, -bound, bound)

    w1 = conv_w(k1, c0, c1, 1)
    w2 = conv_w(k2, c1, c2, 3)
    w3 = conv_w(k3, c2, c3, 1)
    wr = conv_w(kr, c0, c3, 1)
    gammas = [jnp.ones((c,), jnp.float32) for c in (c1, c2, c3, c3)]
    betas = [jnp.zeros((c,), jnp.float32) for c in (c1, c2, c3, c3)]

    def pad_w(wh, cinp, coutp):
        ksz, _, cin, cout = wh.shape
        wp = jnp.zeros((ksz * ksz, cinp, coutp), jnp.float32)
        wp = wp.at[:, :cin, :cout].set(wh.reshape(ksz * ksz, cin, cout))
        return wp.astype(jnp.bfloat16)          # bf16 weights for the MXU

    def pad_gb(g, b, cp):
        gb = jnp.zeros((2, cp), jnp.float32)    # padded gamma=0 keeps pad channels at 0
        gb = gb.at[0, :g.shape[0]].set(g)
        gb = gb.at[1, :b.shape[0]].set(b)
        return gb

    kparams = {
        "w1": pad_w(w1, c0p, c1p)[0],
        "w2": pad_w(w2, c1p, c2p),
        "w3": pad_w(w3, c2p, c3p)[0],
        "wr": pad_w(wr, c0p, c3p)[0],
        "gb1": pad_gb(gammas[0], betas[0], c1p),
        "gb2": pad_gb(gammas[1], betas[1], c2p),
        "gb3": pad_gb(gammas[2], betas[2], c3p),
        "gbr": pad_gb(gammas[3], betas[3], c3p),
    }
    rparams = {"w1": w1, "w2": w2, "w3": w3, "wr": wr, "g": gammas, "b": betas}
    return kparams, rparams


# ---------------------------------------------------------------------------
# Forward pass
# ---------------------------------------------------------------------------
def resblock_forward(x_nchw, kparams, nb_filters, right=False):
    if len(nb_filters) != 4:
        raise Exception("nb_filters size must be 3")
    c0, c1, c2, c3 = nb_filters
    if not right and c0 != c3:
        raise ValueError("right=False requires nb_filters[0] == nb_filters[3] "
                         "for the residual add")
    n, cin, h, w = x_nchw.shape
    if cin != c0:
        raise ValueError("input channel mismatch")
    m = n * h * w
    tile_m = _pick_tile_m(m)
    c0p, c3p = _round_up(c0), _round_up(c3)

    # NCHW -> NHWC -> [M, C0p] (channels zero-padded to a lane-dense 128 multiple;
    # a no-op at realistic ResNet channel counts).
    x2d = jnp.transpose(x_nchw, (0, 2, 3, 1)).reshape(m, c0)
    if c0p != c0:
        x2d = jnp.pad(x2d, ((0, 0), (0, c0p - c0)))

    if right:
        u1, ur, s1, sr = dual_conv1x1_stats(x2d, kparams["w1"], kparams["wr"],
                                            tile_m=tile_m)
    else:
        u1, s1 = conv1x1_stats(x2d, kparams["w1"], tile_m=tile_m)

    c1p = u1.shape[1]
    u2, s2 = bn_relu_conv3x3_stats(u1.reshape(n, h, w, c1p), s1, kparams["gb1"],
                                   kparams["w2"], m_rows=m)
    u3, s3 = bn_relu_conv1x1_stats(u2, s2, kparams["gb2"], kparams["w3"],
                                   tile_m=tile_m, m_rows=m)

    if right:
        out2d = bn_relu_add_bn(u3, s3, kparams["gb3"], ur, sr, kparams["gbr"],
                               tile_m=tile_m, m_rows=m)
    else:
        out2d = bn_relu_add(u3, s3, kparams["gb3"], x2d, tile_m=tile_m, m_rows=m)

    out = out2d[:, :c3].reshape(n, h, w, c3)
    return jnp.transpose(out, (0, 3, 1, 2))


# ---------------------------------------------------------------------------
# Pure-JAX f32 reference (for a loose numerical sanity check)
# ---------------------------------------------------------------------------
def resblock_reference(x_nchw, rp, right=False):
    x = jnp.transpose(x_nchw, (0, 2, 3, 1))

    def rb(a, wh, g, b, pad):
        y = jax.lax.conv_general_dilated(
            a, wh, window_strides=(1, 1), padding=[(pad, pad), (pad, pad)],
            dimension_numbers=("NHWC", "HWIO", "NHWC"))
        mean = jnp.mean(y, axis=(0, 1, 2))
        var = jnp.mean(jnp.square(y - mean), axis=(0, 1, 2))
        return (y - mean) * jax.lax.rsqrt(var + BN_EPS) * g + b

    y = jnp.maximum(rb(x, rp["w1"], rp["g"][0], rp["b"][0], 0), 0.0)
    y = jnp.maximum(rb(y, rp["w2"], rp["g"][1], rp["b"][1], 1), 0.0)
    y = jnp.maximum(rb(y, rp["w3"], rp["g"][2], rp["b"][2], 0), 0.0)
    xres = rb(x, rp["wr"], rp["g"][3], rp["b"][3], 0) if right else x
    out = jnp.maximum(xres + y, 0.0)
    return jnp.transpose(out, (0, 3, 1, 2))


if __name__ == "__main__":
    key = jax.random.PRNGKey(0)
    kp, kx = jax.random.split(key)

    nb_filters = (4, 8, 8, 4)     # c0 == c3 so the right=False residual add is valid
    N, H, W = 2, 16, 16

    kparams, rparams = make_params(kp, nb_filters)
    x = jax.random.normal(kx, (N, nb_filters[0], H, W), jnp.float32)

    fwd = jax.jit(resblock_forward, static_argnames=("nb_filters", "right"))
    out_left = fwd(x, kparams, nb_filters=nb_filters, right=False)
    out_right = fwd(x, kparams, nb_filters=nb_filters, right=True)
    jax.block_until_ready((out_left, out_right))

    assert out_left.shape == (N, nb_filters[3], H, W)
    assert out_right.shape == (N, nb_filters[3], H, W)

    # Loose check vs. the f32 reference (bf16 matmuls + bf16 intermediates).
    ref_left = resblock_reference(x, rparams, right=False)
    ref_right = resblock_reference(x, rparams, right=True)
    err = max(float(jnp.max(jnp.abs(out_left - ref_left))),
              float(jnp.max(jnp.abs(out_right - ref_right))))
    assert err < 0.25, f"numerical mismatch vs f32 reference: max abs err {err}"

    print("KERNEL_OK")
</pallas_src>

<mosaic_0001>
module attributes {stable_mosaic.version = 11 : i64} {
  func.func @_conv_stats_kernel(%arg0: i32, %arg1: memref<256x128xf32, #tpu.memory_space<vmem>>, %arg2: memref<128x128xbf16, #tpu.memory_space<vmem>>, %arg3: memref<256x128xbf16, #tpu.memory_space<vmem>>, %arg4: memref<2x128xf32, #tpu.memory_space<vmem>>) attributes {dimension_semantics = [#tpu.dimension_semantics<arbitrary>], iteration_bounds = array<i64: 2>, scalar_prefetch = 0 : i64, scratch_operands = 0 : i64, tpu.core_type = #tpu.core_type<tc>, window_params = [{transform_indices = @transform_0, window_bounds = array<i64: 256, 128>}, {pipeline_mode = #tpu.pipeline_mode<synchronous>, transform_indices = @transform_1, window_bounds = array<i64: 128, 128>}, {transform_indices = @transform_2, window_bounds = array<i64: 256, 128>}, {pipeline_mode = #tpu.pipeline_mode<synchronous>, transform_indices = @transform_3, window_bounds = array<i64: 2, 128>}]} {
    %c0 = arith.constant 0 : index
    %c0_0 = arith.constant 0 : index
    %0 = vector.load %arg1[%c0, %c0_0] : memref<256x128xf32, #tpu.memory_space<vmem>>, vector<256x128xf32>
    %1 = arith.truncf %0 : vector<256x128xf32> to vector<256x128xbf16>
    %c0_1 = arith.constant 0 : index
    %c0_2 = arith.constant 0 : index
    %2 = vector.load %arg2[%c0_1, %c0_2] : memref<128x128xbf16, #tpu.memory_space<vmem>>, vector<128x128xbf16>
    %cst = arith.constant dense<0.000000e+00> : vector<256x128xf32>
    %3 = tpu.matmul %1, %2, %cst {dimension_numbers = #tpu.dot_dimension_numbers<[1], [0], [0], [1], [0, 0, 1, 1], [], []>} : vector<256x128xbf16>, vector<128x128xbf16>, vector<256x128xf32> -> vector<256x128xf32>
    %4 = arith.truncf %3 : vector<256x128xf32> to vector<256x128xbf16>
    %c0_3 = arith.constant 0 : index
    %c0_4 = arith.constant 0 : index
    %5 = vector.load %arg3[%c0_3, %c0_4] : memref<256x128xbf16, #tpu.memory_space<vmem>>, vector<256x128xbf16>
    tpu.vector_store %arg3[%c0_3, %c0_4], %4 {strides = array<i32>} : memref<256x128xbf16, #tpu.memory_space<vmem>>, vector<256x128xbf16>,
    %c0_i32 = arith.constant 0 : i32
    %6 = arith.cmpi eq, %arg0, %c0_i32 : i32
    %cst_5 = arith.constant dense<0.000000e+00> : vector<128xf32>
    %7 = vector.multi_reduction <add>, %3, %cst_5 [0] : vector<256x128xf32> to vector<128xf32>
    %8 = vector.shape_cast %7 : vector<128xf32> to vector<1x128xf32>
    %9 = arith.mulf %3, %3 : vector<256x128xf32>
    %cst_6 = arith.constant dense<0.000000e+00> : vector<128xf32>
    %10 = vector.multi_reduction <add>, %9, %cst_6 [0] : vector<256x128xf32> to vector<128xf32>
    %11 = vector.shape_cast %10 : vector<128xf32> to vector<1x128xf32>
    %12 = tpu.concatenate %8, %11 in 0 : vector<1x128xf32>, vector<1x128xf32> -> vector<2x128xf32>
    %13 = arith.extui %6 : i1 to i32
    %c0_i32_7 = arith.constant 0 : i32
    %14 = arith.cmpi ne, %13, %c0_i32_7 : i32
    scf.if %14 {
      %cst_12 = arith.constant 0.000000e+00 : f32
      %18 = vector.broadcast %cst_12 : f32 to vector<2x128xf32>
      %c0_13 = arith.constant 0 : index
      %c0_14 = arith.constant 0 : index
      %19 = vector.load %arg4[%c0_13, %c0_14] : memref<2x128xf32, #tpu.memory_space<vmem>>, vector<2x128xf32>
      tpu.vector_store %arg4[%c0_13, %c0_14], %18 {strides = array<i32>} : memref<2x128xf32, #tpu.memory_space<vmem>>, vector<2x128xf32>,
    } else {
    }
    %c0_8 = arith.constant 0 : index
    %c0_9 = arith.constant 0 : index
    %15 = vector.load %arg4[%c0_8, %c0_9] : memref<2x128xf32, #tpu.memory_space<vmem>>, vector<2x128xf32>
    %16 = arith.addf %15, %12 : vector<2x128xf32>
    %c0_10 = arith.constant 0 : index
    %c0_11 = arith.constant 0 : index
    %17 = vector.load %arg4[%c0_10, %c0_11] : memref<2x128xf32, #tpu.memory_space<vmem>>, vector<2x128xf32>
    tpu.vector_store %arg4[%c0_10, %c0_11], %16 {strides = array<i32>} : memref<2x128xf32, #tpu.memory_space<vmem>>, vector<2x128xf32>,
    return
  }
  func.func @transform_0(%arg0: i32) -> (i32, i32) {
    %c0_i32 = arith.constant 0 : i32
    %c0_i32_0 = arith.constant 0 : i32
    return %arg0, %c0_i32 : i32, i32
  }
  func.func @transform_1(%arg0: i32) -> (i32, i32) {
    %c0_i32 = arith.constant 0 : i32
    %c0_i32_0 = arith.constant 0 : i32
    %c0_i32_1 = arith.constant 0 : i32
    return %c0_i32, %c0_i32_0 : i32, i32
  }
  func.func @transform_2(%arg0: i32) -> (i32, i32) {
    %c0_i32 = arith.constant 0 : i32
    %c0_i32_0 = arith.constant 0 : i32
    return %arg0, %c0_i32 : i32, i32
  }
  func.func @transform_3(%arg0: i32) -> (i32, i32) {
    %c0_i32 = arith.constant 0 : i32
    %c0_i32_0 = arith.constant 0 : i32
    %c0_i32_1 = arith.constant 0 : i32
    return %c0_i32, %c0_i32_0 : i32, i32
  }
}

module attributes {stable_mosaic.version = 11 : i64} {
  func.func @_bn_relu_conv3x3_stats_kernel(%arg0: i32, %arg1: memref<1x16x16x128xbf16, #tpu.memory_space<vmem>>, %arg2: memref<2x128xf32, #tpu.memory_space<vmem>>, %arg3: memref<2x128xf32, #tpu.memory_space<vmem>>, %arg4: memref<9x128x128xbf16, #tpu.memory_space<vmem>>, %arg5: memref<1x256x128xbf16, #tpu.memory_space<vmem>>, %arg6: memref<2x128xf32, #tpu.memory_space<vmem>>) attributes {dimension_semantics = [#tpu.dimension_semantics<arbitrary>], iteration_bounds = array<i64: 2>, scalar_prefetch = 0 : i64, scratch_operands = 0 : i64, tpu.core_type = #tpu.core_type<tc>, window_params = [{transform_indices = @transform_0, window_bounds = array<i64: 1, 16, 16, 128>}, {pipeline_mode = #tpu.pipeline_mode<synchronous>, transform_indices = @transform_1, window_bounds = array<i64: 2, 128>}, {pipeline_mode = #tpu.pipeline_mode<synchronous>, transform_indices = @transform_2, window_bounds = array<i64: 2, 128>}, {pipeline_mode = #tpu.pipeline_mode<synchronous>, transform_indices = @transform_3, window_bounds = array<i64: 9, 128, 128>}, {transform_indices = @transform_4, window_bounds = array<i64: 1, 256, 128>}, {pipeline_mode = #tpu.pipeline_mode<synchronous>, transform_indices = @transform_5, window_bounds = array<i64: 2, 128>}]} {
    %c0 = arith.constant 0 : index
    %c0_0 = arith.constant 0 : index
    %0 = vector.load %arg2[%c0, %c0_0] : memref<2x128xf32, #tpu.memory_space<vmem>>, vector<2x128xf32>
    %c0_1 = arith.constant 0 : index
    %c0_2 = arith.constant 0 : index
    %1 = vector.load %arg3[%c0_1, %c0_2] : memref<2x128xf32, #tpu.memory_space<vmem>>, vector<2x128xf32>
    %2 = vector.extract_strided_slice %0 {offsets = [0, 0], sizes = [1, 128], strides = [1, 1]} : vector<2x128xf32> to vector<1x128xf32>
    %cst = arith.constant 0.001953125 : f32
    %3 = vector.broadcast %cst : f32 to vector<1x128xf32>
    %4 = arith.mulf %2, %3 : vector<1x128xf32>
    %5 = vector.extract_strided_slice %0 {offsets = [1, 0], sizes = [1, 128], strides = [1, 1]} : vector<2x128xf32> to vector<1x128xf32>
    %cst_3 = arith.constant 0.001953125 : f32
    %6 = vector.broadcast %cst_3 : f32 to vector<1x128xf32>
    %7 = arith.mulf %5, %6 : vector<1x128xf32>
    %8 = arith.mulf %4, %4 : vector<1x128xf32>
    %9 = arith.subf %7, %8 : vector<1x128xf32>
    %cst_4 = arith.constant 0.000000e+00 : f32
    %10 = vector.broadcast %cst_4 : f32 to vector<1x128xf32>
    %11 = arith.maximumf %9, %10 : vector<1x128xf32>
    %12 = vector.extract_strided_slice %1 {offsets = [0, 0], sizes = [1, 128], strides = [1, 1]} : vector<2x128xf32> to vector<1x128xf32>
    %cst_5 = arith.constant 9.99999974E-6 : f32
    %13 = vector.broadcast %cst_5 : f32 to vector<1x128xf32>
    %14 = arith.addf %11, %13 : vector<1x128xf32>
    %15 = math.rsqrt %14 : vector<1x128xf32>
    %16 = arith.mulf %12, %15 : vector<1x128xf32>
    %17 = vector.extract_strided_slice %1 {offsets = [1, 0], sizes = [1, 128], strides = [1, 1]} : vector<2x128xf32> to vector<1x128xf32>
    %18 = arith.mulf %4, %16 : vector<1x128xf32>
    %19 = arith.subf %17, %18 : vector<1x128xf32>
    %c0_6 = arith.constant 0 : index
    %c0_7 = arith.constant 0 : index
    %c0_8 = arith.constant 0 : index
    %c0_9 = arith.constant 0 : index
    %20 = vector.load %arg1[%c0_6, %c0_7, %c0_8, %c0_9] : memref<1x16x16x128xbf16, #tpu.memory_space<vmem>>, vector<1x16x16x128xbf16>
    %21 = vector.shape_cast %20 : vector<1x16x16x128xbf16> to vector<16x16x128xbf16>
    %22 = arith.extf %21 : vector<16x16x128xbf16> to vector<16x16x128xf32>
    %23 = vector.shape_cast %16 : vector<1x128xf32> to vector<1x1x128xf32>
    %24 = vector.broadcast %23 : vector<1x1x128xf32> to vector<16x16x128xf32>
    %25 = arith.mulf %22, %24 : vector<16x16x128xf32>
    %26 = vector.shape_cast %19 : vector<1x128xf32> to vector<1x1x128xf32>
    %27 = vector.broadcast %26 : vector<1x1x128xf32> to vector<16x16x128xf32>
    %28 = arith.addf %25, %27 : vector<16x16x128xf32>
    %cst_10 = arith.constant 0.000000e+00 : f32
    %29 = vector.broadcast %cst_10 : f32 to vector<16x16x128xf32>
    %30 = arith.maximumf %28, %29 : vector<16x16x128xf32>
    %cst_11 = arith.constant 0.000000e+00 : f32
    %31 = vector.broadcast %cst_11 : f32 to vector<1x16x128xf32>
    %32 = tpu.concatenate %31, %30, %31 in 0 : vector<1x16x128xf32>, vector<16x16x128xf32>, vector<1x16x128xf32> -> vector<18x16x128xf32>
    %cst_12 = arith.constant 0.000000e+00 : f32
    %33 = vector.broadcast %cst_12 : f32 to vector<18x1x128xf32>
    %34 = tpu.concatenate %33, %32, %33 in 1 : vector<18x1x128xf32>, vector<18x16x128xf32>, vector<18x1x128xf32> -> vector<18x18x128xf32>
    %cst_13 = arith.constant 0.000000e+00 : f32
    %35 = vector.broadcast %cst_13 : f32 to vector<256x128xf32>
    %36 = vector.extract_strided_slice %34 {offsets = [0, 0, 0], sizes = [16, 16, 128], strides = [1, 1, 1]} : vector<18x18x128xf32> to vector<16x16x128xf32>
    %37 = vector.shape_cast %36 : vector<16x16x128xf32> to vector<256x128xf32>
    %38 = arith.truncf %37 : vector<256x128xf32> to vector<256x128xbf16>
    %c0_14 = arith.constant 0 : index
    %c0_15 = arith.constant 0 : index
    %c0_16 = arith.constant 0 : index
    %39 = vector.load %arg4[%c0_14, %c0_15, %c0_16] : memref<9x128x128xbf16, #tpu.memory_space<vmem>>, vector<1x128x128xbf16>
    %40 = vector.shape_cast %39 : vector<1x128x128xbf16> to vector<128x128xbf16>
    %cst_17 = arith.constant dense<0.000000e+00> : vector<256x128xf32>
    %41 = tpu.matmul %38, %40, %cst_17 {dimension_numbers = #tpu.dot_dimension_numbers<[1], [0], [0], [1], [0, 0, 1, 1], [], []>} : vector<256x128xbf16>, vector<128x128xbf16>, vector<256x128xf32> -> vector<256x128xf32>
    %42 = arith.addf %35, %41 : vector<256x128xf32>
    %43 = vector.extract_strided_slice %34 {offsets = [0, 1, 0], sizes = [16, 16, 128], strides = [1, 1, 1]} : vector<18x18x128xf32> to vector<16x16x128xf32>
    %44 = vector.shape_cast %43 : vector<16x16x128xf32> to vector<256x128xf32>
    %45 = arith.truncf %44 : vector<256x128xf32> to vector<256x128xbf16>
    %c1 = arith.constant 1 : index
    %c0_18 = arith.constant 0 : index
    %c0_19 = arith.constant 0 : index
    %46 = vector.load %arg4[%c1, %c0_18, %c0_19] : memref<9x128x128xbf16, #tpu.memory_space<vmem>>, vector<1x128x128xbf16>
    %47 = vector.shape_cast %46 : vector<1x128x128xbf16> to vector<128x128xbf16>
    %cst_20 = arith.constant dense<0.000000e+00> : vector<256x128xf32>
    %48 = tpu.matmul %45, %47, %cst_20 {dimension_numbers = #tpu.dot_dimension_numbers<[1], [0], [0], [1], [0, 0, 1, 1], [], []>} : vector<256x128xbf16>, vector<128x128xbf16>, vector<256x128xf32> -> vector<256x128xf32>
    %49 = arith.addf %42, %48 : vector<256x128xf32>
    %50 = vector.extract_strided_slice %34 {offsets = [0, 2, 0], sizes = [16, 16, 128], strides = [1, 1, 1]} : vector<18x18x128xf32> to vector<16x16x128xf32>
    %51 = vector.shape_cast %50 : vector<16x16x128xf32> to vector<256x128xf32>
    %52 = arith.truncf %51 : vector<256x128xf32> to vector<256x128xbf16>
    %c2 = arith.constant 2 : index
    %c0_21 = arith.constant 0 : index
    %c0_22 = arith.constant 0 : index
    %53 = vector.load %arg4[%c2, %c0_21, %c0_22] : memref<9x128x128xbf16, #tpu.memory_space<vmem>>, vector<1x128x128xbf16>
    %54 = vector.shape_cast %53 : vector<1x128x128xbf16> to vector<128x128xbf16>
    %cst_23 = arith.constant dense<0.000000e+00> : vector<256x128xf32>
    %55 = tpu.matmul %52, %54, %cst_23 {dimension_numbers = #tpu.dot_dimension_numbers<[1], [0], [0], [1], [0, 0, 1, 1], [], []>} : vector<256x128xbf16>, vector<128x128xbf16>, vector<256x128xf32> -> vector<256x128xf32>
    %56 = arith.addf %49, %55 : vector<256x128xf32>
    %57 = vector.extract_strided_slice %34 {offsets = [1, 0, 0], sizes = [16, 16, 128], strides = [1, 1, 1]} : vector<18x18x128xf32> to vector<16x16x128xf32>
    %58 = vector.shape_cast %57 : vector<16x16x128xf32> to vector<256x128xf32>
    %59 = arith.truncf %58 : vector<256x128xf32> to vector<256x128xbf16>
    %c3 = arith.constant 3 : index
    %c0_24 = arith.constant 0 : index
    %c0_25 = arith.constant 0 : index
    %60 = vector.load %arg4[%c3, %c0_24, %c0_25] : memref<9x128x128xbf16, #tpu.memory_space<vmem>>, vector<1x128x128xbf16>
    %61 = vector.shape_cast %60 : vector<1x128x128xbf16> to vector<128x128xbf16>
    %cst_26 = arith.constant dense<0.000000e+00> : vector<256x128xf32>
    %62 = tpu.matmul %59, %61, %cst_26 {dimension_numbers = #tpu.dot_dimension_numbers<[1], [0], [0], [1], [0, 0, 1, 1], [], []>} : vector<256x128xbf16>, vector<128x128xbf16>, vector<256x128xf32> -> vector<256x128xf32>
    %63 = arith.addf %56, %62 : vector<256x128xf32>
    %64 = vector.extract_strided_slice %34 {offsets = [1, 1, 0], sizes = [16, 16, 128], strides = [1, 1, 1]} : vector<18x18x128xf32> to vector<16x16x128xf32>
    %65 = vector.shape_cast %64 : vector<16x16x128xf32> to vector<256x128xf32>
    %66 = arith.truncf %65 : vector<256x128xf32> to vector<256x128xbf16>
    %c4 = arith.constant 4 : index
    %c0_27 = arith.constant 0 : index
    %c0_28 = arith.constant 0 : index
    %67 = vector.load %arg4[%c4, %c0_27, %c0_28] : memref<9x128x128xbf16, #tpu.memory_space<vmem>>, vector<1x128x128xbf16>
    %68 = vector.shape_cast %67 : vector<1x128x128xbf16> to vector<128x128xbf16>
    %cst_29 = arith.constant dense<0.000000e+00> : vector<256x128xf32>
    %69 = tpu.matmul %66, %68, %cst_29 {dimension_numbers = #tpu.dot_dimension_numbers<[1], [0], [0], [1], [0, 0, 1, 1], [], []>} : vector<256x128xbf16>, vector<128x128xbf16>, vector<256x128xf32> -> vector<256x128xf32>
    %70 = arith.addf %63, %69 : vector<256x128xf32>
    %71 = vector.extract_strided_slice %34 {offsets = [1, 2, 0], sizes = [16, 16, 128], strides = [1, 1, 1]} : vector<18x18x128xf32> to vector<16x16x128xf32>
    %72 = vector.shape_cast %71 : vector<16x16x128xf32> to vector<256x128xf32>
    %73 = arith.truncf %72 : vector<256x128xf32> to vector<256x128xbf16>
    %c5 = arith.constant 5 : index
    %c0_30 = arith.constant 0 : index
    %c0_31 = arith.constant 0 : index
    %74 = vector.load %arg4[%c5, %c0_30, %c0_31] : memref<9x128x128xbf16, #tpu.memory_space<vmem>>, vector<1x128x128xbf16>
    %75 = vector.shape_cast %74 : vector<1x128x128xbf16> to vector<128x128xbf16>
    %cst_32 = arith.constant dense<0.000000e+00> : vector<256x128xf32>
    %76 = tpu.matmul %73, %75, %cst_32 {dimension_numbers = #tpu.dot_dimension_numbers<[1], [0], [0], [1], [0, 0, 1, 1], [], []>} : vector<256x128xbf16>, vector<128x128xbf16>, vector<256x128xf32> -> vector<256x128xf32>
    %77 = arith.addf %70, %76 : vector<256x128xf32>
    %78 = vector.extract_strided_slice %34 {offsets = [2, 0, 0], sizes = [16, 16, 128], strides = [1, 1, 1]} : vector<18x18x128xf32> to vector<16x16x128xf32>
    %79 = vector.shape_cast %78 : vector<16x16x128xf32> to vector<256x128xf32>
    %80 = arith.truncf %79 : vector<256x128xf32> to vector<256x128xbf16>
    %c6 = arith.constant 6 : index
    %c0_33 = arith.constant 0 : index
    %c0_34 = arith.constant 0 : index
    %81 = vector.load %arg4[%c6, %c0_33, %c0_34] : memref<9x128x128xbf16, #tpu.memory_space<vmem>>, vector<1x128x128xbf16>
    %82 = vector.shape_cast %81 : vector<1x128x128xbf16> to vector<128x128xbf16>
    %cst_35 = arith.constant dense<0.000000e+00> : vector<256x128xf32>
    %83 = tpu.matmul %80, %82, %cst_35 {dimension_numbers = #tpu.dot_dimension_numbers<[1], [0], [0], [1], [0, 0, 1, 1], [], []>} : vector<256x128xbf16>, vector<128x128xbf16>, vector<256x128xf32> -> vector<256x128xf32>
    %84 = arith.addf %77, %83 : vector<256x128xf32>
    %85 = vector.extract_strided_slice %34 {offsets = [2, 1, 0], sizes = [16, 16, 128], strides = [1, 1, 1]} : vector<18x18x128xf32> to vector<16x16x128xf32>
    %86 = vector.shape_cast %85 : vector<16x16x128xf32> to vector<256x128xf32>
    %87 = arith.truncf %86 : vector<256x128xf32> to vector<256x128xbf16>
    %c7 = arith.constant 7 : index
    %c0_36 = arith.constant 0 : index
    %c0_37 = arith.constant 0 : index
    %88 = vector.load %arg4[%c7, %c0_36, %c0_37] : memref<9x128x128xbf16, #tpu.memory_space<vmem>>, vector<1x128x128xbf16>
    %89 = vector.shape_cast %88 : vector<1x128x128xbf16> to vector<128x128xbf16>
    %cst_38 = arith.constant dense<0.000000e+00> : vector<256x128xf32>
    %90 = tpu.matmul %87, %89, %cst_38 {dimension_numbers = #tpu.dot_dimension_numbers<[1], [0], [0], [1], [0, 0, 1, 1], [], []>} : vector<256x128xbf16>, vector<128x128xbf16>, vector<256x128xf32> -> vector<256x128xf32>
    %91 = arith.addf %84, %90 : vector<256x128xf32>
    %92 = vector.extract_strided_slice %34 {offsets = [2, 2, 0], sizes = [16, 16, 128], strides = [1, 1, 1]} : vector<18x18x128xf32> to vector<16x16x128xf32>
    %93 = vector.shape_cast %92 : vector<16x16x128xf32> to vector<256x128xf32>
    %94 = arith.truncf %93 : vector<256x128xf32> to vector<256x128xbf16>
    %c8 = arith.constant 8 : index
    %c0_39 = arith.constant 0 : index
    %c0_40 = arith.constant 0 : index
    %95 = vector.load %arg4[%c8, %c0_39, %c0_40] : memref<9x128x128xbf16, #tpu.memory_space<vmem>>, vector<1x128x128xbf16>
    %96 = vector.shape_cast %95 : vector<1x128x128xbf16> to vector<128x128xbf16>
    %cst_41 = arith.constant dense<0.000000e+00> : vector<256x128xf32>
    %97 = tpu.matmul %94, %96, %cst_41 {dimension_numbers = #tpu.dot_dimension_numbers<[1], [0], [0], [1], [0, 0, 1, 1], [], []>} : vector<256x128xbf16>, vector<128x128xbf16>, vector<256x128xf32> -> vector<256x128xf32>
    %98 = arith.addf %91, %97 : vector<256x128xf32>
    %99 = arith.truncf %98 : vector<256x128xf32> to vector<256x128xbf16>
    %c0_42 = arith.constant 0 : index
    %c0_43 = arith.constant 0 : index
    %c0_44 = arith.constant 0 : index
    %100 = vector.load %arg5[%c0_42, %c0_43, %c0_44] : memref<1x256x128xbf16, #tpu.memory_space<vmem>>, vector<1x256x128xbf16>
    %101 = vector.shape_cast %100 : vector<1x256x128xbf16> to vector<256x128xbf16>
    %102 = vector.shape_cast %99 : vector<256x128xbf16> to vector<1x256x128xbf16>
    tpu.vector_store %arg5[%c0_42, %c0_43, %c0_44], %102 {strides = array<i32>} : memref<1x256x128xbf16, #tpu.memory_space<vmem>>, vector<1x256x128xbf16>,
    %c0_i32 = arith.constant 0 : i32
    %103 = arith.cmpi eq, %arg0, %c0_i32 : i32
    %cst_45 = arith.constant dense<0.000000e+00> : vector<128xf32>
    %104 = vector.multi_reduction <add>, %98, %cst_45 [0] : vector<256x128xf32> to vector<128xf32>
    %105 = vector.shape_cast %104 : vector<128xf32> to vector<1x128xf32>
    %106 = arith.mulf %98, %98 : vector<256x128xf32>
    %cst_46 = arith.constant dense<0.000000e+00> : vector<128xf32>
    %107 = vector.multi_reduction <add>, %106, %cst_46 [0] : vector<256x128xf32> to vector<128xf32>
    %108 = vector.shape_cast %107 : vector<128xf32> to vector<1x128xf32>
    %109 = tpu.concatenate %105, %108 in 0 : vector<1x128xf32>, vector<1x128xf32> -> vector<2x128xf32>
    %110 = arith.extui %103 : i1 to i32
    %c0_i32_47 = arith.constant 0 : i32
    %111 = arith.cmpi ne, %110, %c0_i32_47 : i32
    scf.if %111 {
      %cst_52 = arith.constant 0.000000e+00 : f32
      %115 = vector.broadcast %cst_52 : f32 to vector<2x128xf32>
      %c0_53 = arith.constant 0 : index
      %c0_54 = arith.constant 0 : index
      %116 = vector.load %arg6[%c0_53, %c0_54] : memref<2x128xf32, #tpu.memory_space<vmem>>, vector<2x128xf32>
      tpu.vector_store %arg6[%c0_53, %c0_54], %115 {strides = array<i32>} : memref<2x128xf32, #tpu.memory_space<vmem>>, vector<2x128xf32>,
    } else {
    }
    %c0_48 = arith.constant 0 : index
    %c0_49 = arith.constant 0 : index
    %112 = vector.load %arg6[%c0_48, %c0_49] : memref<2x128xf32, #tpu.memory_space<vmem>>, vector<2x128xf32>
    %113 = arith.addf %112, %109 : vector<2x128xf32>
    %c0_50 = arith.constant 0 : index
    %c0_51 = arith.constant 0 : index
    %114 = vector.load %arg6[%c0_50, %c0_51] : memref<2x128xf32, #tpu.memory_space<vmem>>, vector<2x128xf32>
    tpu.vector_store %arg6[%c0_50, %c0_51], %113 {strides = array<i32>} : memref<2x128xf32, #tpu.memory_space<vmem>>, vector<2x128xf32>,
    return
  }
  func.func @transform_0(%arg0: i32) -> (i32, i32, i32, i32) {
    %c0_i32 = arith.constant 0 : i32
    %c0_i32_0 = arith.constant 0 : i32
    %c0_i32_1 = arith.constant 0 : i32
    %c0_i32_2 = arith.constant 0 : i32
    return %arg0, %c0_i32, %c0_i32_0, %c0_i32_1 : i32, i32, i32, i32
  }
  func.func @transform_1(%arg0: i32) -> (i32, i32) {
    %c0_i32 = arith.constant 0 : i32
    %c0_i32_0 = arith.constant 0 : i32
    %c0_i32_1 = arith.constant 0 : i32
    return %c0_i32, %c0_i32_0 : i32, i32
  }
  func.func @transform_2(%arg0: i32) -> (i32, i32) {
    %c0_i32 = arith.constant 0 : i32
    %c0_i32_0 = arith.constant 0 : i32
    %c0_i32_1 = arith.constant 0 : i32
    return %c0_i32, %c0_i32_0 : i32, i32
  }
  func.func @transform_3(%arg0: i32) -> (i32, i32, i32) {
    %c0_i32 = arith.constant 0 : i32
    %c0_i32_0 = arith.constant 0 : i32
    %c0_i32_1 = arith.constant 0 : i32
    %c0_i32_2 = arith.constant 0 : i32
    return %c0_i32, %c0_i32_0, %c0_i32_1 : i32, i32, i32
  }
  func.func @transform_4(%arg0: i32) -> (i32, i32, i32) {
    %c0_i32 = arith.constant 0 : i32
    %c0_i32_0 = arith.constant 0 : i32
    %c0_i32_1 = arith.constant 0 : i32
    return %arg0, %c0_i32, %c0_i32_0 : i32, i32, i32
  }
  func.func @transform_5(%arg0: i32) -> (i32, i32) {
    %c0_i32 = arith.constant 0 : i32
    %c0_i32_0 = arith.constant 0 : i32
    %c0_i32_1 = arith.constant 0 : i32
    return %c0_i32, %c0_i32_0 : i32, i32
  }
}

module attributes {stable_mosaic.version = 11 : i64} {
  func.func @_bn_relu_add_kernel(%arg0: i32, %arg1: memref<256x128xbf16, #tpu.memory_space<vmem>>, %arg2: memref<2x128xf32, #tpu.memory_space<vmem>>, %arg3: memref<2x128xf32, #tpu.memory_space<vmem>>, %arg4: memref<256x128xf32, #tpu.memory_space<vmem>>, %arg5: memref<256x128xf32, #tpu.memory_space<vmem>>) attributes {dimension_semantics = [#tpu.dimension_semantics<parallel>], iteration_bounds = array<i64: 2>, scalar_prefetch = 0 : i64, scratch_operands = 0 : i64, tpu.core_type = #tpu.core_type<tc>, window_params = [{transform_indices = @transform_0, window_bounds = array<i64: 256, 128>}, {pipeline_mode = #tpu.pipeline_mode<synchronous>, transform_indices = @transform_1, window_bounds = array<i64: 2, 128>}, {pipeline_mode = #tpu.pipeline_mode<synchronous>, transform_indices = @transform_2, window_bounds = array<i64: 2, 128>}, {transform_indices = @transform_3, window_bounds = array<i64: 256, 128>}, {transform_indices = @transform_4, window_bounds = array<i64: 256, 128>}]} {
    %c0 = arith.constant 0 : index
    %c0_0 = arith.constant 0 : index
    %0 = vector.load %arg2[%c0, %c0_0] : memref<2x128xf32, #tpu.memory_space<vmem>>, vector<2x128xf32>
    %c0_1 = arith.constant 0 : index
    %c0_2 = arith.constant 0 : index
    %1 = vector.load %arg3[%c0_1, %c0_2] : memref<2x128xf32, #tpu.memory_space<vmem>>, vector<2x128xf32>
    %2 = vector.extract_strided_slice %0 {offsets = [0, 0], sizes = [1, 128], strides = [1, 1]} : vector<2x128xf32> to vector<1x128xf32>
    %cst = arith.constant 0.001953125 : f32
    %3 = vector.broadcast %cst : f32 to vector<1x128xf32>
    %4 = arith.mulf %2, %3 : vector<1x128xf32>
    %5 = vector.extract_strided_slice %0 {offsets = [1, 0], sizes = [1, 128], strides = [1, 1]} : vector<2x128xf32> to vector<1x128xf32>
    %cst_3 = arith.constant 0.001953125 : f32
    %6 = vector.broadcast %cst_3 : f32 to vector<1x128xf32>
    %7 = arith.mulf %5, %6 : vector<1x128xf32>
    %8 = arith.mulf %4, %4 : vector<1x128xf32>
    %9 = arith.subf %7, %8 : vector<1x128xf32>
    %cst_4 = arith.constant 0.000000e+00 : f32
    %10 = vector.broadcast %cst_4 : f32 to vector<1x128xf32>
    %11 = arith.maximumf %9, %10 : vector<1x128xf32>
    %12 = vector.extract_strided_slice %1 {offsets = [0, 0], sizes = [1, 128], strides = [1, 1]} : vector<2x128xf32> to vector<1x128xf32>
    %cst_5 = arith.constant 9.99999974E-6 : f32
    %13 = vector.broadcast %cst_5 : f32 to vector<1x128xf32>
    %14 = arith.addf %11, %13 : vector<1x128xf32>
    %15 = math.rsqrt %14 : vector<1x128xf32>
    %16 = arith.mulf %12, %15 : vector<1x128xf32>
    %17 = vector.extract_strided_slice %1 {offsets = [1, 0], sizes = [1, 128], strides = [1, 1]} : vector<2x128xf32> to vector<1x128xf32>
    %18 = arith.mulf %4, %16 : vector<1x128xf32>
    %19 = arith.subf %17, %18 : vector<1x128xf32>
    %c0_6 = arith.constant 0 : index
    %c0_7 = arith.constant 0 : index
    %20 = vector.load %arg1[%c0_6, %c0_7] : memref<256x128xbf16, #tpu.memory_space<vmem>>, vector<256x128xbf16>
    %21 = arith.extf %20 : vector<256x128xbf16> to vector<256x128xf32>
    %22 = vector.broadcast %16 : vector<1x128xf32> to vector<256x128xf32>
    %23 = arith.mulf %21, %22 : vector<256x128xf32>
    %24 = vector.broadcast %19 : vector<1x128xf32> to vector<256x128xf32>
    %25 = arith.addf %23, %24 : vector<256x128xf32>
    %cst_8 = arith.constant 0.000000e+00 : f32
    %26 = vector.broadcast %cst_8 : f32 to vector<256x128xf32>
    %27 = arith.maximumf %25, %26 : vector<256x128xf32>
    %c0_9 = arith.constant 0 : index
    %c0_10 = arith.constant 0 : index
    %28 = vector.load %arg4[%c0_9, %c0_10] : memref<256x128xf32, #tpu.memory_space<vmem>>, vector<256x128xf32>
    %29 = arith.addf %28, %27 : vector<256x128xf32>
    %cst_11 = arith.constant 0.000000e+00 : f32
    %30 = vector.broadcast %cst_11 : f32 to vector<256x128xf32>
    %31 = arith.maximumf %29, %30 : vector<256x128xf32>
    %c0_12 = arith.constant 0 : index
    %c0_13 = arith.constant 0 : index
    %32 = vector.load %arg5[%c0_12, %c0_13] : memref<256x128xf32, #tpu.memory_space<vmem>>, vector<256x128xf32>
    tpu.vector_store %arg5[%c0_12, %c0_13], %31 {strides = array<i32>} : memref<256x128xf32, #tpu.memory_space<vmem>>, vector<256x128xf32>,
    return
  }
  func.func @transform_0(%arg0: i32) -> (i32, i32) {
    %c0_i32 = arith.constant 0 : i32
    %c0_i32_0 = arith.constant 0 : i32
    return %arg0, %c0_i32 : i32, i32
  }
  func.func @transform_1(%arg0: i32) -> (i32, i32) {
    %c0_i32 = arith.constant 0 : i32
    %c0_i32_0 = arith.constant 0 : i32
    %c0_i32_1 = arith.constant 0 : i32
    return %c0_i32, %c0_i32_0 : i32, i32
  }
  func.func @transform_2(%arg0: i32) -> (i32, i32) {
    %c0_i32 = arith.constant 0 : i32
    %c0_i32_0 = arith.constant 0 : i32
    %c0_i32_1 = arith.constant 0 : i32
    return %c0_i32, %c0_i32_0 : i32, i32
  }
  func.func @transform_3(%arg0: i32) -> (i32, i32) {
    %c0_i32 = arith.constant 0 : i32
    %c0_i32_0 = arith.constant 0 : i32
    return %arg0, %c0_i32 : i32, i32
  }
  func.func @transform_4(%arg0: i32) -> (i32, i32) {
    %c0_i32 = arith.constant 0 : i32
    %c0_i32_0 = arith.constant 0 : i32
    return %arg0, %c0_i32 : i32, i32
  }
}

module attributes {stable_mosaic.version = 11 : i64} {
  func.func @_bn_relu_conv_stats_kernel(%arg0: i32, %arg1: memref<256x128xbf16, #tpu.memory_space<vmem>>, %arg2: memref<2x128xf32, #tpu.memory_space<vmem>>, %arg3: memref<2x128xf32, #tpu.memory_space<vmem>>, %arg4: memref<128x128xbf16, #tpu.memory_space<vmem>>, %arg5: memref<256x128xbf16, #tpu.memory_space<vmem>>, %arg6: memref<2x128xf32, #tpu.memory_space<vmem>>) attributes {dimension_semantics = [#tpu.dimension_semantics<arbitrary>], iteration_bounds = array<i64: 2>, scalar_prefetch = 0 : i64, scratch_operands = 0 : i64, tpu.core_type = #tpu.core_type<tc>, window_params = [{transform_indices = @transform_0, window_bounds = array<i64: 256, 128>}, {pipeline_mode = #tpu.pipeline_mode<synchronous>, transform_indices = @transform_1, window_bounds = array<i64: 2, 128>}, {pipeline_mode = #tpu.pipeline_mode<synchronous>, transform_indices = @transform_2, window_bounds = array<i64: 2, 128>}, {pipeline_mode = #tpu.pipeline_mode<synchronous>, transform_indices = @transform_3, window_bounds = array<i64: 128, 128>}, {transform_indices = @transform_4, window_bounds = array<i64: 256, 128>}, {pipeline_mode = #tpu.pipeline_mode<synchronous>, transform_indices = @transform_5, window_bounds = array<i64: 2, 128>}]} {
    %c0 = arith.constant 0 : index
    %c0_0 = arith.constant 0 : index
    %0 = vector.load %arg2[%c0, %c0_0] : memref<2x128xf32, #tpu.memory_space<vmem>>, vector<2x128xf32>
    %c0_1 = arith.constant 0 : index
    %c0_2 = arith.constant 0 : index
    %1 = vector.load %arg3[%c0_1, %c0_2] : memref<2x128xf32, #tpu.memory_space<vmem>>, vector<2x128xf32>
    %2 = vector.extract_strided_slice %0 {offsets = [0, 0], sizes = [1, 128], strides = [1, 1]} : vector<2x128xf32> to vector<1x128xf32>
    %cst = arith.constant 0.001953125 : f32
    %3 = vector.broadcast %cst : f32 to vector<1x128xf32>
    %4 = arith.mulf %2, %3 : vector<1x128xf32>
    %5 = vector.extract_strided_slice %0 {offsets = [1, 0], sizes = [1, 128], strides = [1, 1]} : vector<2x128xf32> to vector<1x128xf32>
    %cst_3 = arith.constant 0.001953125 : f32
    %6 = vector.broadcast %cst_3 : f32 to vector<1x128xf32>
    %7 = arith.mulf %5, %6 : vector<1x128xf32>
    %8 = arith.mulf %4, %4 : vector<1x128xf32>
    %9 = arith.subf %7, %8 : vector<1x128xf32>
    %cst_4 = arith.constant 0.000000e+00 : f32
    %10 = vector.broadcast %cst_4 : f32 to vector<1x128xf32>
    %11 = arith.maximumf %9, %10 : vector<1x128xf32>
    %12 = vector.extract_strided_slice %1 {offsets = [0, 0], sizes = [1, 128], strides = [1, 1]} : vector<2x128xf32> to vector<1x128xf32>
    %cst_5 = arith.constant 9.99999974E-6 : f32
    %13 = vector.broadcast %cst_5 : f32 to vector<1x128xf32>
    %14 = arith.addf %11, %13 : vector<1x128xf32>
    %15 = math.rsqrt %14 : vector<1x128xf32>
    %16 = arith.mulf %12, %15 : vector<1x128xf32>
    %17 = vector.extract_strided_slice %1 {offsets = [1, 0], sizes = [1, 128], strides = [1, 1]} : vector<2x128xf32> to vector<1x128xf32>
    %18 = arith.mulf %4, %16 : vector<1x128xf32>
    %19 = arith.subf %17, %18 : vector<1x128xf32>
    %c0_6 = arith.constant 0 : index
    %c0_7 = arith.constant 0 : index
    %20 = vector.load %arg1[%c0_6, %c0_7] : memref<256x128xbf16, #tpu.memory_space<vmem>>, vector<256x128xbf16>
    %21 = arith.extf %20 : vector<256x128xbf16> to vector<256x128xf32>
    %22 = vector.broadcast %16 : vector<1x128xf32> to vector<256x128xf32>
    %23 = arith.mulf %21, %22 : vector<256x128xf32>
    %24 = vector.broadcast %19 : vector<1x128xf32> to vector<256x128xf32>
    %25 = arith.addf %23, %24 : vector<256x128xf32>
    %cst_8 = arith.constant 0.000000e+00 : f32
    %26 = vector.broadcast %cst_8 : f32 to vector<256x128xf32>
    %27 = arith.maximumf %25, %26 : vector<256x128xf32>
    %28 = arith.truncf %27 : vector<256x128xf32> to vector<256x128xbf16>
    %c0_9 = arith.constant 0 : index
    %c0_10 = arith.constant 0 : index
    %29 = vector.load %arg4[%c0_9, %c0_10] : memref<128x128xbf16, #tpu.memory_space<vmem>>, vector<128x128xbf16>
    %cst_11 = arith.constant dense<0.000000e+00> : vector<256x128xf32>
    %30 = tpu.matmul %28, %29, %cst_11 {dimension_numbers = #tpu.dot_dimension_numbers<[1], [0], [0], [1], [0, 0, 1, 1], [], []>} : vector<256x128xbf16>, vector<128x128xbf16>, vector<256x128xf32> -> vector<256x128xf32>
    %31 = arith.truncf %30 : vector<256x128xf32> to vector<256x128xbf16>
    %c0_12 = arith.constant 0 : index
    %c0_13 = arith.constant 0 : index
    %32 = vector.load %arg5[%c0_12, %c0_13] : memref<256x128xbf16, #tpu.memory_space<vmem>>, vector<256x128xbf16>
    tpu.vector_store %arg5[%c0_12, %c0_13], %31 {strides = array<i32>} : memref<256x128xbf16, #tpu.memory_space<vmem>>, vector<256x128xbf16>,
    %c0_i32 = arith.constant 0 : i32
    %33 = arith.cmpi eq, %arg0, %c0_i32 : i32
    %cst_14 = arith.constant dense<0.000000e+00> : vector<128xf32>
    %34 = vector.multi_reduction <add>, %30, %cst_14 [0] : vector<256x128xf32> to vector<128xf32>
    %35 = vector.shape_cast %34 : vector<128xf32> to vector<1x128xf32>
    %36 = arith.mulf %30, %30 : vector<256x128xf32>
    %cst_15 = arith.constant dense<0.000000e+00> : vector<128xf32>
    %37 = vector.multi_reduction <add>, %36, %cst_15 [0] : vector<256x128xf32> to vector<128xf32>
    %38 = vector.shape_cast %37 : vector<128xf32> to vector<1x128xf32>
    %39 = tpu.concatenate %35, %38 in 0 : vector<1x128xf32>, vector<1x128xf32> -> vector<2x128xf32>
    %40 = arith.extui %33 : i1 to i32
    %c0_i32_16 = arith.constant 0 : i32
    %41 = arith.cmpi ne, %40, %c0_i32_16 : i32
    scf.if %41 {
      %cst_21 = arith.constant 0.000000e+00 : f32
      %45 = vector.broadcast %cst_21 : f32 to vector<2x128xf32>
      %c0_22 = arith.constant 0 : index
      %c0_23 = arith.constant 0 : index
      %46 = vector.load %arg6[%c0_22, %c0_23] : memref<2x128xf32, #tpu.memory_space<vmem>>, vector<2x128xf32>
      tpu.vector_store %arg6[%c0_22, %c0_23], %45 {strides = array<i32>} : memref<2x128xf32, #tpu.memory_space<vmem>>, vector<2x128xf32>,
    } else {
    }
    %c0_17 = arith.constant 0 : index
    %c0_18 = arith.constant 0 : index
    %42 = vector.load %arg6[%c0_17, %c0_18] : memref<2x128xf32, #tpu.memory_space<vmem>>, vector<2x128xf32>
    %43 = arith.addf %42, %39 : vector<2x128xf32>
    %c0_19 = arith.constant 0 : index
    %c0_20 = arith.constant 0 : index
    %44 = vector.load %arg6[%c0_19, %c0_20] : memref<2x128xf32, #tpu.memory_space<vmem>>, vector<2x128xf32>
    tpu.vector_store %arg6[%c0_19, %c0_20], %43 {strides = array<i32>} : memref<2x128xf32, #tpu.memory_space<vmem>>, vector<2x128xf32>,
    return
  }
  func.func @transform_0(%arg0: i32) -> (i32, i32) {
    %c0_i32 = arith.constant 0 : i32
    %c0_i32_0 = arith.constant 0 : i32
    return %arg0, %c0_i32 : i32, i32
  }
  func.func @transform_1(%arg0: i32) -> (i32, i32) {
    %c0_i32 = arith.constant 0 : i32
    %c0_i32_0 = arith.constant 0 : i32
    %c0_i32_1 = arith.constant 0 : i32
    return %c0_i32, %c0_i32_0 : i32, i32
  }
  func.func @transform_2(%arg0: i32) -> (i32, i32) {
    %c0_i32 = arith.constant 0 : i32
    %c0_i32_0 = arith.constant 0 : i32
    %c0_i32_1 = arith.constant 0 : i32
    return %c0_i32, %c0_i32_0 : i32, i32
  }
  func.func @transform_3(%arg0: i32) -> (i32, i32) {
    %c0_i32 = arith.constant 0 : i32
    %c0_i32_0 = arith.constant 0 : i32
    %c0_i32_1 = arith.constant 0 : i32
    return %c0_i32, %c0_i32_0 : i32, i32
  }
  func.func @transform_4(%arg0: i32) -> (i32, i32) {
    %c0_i32 = arith.constant 0 : i32
    %c0_i32_0 = arith.constant 0 : i32
    return %arg0, %c0_i32 : i32, i32
  }
  func.func @transform_5(%arg0: i32) -> (i32, i32) {
    %c0_i32 = arith.constant 0 : i32
    %c0_i32_0 = arith.constant 0 : i32
    %c0_i32_1 = arith.constant 0 : i32
    return %c0_i32, %c0_i32_0 : i32, i32
  }
}

</mosaic_0001>

<bundles_post_ra>
// kernel: resblock_forward.4
= control target key start
LH: loop header
LB: loop body
LE: loop exit
PB: predicated region body
PF: predicated region fallthrough
CT: control target
= control target key end

     0   :  { %s1097_s12 = smov 0   ;;  %s1291_s0 = inlined_call_operand.vmem [shape: f32[512,128], index: 0, kind: input, shape index: {}]   ;;  %s1292_s1 = inlined_call_operand.vmem [shape: bf16[128,128], index: 1, kind: input, shape index: {}]   ;;  %s1293_s2 = inlined_call_operand.vmem [shape: bf16[512,128], index: 2, kind: output, shape index: {0}]   ;;  %s1294_s3 = inlined_call_operand.vmem [shape: f32[2,128], index: 3, kind: output, shape index: {1}]  }
   0x1 LB: > { %s784_s13 = sadd.s32 4294967295, %s1074_s12   ;;  %p788_p0 = scmp.ge.s32.totalorder %s1074_s12, 1  ;;  %s1074_s12 = sphi %s1097_s12, %s14_s12  }
   0x2   : > { %p136_p1 = scmp.lt.s32.totalorder %s1074_s12, 3 }
   0x4   : > { %p137_p2 = pnand %p788_p0, %p136_p1 }
   0x5   : > { %s789_s16 = sshll.u32 (!%p137_p2), %s784_s13, 5  ;;  %p833_p4 = scmp.ne.s32.totalorder (!%p137_p2), %s784_s13, 0 }
   0x6   : > { %140 = sbr.rel (%p137_p2) target bundleno = 332 (0x14c), region = 28  ;;  %p161_p3 = scmp.lt.s32.totalorder (!%p137_p2), %s789_s16, 63 }
   0xb   : > { %v1060_v0 = vld [vmem:[%s1292_s1 + $0x38] sm:$0xff]   ;;  %v1061_v1 = vld [vmem:[%s1292_s1 + $0x30] sm:$0xff]   ;;  %s1296_s16 = smov (!%p161_p3, %s789_s16), 63  ;;  %v1062_v2 = vld [vmem:[%s1292_s1 + $0x28] sm:$0xff]   ;;  %vm713_vm0 = vcmask 1040384  }
   0xc   : > { %987 = vmatprep.subr.bf16.mxu0 %v1060_v0  ;;  %1035 = vmatprep.subr.bf16.mxu1 %v1060_v0  ;;  %s790_s21 = sshll.u32 %s1296_s16, 3  ;;  %v1063_v3 = vld [vmem:[%s1292_s1 + $0x20] sm:$0xff]   ;;  %v1064_v7 = vld [vmem:[%s1292_s1 + $0x18] sm:$0xff]   ;;  %v1065_v11 = vld [vmem:[%s1292_s1 + $0x10] sm:$0xff]   ;;  %s792_s8 = sshll.u32 %s1296_s16, 2 }
   0xd   : > { %988 = vmatpush3.bf16.msra.mxu0 %v1060_v0  ;;  %1043 = vmatpush3.bf16.msra.mxu1 %v1060_v0  ;;  %s1122_s24 = scalar_lea.vmem %s1291_s0, %s790_s21  ;;  %v1066_v12 = vld [vmem:[%s1292_s1 + $0x8] sm:$0xff]   ;;  %v1067_v13 = vld [vmem:[%s1292_s1] sm:$0xff]   ;;  %s1179_s11 = scalar_lea.vmem %s1293_s2, %s792_s8 }
   0xe   : > { %989 = vmatprep.subr.bf16.mxu0 %v1061_v1  ;;  %1036 = vmatprep.subr.bf16.mxu1 %v1061_v1  ;;  %v173_v4 = vld [vmem:[%s1122_s24] sm:$0xff]  ;;  %v174_v5 = vld [vmem:[%s1122_s24 + $0x8] sm:$0xff]  ;;  %v175_v14 = vld [vmem:[%s1122_s24 + $0x10] sm:$0xff] }
   0xf   : > { %v205_v6 = vpack.c.bf16 %v174_v5, %v173_v4  ;;  %v189_v8 = vld [vmem:[%s1122_s24 + $0x80] sm:$0xff]  ;;  %v190_v9 = vld [vmem:[%s1122_s24 + $0x88] sm:$0xff]  ;;  %v176_v15 = vld [vmem:[%s1122_s24 + $0x18] sm:$0xff] }
  0x10   : > { %v213_v10 = vpack.c.bf16 %v190_v9, %v189_v8  ;;  %v177_v16 = vld [vmem:[%s1122_s24 + $0x20] sm:$0xff]  ;;  %v178_v17 = vld [vmem:[%s1122_s24 + $0x28] sm:$0xff]  ;;  %v191_v18 = vld [vmem:[%s1122_s24 + $0x90] sm:$0xff]  ;;  %v206_v22 = vpack.c.bf16 %v176_v15, %v175_v14 }
  0x11   : > { %990 = vmatpush3.bf16.msra.mxu0 %v1061_v1  ;;  %1044 = vmatpush3.bf16.msra.mxu1 %v1061_v1  ;;  %v192_v19 = vld [vmem:[%s1122_s24 + $0x98] sm:$0xff]  ;;  %v193_v20 = vld [vmem:[%s1122_s24 + $0xa0] sm:$0xff]  ;;  %v194_v21 = vld [vmem:[%s1122_s24 + $0xa8] sm:$0xff]  ;;  %v207_v23 = vpack.c.bf16 %v178_v17, %v177_v16 }
  0x12   : > { %991 = vmatprep.subr.bf16.mxu0 %v1062_v2  ;;  %1037 = vmatprep.subr.bf16.mxu1 %v1062_v2  ;;  %v214_v24 = vpack.c.bf16 %v192_v19, %v191_v18  ;;  %v215_v25 = vpack.c.bf16 %v194_v21, %v193_v20  ;;  %v179_v26 = vld [vmem:[%s1122_s24 + $0x30] sm:$0xff]  ;;  %v180_v27 = vld [vmem:[%s1122_s24 + $0x38] sm:$0xff]  ;;  %v181_v28 = vld [vmem:[%s1122_s24 + $0x40] sm:$0xff] }
  0x13   : > { %1003 = vmatprep.mubr.bf16.mxu0 %v205_v6  ;;  %1019 = vmatprep.mubr.bf16.mxu1 %v213_v10  ;;  %v182_v29 = vld [vmem:[%s1122_s24 + $0x48] sm:$0xff]  ;;  %v195_v30 = vld [vmem:[%s1122_s24 + $0xb0] sm:$0xff]  ;;  %v196_v31 = vld [vmem:[%s1122_s24 + $0xb8] sm:$0xff]  ;;  %v208_v34 = vpack.c.bf16 %v180_v27, %v179_v26 }
  0x14   : > { %v197_v32 = vld [vmem:[%s1122_s24 + $0xc0] sm:$0xff]  ;;  %v198_v33 = vld [vmem:[%s1122_s24 + $0xc8] sm:$0xff]  ;;  %v209_v35 = vpack.c.bf16 %v182_v29, %v181_v28  ;;  %v216_v36 = vpack.c.bf16 %v196_v31, %v195_v30  ;;  %v183_v38 = vld [vmem:[%s1122_s24 + $0x50] sm:$0xff] }
  0x15   : > { %992 = vmatpush3.bf16.msra.mxu0 %v1062_v2  ;;  %1045 = vmatpush3.bf16.msra.mxu1 %v1062_v2  ;;  %v217_v37 = vpack.c.bf16 %v198_v33, %v197_v32  ;;  %v184_v39 = vld [vmem:[%s1122_s24 + $0x58] sm:$0xff]  ;;  %v185_v40 = vld [vmem:[%s1122_s24 + $0x60] sm:$0xff]  ;;  %v186_v41 = vld [vmem:[%s1122_s24 + $0x68] sm:$0xff] }
  0x16   : > { %993 = vmatprep.subr.bf16.mxu0 %v1063_v3  ;;  %1038 = vmatprep.subr.bf16.mxu1 %v1063_v3  ;;  %v199_v42 = vld [vmem:[%s1122_s24 + $0xd0] sm:$0xff]  ;;  %v200_v43 = vld [vmem:[%s1122_s24 + $0xd8] sm:$0xff]  ;;  %v201_v44 = vld [vmem:[%s1122_s24 + $0xe0] sm:$0xff]  ;;  %v210_v46 = vpack.c.bf16 %v184_v39, %v183_v38  ;;  %v211_v47 = vpack.c.bf16 %v186_v41, %v185_v40 }
  0x17   : > { %v202_v45 = vld [vmem:[%s1122_s24 + $0xe8] sm:$0xff]  ;;  %v218_v48 = vpack.c.bf16 %v200_v43, %v199_v42  ;;  %v187_v50 = vld [vmem:[%s1122_s24 + $0x70] sm:$0xff]  ;;  %v188_v51 = vld [vmem:[%s1122_s24 + $0x78] sm:$0xff] }
  0x18   : > { %v219_v49 = vpack.c.bf16 %v202_v45, %v201_v44  ;;  %v203_v52 = vld [vmem:[%s1122_s24 + $0xf0] sm:$0xff]  ;;  %v204_v53 = vld [vmem:[%s1122_s24 + $0xf8] sm:$0xff]  ;;  %v212_v54 = vpack.c.bf16 %v188_v51, %v187_v50 }
  0x19   : > { %994 = vmatpush3.bf16.msra.mxu0 %v1063_v3  ;;  %1046 = vmatpush3.bf16.msra.mxu1 %v1063_v3  ;;  %v220_v55 = vpack.c.bf16 %v204_v53, %v203_v52 }
  0x1a   : > { %995 = vmatprep.subr.bf16.mxu0 %v1064_v7  ;;  %1039 = vmatprep.subr.bf16.mxu1 %v1064_v7 }
  0x1d   : > { %996 = vmatpush3.bf16.msra.mxu0 %v1064_v7  ;;  %1047 = vmatpush3.bf16.msra.mxu1 %v1064_v7 }
  0x1e   : > { %997 = vmatprep.subr.bf16.mxu0 %v1065_v11  ;;  %1040 = vmatprep.subr.bf16.mxu1 %v1065_v11 }
  0x21   : > { %998 = vmatpush3.bf16.msra.mxu0 %v1065_v11  ;;  %1048 = vmatpush3.bf16.msra.mxu1 %v1065_v11 }
  0x22   : > { %999 = vmatprep.subr.bf16.mxu0 %v1066_v12  ;;  %1041 = vmatprep.subr.bf16.mxu1 %v1066_v12 }
  0x25   : > { %1000 = vmatpush3.bf16.msra.mxu0 %v1066_v12  ;;  %1049 = vmatpush3.bf16.msra.mxu1 %v1066_v12 }
  0x26   : > { %1001 = vmatprep.subr.bf16.mxu0 %v1067_v13  ;;  %1042 = vmatprep.subr.bf16.mxu1 %v1067_v13 }
  0x29   : > { %1002 = vmatpush3.bf16.msra.mxu0 %v1067_v13  ;;  %1050 = vmatpush3.bf16.msra.mxu1 %v1067_v13 }
  0x2c   : > { %1004 = vmatmul.mubr.bf16.vlgmr.msra.gmra.mxu0 %v206_v22  ;;  %1020 = vmatmul.mubr.bf16.vlgmr.msra.gmra.mxu1 %v214_v24 }
  0x2d   : > { %1007 = vmatprep.mubr.bf16.mxu0 %v207_v23  ;;  %1023 = vmatprep.mubr.bf16.mxu1 %v215_v25 }
  0x34   : > { %1008 = vmatmul.mubr.bf16.gmra.mxu0 %v208_v34  ;;  %1024 = vmatmul.mubr.bf16.gmra.mxu1 %v216_v36 }
  0x35   : > { %1011 = vmatprep.mubr.bf16.mxu0 %v209_v35  ;;  %1027 = vmatprep.mubr.bf16.mxu1 %v217_v37 }
  0x3c   : > { %1012 = vmatmul.mubr.bf16.gmra.mxu0 %v210_v46  ;;  %1028 = vmatmul.mubr.bf16.gmra.mxu1 %v218_v48 }
  0x3d   : > { %1015 = vmatprep.mubr.bf16.mxu0 %v211_v47  ;;  %1031 = vmatprep.mubr.bf16.mxu1 %v219_v49 }
  0x44   : > { %1016 = vmatmul.mubr.bf16.gmra.mxu0 %v212_v54  ;;  %1032 = vmatmul.mubr.bf16.gmra.mxu1 %v220_v55 }
  0xec   : > { %v1005_v56 = vpop.f32.mrf.mxu0  ;;  %v1172_v57 = vpop.f32.mrf.mxu1 }
  0xed   : > { %v646_v8 = vmul.f32 %v1005_v56, %v1005_v56 }
  0xee   : > { %v319_v58 = vpop.f32.mrf.mxu0  ;;  %v1174_v59 = vpop.f32.mrf.mxu1 }
  0xef   : > { %v644_v1 = vmul.f32 %v319_v58, %v319_v58 }
  0xf0   : > { %v1006_v60 = vpop.f32.mrf.mxu0  ;;  %v1181_v62 = vpop.f32.mrf.mxu1 }
  0xf1   : > { %v876_v61 = vpack.c.bf16 %v1006_v60, %v1005_v56  ;;  %v916_v0 = vpack.c.bf16 %v1181_v62, %v1172_v57  ;;  %v647_v13 = vmul.f32 %v1006_v60, %v1006_v60 }
  0xf2   : > { %v322_v63 = vpop.f32.mrf.mxu0  ;;  %v1186_v5 = vpop.f32.mrf.mxu1 }
  0xf3   : > { %948 = vst [vmem:[%s1179_s11 + $0x8] sm:$0xff] %v876_v61   ;;  %v871_v2 = vpack.c.bf16 %v322_v63, %v319_v58  ;;  %v607_v3 = vadd.f32 %v322_v63, %v319_v58  ;;  %v645_v4 = vmul.f32 %v322_v63, %v322_v63  ;;  %956 = vst [vmem:[%s1179_s11 + $0x48] sm:$0xff] %v916_v0  }
  0xf4   : > { %v1009_v6 = vpop.f32.mrf.mxu0  ;;  %v911_v7 = vpack.c.bf16 %v1186_v5, %v1174_v59  ;;  %v1192_v11 = vpop.f32.mrf.mxu1 }
  0xf5   : > { %872 = vst [vmem:[%s1179_s11] sm:$0xff] %v871_v2   ;;  %v608_v9 = vadd.f32 %v1005_v56, %v607_v3  ;;  %v676_v10 = vadd.f32 %v645_v4, %v644_v1  ;;  %v650_v32 = vmul.f32 %v1009_v6, %v1009_v6 }
  0xf6   : > { %v335_v12 = vpop.f32.mrf.mxu0  ;;  %955 = vst [vmem:[%s1179_s11 + $0x40] sm:$0xff] %v911_v7   ;;  %v1195_v16 = vpop.f32.mrf.mxu1 }
  0xf7   : > { %v677_v14 = vadd.f32 %v676_v10, %v646_v8  ;;  %v609_v15 = vadd.f32 %v1006_v60, %v608_v9  ;;  %v648_v19 = vmul.f32 %v335_v12, %v335_v12 }
  0xf8   : > { %v1010_v17 = vpop.f32.mrf.mxu0  ;;  %v1197_v22 = vpop.f32.mrf.mxu1 }
  0xf9   : > { %v610_v18 = vadd.f32 %v609_v15, %v335_v12  ;;  %v678_v20 = vadd.f32 %v677_v14, %v647_v13  ;;  %v886_v21 = vpack.c.bf16 %v1010_v17, %v1009_v6  ;;  %v926_v24 = vpack.c.bf16 %v1197_v22, %v1192_v11 }
  0xfa   : > { %v338_v23 = vpop.f32.mrf.mxu0  ;;  %v1202_v29 = vpop.f32.mrf.mxu1  ;;  %v651_v37 = vmul.f32 %v1010_v17, %v1010_v17 }
  0xfb   : > { %v679_v25 = vadd.f32 %v678_v20, %v648_v19  ;;  %950 = vst [vmem:[%s1179_s11 + $0x18] sm:$0xff] %v886_v21   ;;  %v881_v26 = vpack.c.bf16 %v338_v23, %v335_v12  ;;  %v611_v27 = vadd.f32 %v610_v18, %v338_v23  ;;  %v649_v28 = vmul.f32 %v338_v23, %v338_v23 }
  0xfc   : > { %v1013_v30 = vpop.f32.mrf.mxu0  ;;  %958 = vst [vmem:[%s1179_s11 + $0x58] sm:$0xff] %v926_v24   ;;  %v921_v31 = vpack.c.bf16 %v1202_v29, %v1195_v16  ;;  %v1208_v35 = vpop.f32.mrf.mxu1 }
  0xfd   : > { %949 = vst [vmem:[%s1179_s11 + $0x10] sm:$0xff] %v881_v26   ;;  %v612_v33 = vadd.f32 %v1009_v6, %v611_v27  ;;  %v680_v34 = vadd.f32 %v679_v25, %v649_v28  ;;  %v654_v56 = vmul.f32 %v1013_v30, %v1013_v30  ;;  %v660_v28 = vmul.f32 %v1174_v59, %v1174_v59 }
  0xfe   : > { %v351_v36 = vpop.f32.mrf.mxu0  ;;  %957 = vst [vmem:[%s1179_s11 + $0x50] sm:$0xff] %v921_v31   ;;  %v1211_v40 = vpop.f32.mrf.mxu1 }
  0xff   : > { %v681_v38 = vadd.f32 %v680_v34, %v650_v32  ;;  %v613_v39 = vadd.f32 %v1010_v17, %v612_v33  ;;  %v652_v43 = vmul.f32 %v351_v36, %v351_v36  ;;  %v661_v33 = vmul.f32 %v1186_v5, %v1186_v5 }
 0x100   : > { %v1014_v41 = vpop.f32.mrf.mxu0  ;;  %v1213_v46 = vpop.f32.mrf.mxu1 }
 0x101   : > { %v614_v42 = vadd.f32 %v613_v39, %v351_v36  ;;  %v682_v44 = vadd.f32 %v681_v38, %v651_v37  ;;  %v896_v45 = vpack.c.bf16 %v1014_v41, %v1013_v30  ;;  %v936_v48 = vpack.c.bf16 %v1213_v46, %v1208_v35 }
 0x102   : > { %v354_v47 = vpop.f32.mrf.mxu0  ;;  %v1218_v53 = vpop.f32.mrf.mxu1  ;;  %v655_v0 = vmul.f32 %v1014_v41, %v1014_v41  ;;  %v663_v39 = vmul.f32 %v1181_v62, %v1181_v62 }
 0x103   : > { %v683_v49 = vadd.f32 %v682_v44, %v652_v43  ;;  %952 = vst [vmem:[%s1179_s11 + $0x28] sm:$0xff] %v896_v45   ;;  %v891_v50 = vpack.c.bf16 %v354_v47, %v351_v36  ;;  %v615_v51 = vadd.f32 %v614_v42, %v354_v47  ;;  %v653_v52 = vmul.f32 %v354_v47, %v354_v47 }
 0x104   : > { %v1017_v54 = vpop.f32.mrf.mxu0  ;;  %960 = vst [vmem:[%s1179_s11 + $0x68] sm:$0xff] %v936_v48   ;;  %v931_v55 = vpack.c.bf16 %v1218_v53, %v1211_v40  ;;  %v1224_v61 = vpop.f32.mrf.mxu1  ;;  %v662_v36 = vmul.f32 %v1172_v57, %v1172_v57  ;;  %v664_v43 = vmul.f32 %v1195_v16, %v1195_v16  ;;  %v665_v47 = vmul.f32 %v1202_v29, %v1202_v29 }
 0x105   : > { %951 = vst [vmem:[%s1179_s11 + $0x20] sm:$0xff] %v891_v50   ;;  %v616_v58 = vadd.f32 %v1013_v30, %v615_v51  ;;  %v684_v60 = vadd.f32 %v683_v49, %v653_v52  ;;  %v658_v21 = vmul.f32 %v1017_v54, %v1017_v54  ;;  %v668_v52 = vmul.f32 %v1211_v40, %v1211_v40 }
 0x106   : > { %v367_v63 = vpop.f32.mrf.mxu0  ;;  %959 = vst [vmem:[%s1179_s11 + $0x60] sm:$0xff] %v931_v55   ;;  %v431_v3 = vpop.f32.mrf.mxu1 }
 0x107   : > { %v685_v1 = vadd.f32 %v684_v60, %v654_v56  ;;  %v617_v2 = vadd.f32 %v1014_v41, %v616_v58  ;;  %v656_v7 = vmul.f32 %v367_v63, %v367_v63  ;;  %v669_v56 = vmul.f32 %v1218_v53, %v1218_v53 }
 0x108   : > { %v1018_v4 = vpop.f32.mrf.mxu0  ;;  %v1227_v10 = vpop.f32.mrf.mxu1 }
 0x109   : > { %v618_v6 = vadd.f32 %v617_v2, %v367_v63  ;;  %v686_v8 = vadd.f32 %v685_v1, %v655_v0  ;;  %v906_v9 = vpack.c.bf16 %v1018_v4, %v1017_v54  ;;  %v946_v13 = vpack.c.bf16 %v1227_v10, %v1224_v61 }
 0x10a   : > { %v370_v12 = vpop.f32.mrf.mxu0  ;;  %v434_v19 = vpop.f32.mrf.mxu1  ;;  %v659_v25 = vmul.f32 %v1018_v4, %v1018_v4  ;;  %v672_v1 = vmul.f32 %v431_v3, %v431_v3 }
 0x10b   : > { %v687_v14 = vadd.f32 %v686_v8, %v656_v7  ;;  %954 = vst [vmem:[%s1179_s11 + $0x38] sm:$0xff] %v906_v9   ;;  %v901_v15 = vpack.c.bf16 %v370_v12, %v367_v63  ;;  %v619_v17 = vadd.f32 %v618_v6, %v370_v12  ;;  %v657_v18 = vmul.f32 %v370_v12, %v370_v12 }
 0x10c   : > { %962 = vst [vmem:[%s1179_s11 + $0x78] sm:$0xff] %v946_v13   ;;  %v941_v20 = vpack.c.bf16 %v434_v19, %v431_v3  ;;  %v673_v7 = vmul.f32 %v434_v19, %v434_v19 }
 0x10d   : > { %953 = vst [vmem:[%s1179_s11 + $0x30] sm:$0xff] %v901_v15   ;;  %v620_v23 = vadd.f32 %v1017_v54, %v619_v17  ;;  %v688_v24 = vadd.f32 %v687_v14, %v657_v18 }
 0x10e   : > { %961 = vst [vmem:[%s1179_s11 + $0x70] sm:$0xff] %v941_v20  }
 0x10f   : > { %v621_v26 = vadd.f32 %v1018_v4, %v620_v23  ;;  %v689_v27 = vadd.f32 %v688_v24, %v658_v21 }
 0x111   : > { %v690_v30 = vadd.f32 %v689_v27, %v659_v25  ;;  %v622_v31 = vadd.f32 %v621_v26, %v1174_v59 }
 0x113   : > { %v623_v32 = vadd.f32 %v622_v31, %v1186_v5  ;;  %v691_v34 = vadd.f32 %v690_v30, %v660_v28 }
 0x115   : > { %v624_v37 = vadd.f32 %v1172_v57, %v623_v32  ;;  %v692_v38 = vadd.f32 %v691_v34, %v661_v33  ;;  %v666_v57 = vmul.f32 %v1192_v11, %v1192_v11 }
 0x117   : > { %v693_v41 = vadd.f32 %v692_v38, %v662_v36  ;;  %v625_v42 = vadd.f32 %v1181_v62, %v624_v37  ;;  %v667_v62 = vmul.f32 %v1197_v22, %v1197_v22 }
 0x119   : > { %v626_v59 = vadd.f32 %v625_v42, %v1195_v16  ;;  %v694_v44 = vadd.f32 %v693_v41, %v663_v39 }
 0x11b   : > { %v695_v5 = vadd.f32 %v694_v44, %v664_v43  ;;  %v627_v45 = vadd.f32 %v626_v59, %v1202_v29 }
 0x11d   : > { %v628_v48 = vadd.f32 %v1192_v11, %v627_v45  ;;  %v696_v49 = vadd.f32 %v695_v5, %v665_v47  ;;  %v670_v11 = vmul.f32 %v1208_v35, %v1208_v35 }
 0x11f   : > { %v697_v50 = vadd.f32 %v696_v49, %v666_v57  ;;  %v629_v51 = vadd.f32 %v1197_v22, %v628_v48  ;;  %v671_v22 = vmul.f32 %v1213_v46, %v1213_v46 }
 0x121   : > { %v630_v16 = vadd.f32 %v629_v51, %v1211_v40  ;;  %v698_v54 = vadd.f32 %v697_v50, %v667_v62 }
 0x123   : > { %v699_v55 = vadd.f32 %v698_v54, %v668_v52  ;;  %v631_v29 = vadd.f32 %v630_v16, %v1218_v53  ;;  %v674_v53 = vmul.f32 %v1224_v61, %v1224_v61 }
 0x125   : > { %v632_v58 = vadd.f32 %v1208_v35, %v631_v29  ;;  %v700_v60 = vadd.f32 %v699_v55, %v669_v56  ;;  %v675_v35 = vmul.f32 %v1227_v10, %v1227_v10 }
 0x127   : > { %v701_v63 = vadd.f32 %v700_v60, %v670_v11  ;;  %v633_v0 = vadd.f32 %v1213_v46, %v632_v58 }
 0x129   : > { %v634_v40 = vadd.f32 %v633_v0, %v431_v3  ;;  %v702_v2 = vadd.f32 %v701_v63, %v671_v22 }
 0x12b   : > { %v703_v4 = vadd.f32 %v702_v2, %v672_v1  ;;  %v635_v6 = vadd.f32 %v634_v40, %v434_v19 }
 0x12d   : > { %v636_v8 = vadd.f32 %v1224_v61, %v635_v6  ;;  %v704_v9 = vadd.f32 %v703_v4, %v673_v7 }
 0x12f   : > { %v637_v12 = vadd.f32 %v1227_v10, %v636_v8  ;;  %v705_v13 = vadd.f32 %v704_v9, %v674_v53 }
 0x131   : > { %v638_v14 = vrot.slane %v637_v12, 4  ;;  %v706_v46 = vadd.f32 %v705_v13, %v675_v35 }
 0x133   : > { %v639_v15 = vadd.f32 %v638_v14, %v637_v12  ;;  %v707_v3 = vrot.slane %v706_v46, 4 }
 0x135   : > { %v640_v17 = vrot.slane %v639_v15, 2  ;;  %v708_v18 = vadd.f32 %v707_v3, %v706_v46 }
 0x137   : > { %v641_v20 = vadd.f32 %v640_v17, %v639_v15  ;;  %v709_v19 = vrot.slane %v708_v18, 2 }
 0x139   : > { %v642_v21 = vrot.slane %v641_v20, 1  ;;  %v710_v23 = vadd.f32 %v709_v19, %v708_v18 }
 0x13b   : > { %v711_v24 = vrot.slane %v710_v23, 1  ;;  %v643_v61 = vadd.f32 %v642_v21, %v641_v20  ;;  %717 = sbr.rel (%p833_p4) target bundleno = 322 (0x142), region = 32 }
 0x13d   : > { %v712_v25 = vadd.f32 %v711_v24, %v710_v23 }
 0x13f   : > { %v714_v26 = vsel %vm713_vm0, %v643_v61, %v712_v25 }
 0x140   : > { %v1076_v10 = vmov 0.0  }
 0x141   : > { %718 = vst [vmem:[%s1294_s3] sm:$0x3] %v1076_v10 }
 0x142 PF:  {}
 0x148   : > { %v719_v27 = vld [vmem:[%s1294_s3] sm:$0x3] }
 0x149   : > { %v720_v28 = vadd.f32 %v719_v27, %v714_v26 }
 0x14b   : > { %721 = vst [vmem:[%s1294_s3] sm:$0x3] %v720_v28 }
 0x14c PF: > { %s14_s12 = sadd.s32 1, %s1074_s12  }
 0x14d   : > { %p11_p5 = scmp.ge.s32.totalorder %s14_s12, 4  }
 0x14f   :  { %13 = sbr.rel (!%p11_p5) target bundleno = 1 (0x1), region = 70 }

// kernel: resblock_forward.7
= control target key start
LH: loop header
LB: loop body
LE: loop exit
PB: predicated region body
PF: predicated region fallthrough
CT: control target
= control target key end

     0   :  { %s742_s15 = smov 0   ;;  %s1025_s0 = inlined_call_operand.vmem [shape: bf16[512,128], index: 0, kind: input, shape index: {}]   ;;  %s1026_s1 = inlined_call_operand.vmem [shape: f32[2,128], index: 1, kind: input, shape index: {}]   ;;  %s1027_s2 = inlined_call_operand.vmem [shape: f32[2,128], index: 2, kind: input, shape index: {}]   ;;  %s1028_s3 = inlined_call_operand.vmem [shape: f32[512,128], index: 3, kind: input, shape index: {}]   ;;  %s1029_s4 = inlined_call_operand.vmem [shape: f32[512,128], index: 4, kind: output, shape index: {}]  }
   0x1 LB: > { %s607_s16 = sadd.s32 4294967295, %s715_s15   ;;  %p611_p0 = scmp.ge.s32.totalorder %s715_s15, 1  ;;  %s715_s15 = sphi %s742_s15, %s14_s15  }
   0x2   : > { %p174_p1 = scmp.lt.s32.totalorder %s715_s15, 3 }
   0x4   : > { %p175_p2 = pnand %p611_p0, %p174_p1 }
   0x5   : > { %s612_s19 = sshll.u32 (!%p175_p2), %s607_s16, 5 }
   0x6   : > { %178 = sbr.rel (%p175_p2) target bundleno = 90 (0x5a), region = 36  ;;  %p206_p3 = scmp.lt.s32.totalorder (!%p175_p2), %s612_s19, 63 }
   0xb   : > { %v223_v0 = vld [vmem:[%s1026_s1] sm:$0x3]  ;;  %s1031_s19 = smov (!%p206_p3, %s612_s19), 63  ;;  %v307_v7 = vlaneseq }
   0xc   : > { %v225_v1 = vmul.f32 0.001953125, %v223_v0  ;;  %s613_s20 = sshll.u32 %s1031_s19, 2  ;;  %v224_v30 = vld [vmem:[%s1027_s2] sm:$0x3]  ;;  %s615_s26 = sshll.u32 %s1031_s19, 3 }
   0xd   : > { %s759_s23 = scalar_lea.vmem %s1025_s0, %s613_s20  ;;  %v761_v8 = vshrl.u32 %v307_v7, 7  ;;  %s842_s29 = scalar_lea.vmem %s1028_s3, %s615_s26 }
   0xe   : > { %v226_v2 = vmul.f32 %v225_v1, %v225_v1  ;;  %v621_v9 = vld [vmem:[%s759_s23] sm:$0xff]   ;;  %v684_v10 = vld [vmem:[%s759_s23 + $0x8] sm:$0xff]   ;;  %v685_v11 = vld [vmem:[%s759_s23 + $0x10] sm:$0xff]   ;;  %s898_s6 = scalar_lea.vmem %s1029_s4, %s615_s26 }
   0xf   : > { %v767_v12 = vld [vmem:[%s759_s23 + $0x18] sm:$0xff]   ;;  %v309_v13 = vsub.s32 0, %v761_v8  ;;  %v345_v14 = vsub.s32 1, %v761_v8  ;;  %v772_v15 = vld [vmem:[%s759_s23 + $0x20] sm:$0xff]   ;;  %v775_v16 = vld [vmem:[%s759_s23 + $0x28] sm:$0xff]   ;;  %v622_v17 = vunpack.c.l.bf16 %v621_v9  ;;  %v623_v18 = vunpack.c.h.bf16 %v621_v9 }
  0x10   : > { %v228_v3 = vrot.slane %v226_v2, 7  ;;  %v626_v19 = vunpack.c.l.bf16 %v684_v10  ;;  %v627_v20 = vunpack.c.h.bf16 %v684_v10  ;;  %v689_v21 = vld [vmem:[%s759_s23 + $0x30] sm:$0xff]   ;;  %v779_v22 = vld [vmem:[%s759_s23 + $0x38] sm:$0xff]   ;;  %v630_v23 = vunpack.c.l.bf16 %v685_v11  ;;  %v691_v27 = vld [vmem:[%s759_s23 + $0x40] sm:$0xff]  }
  0x11   : > { %v631_v24 = vunpack.c.h.bf16 %v685_v11  ;;  %v634_v25 = vunpack.c.l.bf16 %v767_v12  ;;  %v635_v26 = vunpack.c.h.bf16 %v767_v12  ;;  %v692_v28 = vld [vmem:[%s759_s23 + $0x48] sm:$0xff]   ;;  %v638_v31 = vunpack.c.l.bf16 %v772_v15  ;;  %v793_v35 = vld [vmem:[%s759_s23 + $0x50] sm:$0xff]   ;;  %v797_v40 = vld [vmem:[%s759_s23 + $0x58] sm:$0xff]  }
  0x12   : > { %v230_v4 = vsub.f32 %v225_v1, %v228_v3  ;;  %v639_v32 = vunpack.c.h.bf16 %v772_v15  ;;  %v642_v33 = vunpack.c.l.bf16 %v775_v16  ;;  %v643_v34 = vunpack.c.h.bf16 %v775_v16  ;;  %v800_v41 = vld [vmem:[%s759_s23 + $0x60] sm:$0xff]   ;;  %v804_v46 = vld [vmem:[%s759_s23 + $0x68] sm:$0xff]   ;;  %v809_v51 = vld [vmem:[%s759_s23 + $0x70] sm:$0xff]  }
  0x13   : > { %v646_v37 = vunpack.c.l.bf16 %v689_v21  ;;  %v647_v38 = vunpack.c.h.bf16 %v689_v21  ;;  %v650_v39 = vunpack.c.l.bf16 %v779_v22  ;;  %v651_v42 = vunpack.c.h.bf16 %v779_v22  ;;  %v812_v52 = vld [vmem:[%s759_s23 + $0x78] sm:$0xff]  }
  0x14   : > { %v231_v5 = vmax.f32 %v230_v4, 0.0  ;;  %v654_v43 = vunpack.c.l.bf16 %v691_v27  ;;  %v655_v44 = vunpack.c.h.bf16 %v691_v27  ;;  %v658_v45 = vunpack.c.l.bf16 %v692_v28 }
  0x15   : > { %v659_v48 = vunpack.c.h.bf16 %v692_v28  ;;  %v662_v49 = vunpack.c.l.bf16 %v793_v35  ;;  %v663_v50 = vunpack.c.h.bf16 %v793_v35  ;;  %v666_v53 = vunpack.c.l.bf16 %v797_v40  ;;  %v412_v28 = vld [vmem:[%s842_s29 + $0x8] sm:$0xff] }
  0x16   : > { %v232_v6 = vadd.f32 1e-05, %v231_v5  ;;  %v667_v54 = vunpack.c.h.bf16 %v797_v40  ;;  %v670_v55 = vunpack.c.l.bf16 %v800_v41  ;;  %v671_v56 = vunpack.c.h.bf16 %v800_v41  ;;  %v432_v40 = vld [vmem:[%s842_s29 + $0xa8] sm:$0xff] }
  0x17   : > { %v674_v59 = vunpack.c.l.bf16 %v804_v46  ;;  %v675_v60 = vunpack.c.h.bf16 %v804_v46  ;;  %v678_v61 = vunpack.c.l.bf16 %v809_v51  ;;  %v679_v62 = vunpack.c.h.bf16 %v809_v51 }
  0x18   : > { %707 = vrsqrt.f32 %v232_v6  ;;  %v682_v63 = vunpack.c.l.bf16 %v812_v52  ;;  %v683_v0 = vunpack.c.h.bf16 %v812_v52  ;;  %v440_v52 = vld [vmem:[%s842_s29 + $0xe8] sm:$0xff] }
  0x25   : > { %v708_v29 = vpop.eup %707 }
  0x26   : > { %v235_v36 = vrot.slane %v708_v29, 1 }
  0x28   : > { %v237_v47 = vmul.f32 %v235_v36, %v224_v30 }
  0x2a   : > { %v238_v57 = vmul.f32 %v237_v47, %v225_v1  ;;  %v818_v58 = vrot.slane %v237_v47, %v309_v13  ;;  %v417_v47 = vld [vmem:[%s842_s29 + $0x30] sm:$0xff] }
  0x2c   : > { %v240_v2 = vrot.slane %v238_v57, 7  ;;  %v311_v3 = vmul.f32 %v622_v17, %v818_v58  ;;  %v312_v1 = vmul.f32 %v623_v18, %v818_v58  ;;  %v313_v4 = vmul.f32 %v626_v19, %v818_v58 }
  0x2d   : > { %v314_v5 = vmul.f32 %v627_v20, %v818_v58  ;;  %v315_v6 = vmul.f32 %v630_v23, %v818_v58  ;;  %v316_v7 = vmul.f32 %v631_v24, %v818_v58  ;;  %v317_v9 = vmul.f32 %v634_v25, %v818_v58 }
  0x2e   : > { %v242_v10 = vsub.f32 %v224_v30, %v240_v2  ;;  %v318_v11 = vmul.f32 %v635_v26, %v818_v58  ;;  %v319_v12 = vmul.f32 %v638_v31, %v818_v58  ;;  %v320_v13 = vmul.f32 %v639_v32, %v818_v58  ;;  %v411_v26 = vld [vmem:[%s842_s29] sm:$0xff]  ;;  %v413_v30 = vld [vmem:[%s842_s29 + $0x10] sm:$0xff]  ;;  %v414_v32 = vld [vmem:[%s842_s29 + $0x18] sm:$0xff] }
  0x2f   : > { %v321_v15 = vmul.f32 %v642_v33, %v818_v58  ;;  %v322_v16 = vmul.f32 %v643_v34, %v818_v58  ;;  %v847_v17 = vmul.f32 %v646_v37, %v818_v58  ;;  %v850_v18 = vmul.f32 %v647_v38, %v818_v58  ;;  %v415_v34 = vld [vmem:[%s842_s29 + $0x20] sm:$0xff]  ;;  %v416_v37 = vld [vmem:[%s842_s29 + $0x28] sm:$0xff] }
  0x30   : > { %v854_v19 = vrot.slane %v242_v10, %v345_v14  ;;  %v857_v20 = vmul.f32 %v650_v39, %v818_v58  ;;  %v860_v21 = vmul.f32 %v651_v42, %v818_v58  ;;  %v863_v22 = vmul.f32 %v654_v43, %v818_v58 }
  0x31   : > { %v866_v23 = vmul.f32 %v655_v44, %v818_v58  ;;  %v869_v24 = vmul.f32 %v658_v45, %v818_v58  ;;  %v872_v8 = vmul.f32 %v659_v48, %v818_v58  ;;  %v875_v14 = vmul.f32 %v662_v49, %v818_v58  ;;  %v418_v48 = vld [vmem:[%s842_s29 + $0x38] sm:$0xff] }
  0x32   : > { %v347_v25 = vadd.f32 %v854_v19, %v311_v3  ;;  %v348_v27 = vadd.f32 %v854_v19, %v312_v1  ;;  %v349_v29 = vadd.f32 %v854_v19, %v313_v4  ;;  %v350_v31 = vadd.f32 %v854_v19, %v314_v5 }
  0x33   : > { %v351_v33 = vadd.f32 %v854_v19, %v315_v6  ;;  %v352_v36 = vadd.f32 %v854_v19, %v316_v7  ;;  %v353_v38 = vadd.f32 %v854_v19, %v317_v9  ;;  %v354_v39 = vadd.f32 %v854_v19, %v318_v11 }
  0x34   : > { %v379_v42 = vmax.f32 %v347_v25, 0.0  ;;  %v380_v43 = vmax.f32 %v348_v27, 0.0  ;;  %v381_v44 = vmax.f32 %v349_v29, 0.0  ;;  %v382_v45 = vmax.f32 %v350_v31, 0.0 }
  0x35   : > { %v383_v49 = vmax.f32 %v351_v33, 0.0  ;;  %v384_v57 = vmax.f32 %v352_v36, 0.0  ;;  %v385_v2 = vmax.f32 %v353_v38, 0.0  ;;  %v386_v3 = vmax.f32 %v354_v39, 0.0  ;;  %v421_v39 = vld [vmem:[%s842_s29 + $0x50] sm:$0xff] }
  0x36   : > { %v443_v1 = vadd.f32 %v411_v26, %v379_v42  ;;  %v444_v4 = vadd.f32 %v412_v28, %v380_v43  ;;  %v445_v5 = vadd.f32 %v413_v30, %v381_v44  ;;  %v446_v6 = vadd.f32 %v414_v32, %v382_v45  ;;  %v422_v43 = vld [vmem:[%s842_s29 + $0x58] sm:$0xff]  ;;  %v424_v45 = vld [vmem:[%s842_s29 + $0x68] sm:$0xff] }
  0x37   : > { %v447_v7 = vadd.f32 %v415_v34, %v383_v49  ;;  %v448_v9 = vadd.f32 %v416_v37, %v384_v57  ;;  %v449_v10 = vadd.f32 %v417_v47, %v385_v2  ;;  %v450_v11 = vadd.f32 %v418_v48, %v386_v3  ;;  %v419_v34 = vld [vmem:[%s842_s29 + $0x40] sm:$0xff]  ;;  %v420_v37 = vld [vmem:[%s842_s29 + $0x48] sm:$0xff]  ;;  %v425_v2 = vld [vmem:[%s842_s29 + $0x70] sm:$0xff] }
  0x38   : > { %v475_v25 = vmax.f32 %v443_v1, 0.0  ;;  %v476_v26 = vmax.f32 %v444_v4, 0.0  ;;  %v477_v27 = vmax.f32 %v445_v5, 0.0  ;;  %v478_v28 = vmax.f32 %v446_v6, 0.0  ;;  %v426_v3 = vld [vmem:[%s842_s29 + $0x78] sm:$0xff] }
  0x39   : > { %v479_v29 = vmax.f32 %v447_v7, 0.0  ;;  %v480_v30 = vmax.f32 %v448_v9, 0.0  ;;  %v481_v31 = vmax.f32 %v449_v10, 0.0  ;;  %v482_v32 = vmax.f32 %v450_v11, 0.0 }
  0x3a   : > { %507 = vst [vmem:[%s898_s6] sm:$0xff] %v475_v25  ;;  %508 = vst [vmem:[%s898_s6 + $0x8] sm:$0xff] %v476_v26  ;;  %v355_v33 = vadd.f32 %v854_v19, %v319_v12  ;;  %v356_v36 = vadd.f32 %v854_v19, %v320_v13  ;;  %v357_v38 = vadd.f32 %v854_v19, %v321_v15  ;;  %v423_v12 = vld [vmem:[%s842_s29 + $0x60] sm:$0xff] }
  0x3b   : > { %509 = vst [vmem:[%s898_s6 + $0x10] sm:$0xff] %v477_v27  ;;  %510 = vst [vmem:[%s898_s6 + $0x18] sm:$0xff] %v478_v28  ;;  %v358_v42 = vadd.f32 %v854_v19, %v322_v16  ;;  %v359_v44 = vadd.f32 %v854_v19, %v847_v17  ;;  %v360_v13 = vadd.f32 %v854_v19, %v850_v18 }
  0x3c   : > { %511 = vst [vmem:[%s898_s6 + $0x20] sm:$0xff] %v479_v29  ;;  %512 = vst [vmem:[%s898_s6 + $0x28] sm:$0xff] %v480_v30  ;;  %v361_v15 = vadd.f32 %v854_v19, %v857_v20  ;;  %v362_v16 = vadd.f32 %v854_v19, %v860_v21  ;;  %v387_v47 = vmax.f32 %v355_v33, 0.0  ;;  %v388_v48 = vmax.f32 %v356_v36, 0.0 }
  0x3d   : > { %513 = vst [vmem:[%s898_s6 + $0x30] sm:$0xff] %v481_v31  ;;  %514 = vst [vmem:[%s898_s6 + $0x38] sm:$0xff] %v482_v32  ;;  %v389_v49 = vmax.f32 %v357_v38, 0.0  ;;  %v390_v57 = vmax.f32 %v358_v42, 0.0  ;;  %v391_v1 = vmax.f32 %v359_v44, 0.0  ;;  %v392_v4 = vmax.f32 %v360_v13, 0.0 }
  0x3e   : > { %v393_v17 = vmax.f32 %v361_v15, 0.0  ;;  %v394_v5 = vmax.f32 %v362_v16, 0.0  ;;  %v451_v6 = vadd.f32 %v419_v34, %v387_v47  ;;  %v452_v18 = vadd.f32 %v420_v37, %v388_v48  ;;  %v427_v34 = vld [vmem:[%s842_s29 + $0x80] sm:$0xff]  ;;  %v429_v42 = vld [vmem:[%s842_s29 + $0x90] sm:$0xff] }
  0x3f   : > { %v453_v7 = vadd.f32 %v421_v39, %v389_v49  ;;  %v454_v20 = vadd.f32 %v422_v43, %v390_v57  ;;  %v455_v9 = vadd.f32 %v423_v12, %v391_v1  ;;  %v456_v21 = vadd.f32 %v424_v45, %v392_v4  ;;  %v428_v39 = vld [vmem:[%s842_s29 + $0x88] sm:$0xff]  ;;  %v430_v43 = vld [vmem:[%s842_s29 + $0x98] sm:$0xff] }
  0x40   : > { %v457_v10 = vadd.f32 %v425_v2, %v393_v17  ;;  %v458_v11 = vadd.f32 %v426_v3, %v394_v5  ;;  %v483_v25 = vmax.f32 %v451_v6, 0.0  ;;  %v484_v26 = vmax.f32 %v452_v18, 0.0  ;;  %v434_v57 = vld [vmem:[%s842_s29 + $0xb8] sm:$0xff] }
  0x41   : > { %v485_v27 = vmax.f32 %v453_v7, 0.0  ;;  %v486_v28 = vmax.f32 %v454_v20, 0.0  ;;  %v487_v29 = vmax.f32 %v455_v9, 0.0  ;;  %v488_v30 = vmax.f32 %v456_v21, 0.0 }
  0x42   : > { %v489_v31 = vmax.f32 %v457_v10, 0.0  ;;  %v490_v32 = vmax.f32 %v458_v11, 0.0  ;;  %515 = vst [vmem:[%s898_s6 + $0x40] sm:$0xff] %v483_v25  ;;  %516 = vst [vmem:[%s898_s6 + $0x48] sm:$0xff] %v484_v26  ;;  %v363_v33 = vadd.f32 %v854_v19, %v863_v22  ;;  %v364_v36 = vadd.f32 %v854_v19, %v866_v23 }
  0x43   : > { %517 = vst [vmem:[%s898_s6 + $0x50] sm:$0xff] %v485_v27  ;;  %518 = vst [vmem:[%s898_s6 + $0x58] sm:$0xff] %v486_v28  ;;  %v365_v37 = vadd.f32 %v854_v19, %v869_v24  ;;  %v366_v38 = vadd.f32 %v854_v19, %v872_v8  ;;  %v367_v22 = vadd.f32 %v854_v19, %v875_v14  ;;  %v431_v14 = vld [vmem:[%s842_s29 + $0xa0] sm:$0xff] }
  0x44   : > { %519 = vst [vmem:[%s898_s6 + $0x60] sm:$0xff] %v487_v29  ;;  %520 = vst [vmem:[%s898_s6 + $0x68] sm:$0xff] %v488_v30  ;;  %v332_v23 = vmul.f32 %v663_v50, %v818_v58  ;;  %v333_v24 = vmul.f32 %v666_v53, %v818_v58  ;;  %v334_v8 = vmul.f32 %v667_v54, %v818_v58  ;;  %v395_v44 = vmax.f32 %v363_v33, 0.0  ;;  %v433_v54 = vld [vmem:[%s842_s29 + $0xb0] sm:$0xff]  ;;  %v435_v29 = vld [vmem:[%s842_s29 + $0xc0] sm:$0xff] }
  0x45   : > { %521 = vst [vmem:[%s898_s6 + $0x70] sm:$0xff] %v489_v31  ;;  %522 = vst [vmem:[%s898_s6 + $0x78] sm:$0xff] %v490_v32  ;;  %v396_v12 = vmax.f32 %v364_v36, 0.0  ;;  %v397_v13 = vmax.f32 %v365_v37, 0.0  ;;  %v398_v45 = vmax.f32 %v366_v38, 0.0  ;;  %v399_v15 = vmax.f32 %v367_v22, 0.0 }
  0x46   : > { %v368_v35 = vadd.f32 %v854_v19, %v332_v23  ;;  %v369_v50 = vadd.f32 %v854_v19, %v333_v24  ;;  %v370_v16 = vadd.f32 %v854_v19, %v334_v8  ;;  %v459_v47 = vadd.f32 %v427_v34, %v395_v44  ;;  %v437_v31 = vld [vmem:[%s842_s29 + $0xd0] sm:$0xff]  ;;  %v438_v32 = vld [vmem:[%s842_s29 + $0xd8] sm:$0xff] }
  0x47   : > { %v460_v53 = vadd.f32 %v428_v39, %v396_v12  ;;  %v461_v48 = vadd.f32 %v429_v42, %v397_v13  ;;  %v462_v49 = vadd.f32 %v430_v43, %v398_v45  ;;  %v463_v2 = vadd.f32 %v431_v14, %v399_v15  ;;  %v439_v43 = vld [vmem:[%s842_s29 + $0xe0] sm:$0xff] }
  0x48   : > { %v400_v3 = vmax.f32 %v368_v35, 0.0  ;;  %v401_v1 = vmax.f32 %v369_v50, 0.0  ;;  %v402_v4 = vmax.f32 %v370_v16, 0.0  ;;  %v491_v17 = vmax.f32 %v459_v47, 0.0 }
  0x49   : > { %v492_v5 = vmax.f32 %v460_v53, 0.0  ;;  %v493_v6 = vmax.f32 %v461_v48, 0.0  ;;  %v494_v18 = vmax.f32 %v462_v49, 0.0  ;;  %v495_v7 = vmax.f32 %v463_v2, 0.0 }
  0x4a   : > { %v464_v20 = vadd.f32 %v432_v40, %v400_v3  ;;  %v465_v9 = vadd.f32 %v433_v54, %v401_v1  ;;  %v466_v21 = vadd.f32 %v434_v57, %v402_v4  ;;  %523 = vst [vmem:[%s898_s6 + $0x80] sm:$0xff] %v491_v17  ;;  %v335_v10 = vmul.f32 %v670_v55, %v818_v58 }
  0x4b   : > { %524 = vst [vmem:[%s898_s6 + $0x88] sm:$0xff] %v492_v5  ;;  %525 = vst [vmem:[%s898_s6 + $0x90] sm:$0xff] %v493_v6  ;;  %v336_v11 = vmul.f32 %v671_v56, %v818_v58  ;;  %v337_v25 = vmul.f32 %v674_v59, %v818_v58  ;;  %v338_v26 = vmul.f32 %v675_v60, %v818_v58  ;;  %v436_v60 = vld [vmem:[%s842_s29 + $0xc8] sm:$0xff] }
  0x4c   : > { %526 = vst [vmem:[%s898_s6 + $0x98] sm:$0xff] %v494_v18  ;;  %527 = vst [vmem:[%s898_s6 + $0xa0] sm:$0xff] %v495_v7  ;;  %v496_v27 = vmax.f32 %v464_v20, 0.0  ;;  %v497_v28 = vmax.f32 %v465_v9, 0.0  ;;  %v498_v55 = vmax.f32 %v466_v21, 0.0  ;;  %v339_v41 = vmul.f32 %v678_v61, %v818_v58 }
  0x4d   : > { %v371_v56 = vadd.f32 %v854_v19, %v335_v10  ;;  %v372_v30 = vadd.f32 %v854_v19, %v336_v11  ;;  %v373_v59 = vadd.f32 %v854_v19, %v337_v25  ;;  %v374_v46 = vadd.f32 %v854_v19, %v338_v26 }
  0x4e   : > { %528 = vst [vmem:[%s898_s6 + $0xa8] sm:$0xff] %v496_v27  ;;  %529 = vst [vmem:[%s898_s6 + $0xb0] sm:$0xff] %v497_v28  ;;  %v375_v33 = vadd.f32 %v854_v19, %v339_v41  ;;  %v340_v61 = vmul.f32 %v679_v62, %v818_v58  ;;  %v341_v34 = vmul.f32 %v682_v63, %v818_v58 }
  0x4f   : > { %530 = vst [vmem:[%s898_s6 + $0xb8] sm:$0xff] %v498_v55  ;;  %v342_v36 = vmul.f32 %v683_v0, %v818_v58  ;;  %v403_v37 = vmax.f32 %v371_v56, 0.0  ;;  %v404_v38 = vmax.f32 %v372_v30, 0.0  ;;  %v405_v39 = vmax.f32 %v373_v59, 0.0  ;;  %v441_v58 = vld [vmem:[%s842_s29 + $0xf0] sm:$0xff]  ;;  %v442_v0 = vld [vmem:[%s842_s29 + $0xf8] sm:$0xff] }
  0x50   : > { %v406_v42 = vmax.f32 %v374_v46, 0.0  ;;  %v407_v22 = vmax.f32 %v375_v33, 0.0  ;;  %v376_v51 = vadd.f32 %v854_v19, %v340_v61  ;;  %v377_v62 = vadd.f32 %v854_v19, %v341_v34 }
  0x51   : > { %v378_v23 = vadd.f32 %v854_v19, %v342_v36  ;;  %v467_v24 = vadd.f32 %v435_v29, %v403_v37  ;;  %v468_v63 = vadd.f32 %v436_v60, %v404_v38  ;;  %v469_v8 = vadd.f32 %v437_v31, %v405_v39 }
  0x52   : > { %v470_v44 = vadd.f32 %v438_v32, %v406_v42  ;;  %v471_v12 = vadd.f32 %v439_v43, %v407_v22  ;;  %v408_v13 = vmax.f32 %v376_v51, 0.0  ;;  %v409_v45 = vmax.f32 %v377_v62, 0.0 }
  0x53   : > { %v410_v14 = vmax.f32 %v378_v23, 0.0  ;;  %v499_v15 = vmax.f32 %v467_v24, 0.0  ;;  %v500_v35 = vmax.f32 %v468_v63, 0.0  ;;  %v501_v19 = vmax.f32 %v469_v8, 0.0 }
  0x54   : > { %v502_v50 = vmax.f32 %v470_v44, 0.0  ;;  %v503_v16 = vmax.f32 %v471_v12, 0.0  ;;  %v472_v47 = vadd.f32 %v440_v52, %v408_v13  ;;  %v473_v53 = vadd.f32 %v441_v58, %v409_v45 }
  0x55   : > { %v474_v48 = vadd.f32 %v442_v0, %v410_v14  ;;  %531 = vst [vmem:[%s898_s6 + $0xc0] sm:$0xff] %v499_v15  ;;  %532 = vst [vmem:[%s898_s6 + $0xc8] sm:$0xff] %v500_v35 }
  0x56   : > { %533 = vst [vmem:[%s898_s6 + $0xd0] sm:$0xff] %v501_v19  ;;  %534 = vst [vmem:[%s898_s6 + $0xd8] sm:$0xff] %v502_v50  ;;  %v504_v49 = vmax.f32 %v472_v47, 0.0  ;;  %v505_v40 = vmax.f32 %v473_v53, 0.0 }
  0x57   : > { %535 = vst [vmem:[%s898_s6 + $0xe0] sm:$0xff] %v503_v16  ;;  %v506_v54 = vmax.f32 %v474_v48, 0.0 }
  0x58   : > { %536 = vst [vmem:[%s898_s6 + $0xe8] sm:$0xff] %v504_v49  ;;  %537 = vst [vmem:[%s898_s6 + $0xf0] sm:$0xff] %v505_v40 }
  0x59   : > { %538 = vst [vmem:[%s898_s6 + $0xf8] sm:$0xff] %v506_v54 }
  0x5a PF: > { %s14_s15 = sadd.s32 1, %s715_s15  }
  0x5b   : > { %p11_p4 = scmp.ge.s32.totalorder %s14_s15, 4  }
  0x5d   :  { %13 = sbr.rel (!%p11_p4) target bundleno = 1 (0x1), region = 69 }

// kernel: resblock_forward.6
= control target key start
LH: loop header
LB: loop body
LE: loop exit
PB: predicated region body
PF: predicated region fallthrough
CT: control target
= control target key end

     0   :  { %s1398_s18 = smov 0   ;;  %s1679_s0 = inlined_call_operand.vmem [shape: bf16[512,128], index: 0, kind: input, shape index: {}]   ;;  %s1680_s1 = inlined_call_operand.vmem [shape: f32[2,128], index: 1, kind: input, shape index: {}]   ;;  %s1681_s2 = inlined_call_operand.vmem [shape: f32[2,128], index: 2, kind: input, shape index: {}]   ;;  %s1682_s3 = inlined_call_operand.vmem [shape: bf16[128,128], index: 3, kind: input, shape index: {}]   ;;  %s1683_s4 = inlined_call_operand.vmem [shape: bf16[512,128], index: 4, kind: output, shape index: {0}]   ;;  %s1684_s5 = inlined_call_operand.vmem [shape: f32[2,128], index: 5, kind: output, shape index: {1}]  }
   0x1 LB: > { %s994_s19 = sadd.s32 4294967295, %s1365_s18   ;;  %p998_p0 = scmp.ge.s32.totalorder %s1365_s18, 1  ;;  %s1365_s18 = sphi %s1398_s18, %s16_s18  }
   0x2   : > { %p186_p1 = scmp.lt.s32.totalorder %s1365_s18, 3 }
   0x4   : > { %p187_p2 = pnand %p998_p0, %p186_p1 }
   0x5   : > { %s999_s7 = sshll.u32 (!%p187_p2), %s994_s19, 5  ;;  %p1043_p4 = scmp.ne.s32.totalorder (!%p187_p2), %s994_s19, 0 }
   0x6   : > { %190 = sbr.rel (%p187_p2) target bundleno = 347 (0x15b), region = 36  ;;  %p215_p3 = scmp.lt.s32.totalorder (!%p187_p2), %s999_s7, 63 }
   0xb   : > { %v1349_v0 = vld [vmem:[%s1682_s3 + $0x38] sm:$0xff]   ;;  %v1350_v1 = vld [vmem:[%s1682_s3 + $0x30] sm:$0xff]   ;;  %v1351_v2 = vld [vmem:[%s1682_s3 + $0x28] sm:$0xff]   ;;  %s1686_s7 = smov (!%p215_p3, %s999_s7), 63  ;;  %v311_v15 = vlaneseq  ;;  %vm923_vm0 = vcmask 1040384  }
   0xc   : > { %1276 = vmatprep.subr.bf16.mxu0 %v1349_v0  ;;  %1324 = vmatprep.subr.bf16.mxu1 %v1349_v0  ;;  %v1352_v3 = vld [vmem:[%s1682_s3 + $0x20] sm:$0xff]   ;;  %v1353_v7 = vld [vmem:[%s1682_s3 + $0x18] sm:$0xff]   ;;  %v1354_v10 = vld [vmem:[%s1682_s3 + $0x10] sm:$0xff]   ;;  %s1000_s14 = sshll.u32 %s1686_s7, 2 }
   0xd   : > { %1277 = vmatpush3.bf16.msra.mxu0 %v1349_v0  ;;  %1332 = vmatpush3.bf16.msra.mxu1 %v1349_v0  ;;  %v227_v4 = vld [vmem:[%s1680_s1] sm:$0x3]  ;;  %v1355_v13 = vld [vmem:[%s1682_s3 + $0x8] sm:$0xff]   ;;  %s1448_s17 = scalar_lea.vmem %s1679_s0, %s1000_s14  ;;  %v1450_v16 = vshrl.u32 %v311_v15, 7  ;;  %s1593_s24 = scalar_lea.vmem %s1683_s4, %s1000_s14 }
   0xe   : > { %1278 = vmatprep.subr.bf16.mxu0 %v1350_v1  ;;  %1325 = vmatprep.subr.bf16.mxu1 %v1350_v1  ;;  %v1421_v5 = vmul.f32 0.001953125, %v227_v4  ;;  %v1356_v14 = vld [vmem:[%s1682_s3] sm:$0xff]   ;;  %v1222_v18 = vld [vmem:[%s1448_s17 + $0x8] sm:$0xff]   ;;  %v1223_v19 = vld [vmem:[%s1448_s17 + $0x10] sm:$0xff]  }
   0xf   : > { %v1079_v17 = vld [vmem:[%s1448_s17] sm:$0xff]   ;;  %v1224_v20 = vld [vmem:[%s1448_s17 + $0x18] sm:$0xff]   ;;  %v313_v26 = vsub.s32 0, %v1450_v16  ;;  %v349_v27 = vsub.s32 1, %v1450_v16  ;;  %v1226_v28 = vld [vmem:[%s1448_s17 + $0x28] sm:$0xff]   ;;  %v1084_v30 = vunpack.c.l.bf16 %v1222_v18  ;;  %v1085_v31 = vunpack.c.h.bf16 %v1222_v18 }
  0x10   : > { %v230_v6 = vmul.f32 %v1421_v5, %v1421_v5  ;;  %v1225_v21 = vld [vmem:[%s1448_s17 + $0x20] sm:$0xff]   ;;  %v1080_v24 = vunpack.c.l.bf16 %v1079_v17  ;;  %v1081_v25 = vunpack.c.h.bf16 %v1079_v17  ;;  %v1088_v32 = vunpack.c.l.bf16 %v1223_v19  ;;  %v1227_v33 = vld [vmem:[%s1448_s17 + $0x30] sm:$0xff]   ;;  %v1465_v34 = vld [vmem:[%s1448_s17 + $0x38] sm:$0xff]  }
  0x11   : > { %1279 = vmatpush3.bf16.msra.mxu0 %v1350_v1  ;;  %1333 = vmatpush3.bf16.msra.mxu1 %v1350_v1  ;;  %v228_v23 = vld [vmem:[%s1681_s2] sm:$0x3]  ;;  %v1089_v35 = vunpack.c.h.bf16 %v1223_v19  ;;  %v1092_v36 = vunpack.c.l.bf16 %v1224_v20  ;;  %v1093_v37 = vunpack.c.h.bf16 %v1224_v20  ;;  %v1096_v38 = vunpack.c.l.bf16 %v1225_v21  ;;  %v1471_v44 = vld [vmem:[%s1448_s17 + $0x48] sm:$0xff]   ;;  %v1474_v45 = vld [vmem:[%s1448_s17 + $0x50] sm:$0xff]  }
  0x12   : > { %1280 = vmatprep.subr.bf16.mxu0 %v1351_v2  ;;  %1326 = vmatprep.subr.bf16.mxu1 %v1351_v2  ;;  %v232_v8 = vrot.slane %v230_v6, 7  ;;  %v1468_v39 = vld [vmem:[%s1448_s17 + $0x40] sm:$0xff]   ;;  %v1097_v41 = vunpack.c.h.bf16 %v1225_v21  ;;  %v1100_v42 = vunpack.c.l.bf16 %v1226_v28  ;;  %v1101_v43 = vunpack.c.h.bf16 %v1226_v28  ;;  %v1479_v50 = vld [vmem:[%s1448_s17 + $0x58] sm:$0xff]   ;;  %v1490_v56 = vld [vmem:[%s1448_s17 + $0x68] sm:$0xff]  }
  0x13   : > { %v1104_v46 = vunpack.c.l.bf16 %v1227_v33  ;;  %v1105_v47 = vunpack.c.h.bf16 %v1227_v33  ;;  %v1108_v48 = vunpack.c.l.bf16 %v1465_v34  ;;  %v1109_v49 = vunpack.c.h.bf16 %v1465_v34  ;;  %v1482_v51 = vld [vmem:[%s1448_s17 + $0x60] sm:$0xff]  }
  0x14   : > { %v234_v9 = vsub.f32 %v1421_v5, %v232_v8  ;;  %v1112_v54 = vunpack.c.l.bf16 %v1468_v39  ;;  %v1113_v55 = vunpack.c.h.bf16 %v1468_v39  ;;  %v1116_v57 = vunpack.c.l.bf16 %v1471_v44 }
  0x15   : > { %1281 = vmatpush3.bf16.msra.mxu0 %v1351_v2  ;;  %1334 = vmatpush3.bf16.msra.mxu1 %v1351_v2  ;;  %v1117_v58 = vunpack.c.h.bf16 %v1471_v44  ;;  %v1120_v59 = vunpack.c.l.bf16 %v1474_v45  ;;  %v1121_v60 = vunpack.c.h.bf16 %v1474_v45  ;;  %v1124_v62 = vunpack.c.l.bf16 %v1479_v50 }
  0x16   : > { %1282 = vmatprep.subr.bf16.mxu0 %v1352_v3  ;;  %1327 = vmatprep.subr.bf16.mxu1 %v1352_v3  ;;  %v235_v11 = vmax.f32 %v234_v9, 0.0  ;;  %v1125_v63 = vunpack.c.h.bf16 %v1479_v50  ;;  %v1128_v0 = vunpack.c.l.bf16 %v1482_v51  ;;  %v1129_v2 = vunpack.c.h.bf16 %v1482_v51 }
  0x17   : > { %v1133_v4 = vunpack.c.h.bf16 %v1490_v56 }
  0x18   : > { %v236_v12 = vadd.f32 1e-05, %v235_v11 }
  0x19   : > { %1283 = vmatpush3.bf16.msra.mxu0 %v1352_v3  ;;  %1335 = vmatpush3.bf16.msra.mxu1 %v1352_v3  ;;  %v1132_v3 = vunpack.c.l.bf16 %v1490_v56 }
  0x1a   : > { %1284 = vmatprep.subr.bf16.mxu0 %v1353_v7  ;;  %1328 = vmatprep.subr.bf16.mxu1 %v1353_v7  ;;  %1357 = vrsqrt.f32 %v236_v12 }
  0x1d   : > { %1285 = vmatpush3.bf16.msra.mxu0 %v1353_v7  ;;  %1336 = vmatpush3.bf16.msra.mxu1 %v1353_v7 }
  0x1e   : > { %1286 = vmatprep.subr.bf16.mxu0 %v1354_v10  ;;  %1329 = vmatprep.subr.bf16.mxu1 %v1354_v10 }
  0x21   : > { %1287 = vmatpush3.bf16.msra.mxu0 %v1354_v10  ;;  %1337 = vmatpush3.bf16.msra.mxu1 %v1354_v10 }
  0x22   : > { %1288 = vmatprep.subr.bf16.mxu0 %v1355_v13  ;;  %1330 = vmatprep.subr.bf16.mxu1 %v1355_v13 }
  0x25   : > { %1289 = vmatpush3.bf16.msra.mxu0 %v1355_v13  ;;  %1338 = vmatpush3.bf16.msra.mxu1 %v1355_v13 }
  0x26   : > { %1290 = vmatprep.subr.bf16.mxu0 %v1356_v14  ;;  %1331 = vmatprep.subr.bf16.mxu1 %v1356_v14 }
  0x27   : > { %v1358_v22 = vpop.eup %1357 }
  0x28   : > { %v239_v29 = vrot.slane %v1358_v22, 1 }
  0x29   : > { %1291 = vmatpush3.bf16.msra.mxu0 %v1356_v14  ;;  %1339 = vmatpush3.bf16.msra.mxu1 %v1356_v14 }
  0x2a   : > { %v241_v40 = vmul.f32 %v239_v29, %v228_v23 }
  0x2c   : > { %v242_v52 = vmul.f32 %v241_v40, %v1421_v5  ;;  %v1485_v53 = vrot.slane %v241_v40, %v313_v26 }
  0x2e   : > { %v244_v61 = vrot.slane %v242_v52, 7  ;;  %v315_v1 = vmul.f32 %v1080_v24, %v1485_v53  ;;  %v316_v6 = vmul.f32 %v1081_v25, %v1485_v53  ;;  %v317_v7 = vmul.f32 %v1084_v30, %v1485_v53 }
  0x2f   : > { %v318_v8 = vmul.f32 %v1085_v31, %v1485_v53  ;;  %v319_v9 = vmul.f32 %v1088_v32, %v1485_v53  ;;  %v320_v10 = vmul.f32 %v1089_v35, %v1485_v53  ;;  %v321_v11 = vmul.f32 %v1092_v36, %v1485_v53 }
  0x30   : > { %v246_v5 = vsub.f32 %v228_v23, %v244_v61  ;;  %v322_v12 = vmul.f32 %v1093_v37, %v1485_v53  ;;  %v323_v14 = vmul.f32 %v1096_v38, %v1485_v53  ;;  %v324_v15 = vmul.f32 %v1097_v41, %v1485_v53 }
  0x31   : > { %v325_v16 = vmul.f32 %v1100_v42, %v1485_v53  ;;  %v326_v17 = vmul.f32 %v1101_v43, %v1485_v53  ;;  %v327_v18 = vmul.f32 %v1104_v46, %v1485_v53  ;;  %v328_v19 = vmul.f32 %v1105_v47, %v1485_v53  ;;  %v1235_v42 = vld [vmem:[%s1448_s17 + $0x70] sm:$0xff]  }
  0x32   : > { %v1510_v13 = vrot.slane %v246_v5, %v349_v27  ;;  %v331_v20 = vmul.f32 %v1112_v54, %v1485_v53  ;;  %v332_v47 = vmul.f32 %v1113_v55, %v1485_v53  ;;  %v333_v61 = vmul.f32 %v1116_v57, %v1485_v53 }
  0x33   : > { %v329_v55 = vmul.f32 %v1108_v48, %v1485_v53  ;;  %v336_v34 = vmul.f32 %v1121_v60, %v1485_v53  ;;  %v339_v45 = vmul.f32 %v1128_v0, %v1485_v53  ;;  %v1236_v0 = vld [vmem:[%s1448_s17 + $0x78] sm:$0xff]   ;;  %v342_v51 = vmul.f32 %v1133_v4, %v1485_v53 }
  0x34   : > { %v351_v21 = vadd.f32 %v1510_v13, %v315_v1  ;;  %v352_v22 = vadd.f32 %v1510_v13, %v316_v6  ;;  %v353_v23 = vadd.f32 %v1510_v13, %v317_v7  ;;  %v354_v24 = vadd.f32 %v1510_v13, %v318_v8 }
  0x35   : > { %v355_v25 = vadd.f32 %v1510_v13, %v319_v9  ;;  %v356_v26 = vadd.f32 %v1510_v13, %v320_v10  ;;  %v357_v27 = vadd.f32 %v1510_v13, %v321_v11  ;;  %v358_v28 = vadd.f32 %v1510_v13, %v322_v12 }
  0x36   : > { %v383_v29 = vmax.f32 %v351_v21, 0.0  ;;  %v384_v30 = vmax.f32 %v352_v22, 0.0  ;;  %v385_v31 = vmax.f32 %v353_v23, 0.0  ;;  %v386_v32 = vmax.f32 %v354_v24, 0.0 }
  0x37   : > { %v387_v33 = vmax.f32 %v355_v25, 0.0  ;;  %v388_v35 = vmax.f32 %v356_v26, 0.0  ;;  %v389_v36 = vmax.f32 %v357_v27, 0.0  ;;  %v390_v37 = vmax.f32 %v358_v28, 0.0 }
  0x38   : > { %v415_v38 = vpack.c.bf16 %v384_v30, %v383_v29  ;;  %v416_v39 = vpack.c.bf16 %v386_v32, %v385_v31  ;;  %v359_v40 = vadd.f32 %v1510_v13, %v323_v14  ;;  %v360_v41 = vadd.f32 %v1510_v13, %v324_v15 }
  0x39   : > { %v417_v43 = vpack.c.bf16 %v388_v35, %v387_v33  ;;  %v361_v44 = vadd.f32 %v1510_v13, %v325_v16  ;;  %v362_v46 = vadd.f32 %v1510_v13, %v326_v17  ;;  %v334_v1 = vmul.f32 %v1117_v58, %v1485_v53 }
  0x3a   : > { %1292 = vmatprep.mubr.bf16.mxu0 %v415_v38  ;;  %v391_v52 = vmax.f32 %v359_v40, 0.0  ;;  %v392_v54 = vmax.f32 %v360_v41, 0.0  ;;  %v363_v5 = vadd.f32 %v1510_v13, %v327_v18  ;;  %v335_v6 = vmul.f32 %v1120_v59, %v1485_v53 }
  0x3b   : > { %1293 = vmatmul.mubr.bf16.vlgmr.msra.gmra.mxu0 %v416_v39  ;;  %v1136_v7 = vunpack.c.l.bf16 %v1235_v42  ;;  %v1137_v8 = vunpack.c.h.bf16 %v1235_v42  ;;  %v418_v9 = vpack.c.bf16 %v390_v37, %v389_v36  ;;  %v330_v10 = vmul.f32 %v1109_v49, %v1485_v53 }
  0x3c   : > { %1296 = vmatprep.mubr.bf16.mxu0 %v417_v43  ;;  %v367_v57 = vadd.f32 %v1510_v13, %v331_v20  ;;  %v393_v58 = vmax.f32 %v361_v44, 0.0  ;;  %v394_v11 = vmax.f32 %v362_v46, 0.0  ;;  %v364_v12 = vadd.f32 %v1510_v13, %v328_v19 }
  0x3d   : > { %v368_v59 = vadd.f32 %v1510_v13, %v332_v47  ;;  %v419_v14 = vpack.c.bf16 %v392_v54, %v391_v52  ;;  %v369_v16 = vadd.f32 %v1510_v13, %v333_v61  ;;  %v370_v17 = vadd.f32 %v1510_v13, %v334_v1 }
  0x3e   : > { %v399_v15 = vmax.f32 %v367_v57, 0.0  ;;  %v395_v18 = vmax.f32 %v363_v5, 0.0  ;;  %v371_v49 = vadd.f32 %v1510_v13, %v335_v6  ;;  %v337_v19 = vmul.f32 %v1124_v62, %v1485_v53 }
  0x3f   : > { %v400_v48 = vmax.f32 %v368_v59, 0.0  ;;  %v401_v20 = vmax.f32 %v369_v16, 0.0  ;;  %v402_v21 = vmax.f32 %v370_v17, 0.0  ;;  %v338_v22 = vmul.f32 %v1125_v63, %v1485_v53 }
  0x40   : > { %v372_v24 = vadd.f32 %v1510_v13, %v336_v34  ;;  %v403_v25 = vmax.f32 %v371_v49, 0.0  ;;  %v373_v26 = vadd.f32 %v1510_v13, %v337_v19  ;;  %v340_v62 = vmul.f32 %v1129_v2, %v1485_v53 }
  0x41   : > { %v423_v23 = vpack.c.bf16 %v400_v48, %v399_v15  ;;  %v424_v60 = vpack.c.bf16 %v402_v21, %v401_v20  ;;  %v374_v27 = vadd.f32 %v1510_v13, %v338_v22  ;;  %v396_v50 = vmax.f32 %v364_v12, 0.0 }
  0x42   : > { %v404_v63 = vmax.f32 %v372_v24, 0.0  ;;  %v375_v28 = vadd.f32 %v1510_v13, %v339_v45  ;;  %v341_v29 = vmul.f32 %v1132_v3, %v1485_v53  ;;  %v405_v30 = vmax.f32 %v373_v26, 0.0 }
  0x43   : > { %1297 = vmatmul.mubr.bf16.gmra.mxu0 %v418_v9  ;;  %1308 = vmatprep.mubr.bf16.mxu1 %v423_v23  ;;  %v406_v31 = vmax.f32 %v374_v27, 0.0  ;;  %v376_v32 = vadd.f32 %v1510_v13, %v340_v62  ;;  %v343_v35 = vmul.f32 %v1136_v7, %v1485_v53  ;;  %v344_v37 = vmul.f32 %v1137_v8, %v1485_v53 }
  0x44   : > { %1300 = vmatprep.mubr.bf16.mxu0 %v419_v14  ;;  %1309 = vmatmul.mubr.bf16.vlgmr.msra.gmra.mxu1 %v424_v60  ;;  %v425_v2 = vpack.c.bf16 %v404_v63, %v403_v25  ;;  %v407_v33 = vmax.f32 %v375_v28, 0.0  ;;  %v1140_v38 = vunpack.c.l.bf16 %v1236_v0  ;;  %v420_v3 = vpack.c.bf16 %v394_v11, %v393_v58 }
  0x45   : > { %v408_v36 = vmax.f32 %v376_v32, 0.0  ;;  %v365_v39 = vadd.f32 %v1510_v13, %v329_v55  ;;  %v366_v40 = vadd.f32 %v1510_v13, %v330_v10  ;;  %v1141_v41 = vunpack.c.h.bf16 %v1236_v0 }
  0x46   : > { %1312 = vmatprep.mubr.bf16.mxu1 %v425_v2  ;;  %v421_v42 = vpack.c.bf16 %v396_v50, %v395_v18  ;;  %v426_v43 = vpack.c.bf16 %v406_v31, %v405_v30  ;;  %v377_v56 = vadd.f32 %v1510_v13, %v341_v29  ;;  %v378_v4 = vadd.f32 %v1510_v13, %v342_v51 }
  0x47   : > { %v427_v44 = vpack.c.bf16 %v408_v36, %v407_v33  ;;  %v379_v46 = vadd.f32 %v1510_v13, %v343_v35  ;;  %v380_v47 = vadd.f32 %v1510_v13, %v344_v37  ;;  %v397_v52 = vmax.f32 %v365_v39, 0.0 }
  0x48   : > { %v398_v54 = vmax.f32 %v366_v40, 0.0  ;;  %v409_v61 = vmax.f32 %v377_v56, 0.0  ;;  %v410_v1 = vmax.f32 %v378_v4, 0.0  ;;  %v345_v5 = vmul.f32 %v1140_v38, %v1485_v53 }
  0x49   : > { %v346_v6 = vmul.f32 %v1141_v41, %v1485_v53  ;;  %v411_v7 = vmax.f32 %v379_v46, 0.0  ;;  %v412_v8 = vmax.f32 %v380_v47, 0.0 }
  0x4a   : > { %v422_v9 = vpack.c.bf16 %v398_v54, %v397_v52  ;;  %v428_v55 = vpack.c.bf16 %v410_v1, %v409_v61  ;;  %v381_v10 = vadd.f32 %v1510_v13, %v345_v5 }
  0x4b   : > { %1301 = vmatmul.mubr.bf16.gmra.mxu0 %v420_v3  ;;  %v382_v57 = vadd.f32 %v1510_v13, %v346_v6  ;;  %v429_v58 = vpack.c.bf16 %v412_v8, %v411_v7 }
  0x4c   : > { %1304 = vmatprep.mubr.bf16.mxu0 %v421_v42  ;;  %1313 = vmatmul.mubr.bf16.gmra.mxu1 %v426_v43  ;;  %v413_v11 = vmax.f32 %v381_v10, 0.0 }
  0x4d   : > { %1316 = vmatprep.mubr.bf16.mxu1 %v427_v44  ;;  %v414_v12 = vmax.f32 %v382_v57, 0.0 }
  0x4f   : > { %v430_v59 = vpack.c.bf16 %v414_v12, %v413_v11 }
  0x53   : > { %1305 = vmatmul.mubr.bf16.gmra.mxu0 %v422_v9 }
  0x54   : > { %1317 = vmatmul.mubr.bf16.gmra.mxu1 %v428_v55 }
  0x55   : > { %1320 = vmatprep.mubr.bf16.mxu1 %v429_v58 }
  0x5c   : > { %1321 = vmatmul.mubr.bf16.gmra.mxu1 %v430_v59 }
  0xfb   : > { %v1294_v14 = vpop.f32.mrf.mxu0 }
  0xfc   : > { %v856_v20 = vmul.f32 %v1294_v14, %v1294_v14 }
  0xfd   : > { %v529_v53 = vpop.f32.mrf.mxu0 }
  0xfe   : > { %v854_v17 = vmul.f32 %v529_v53, %v529_v53 }
  0xff   : > { %v1295_v15 = vpop.f32.mrf.mxu0 }
 0x100   : > { %v1150_v13 = vpack.c.bf16 %v1295_v15, %v1294_v14  ;;  %v857_v24 = vmul.f32 %v1295_v15, %v1295_v15 }
 0x101   : > { %v532_v16 = vpop.f32.mrf.mxu0 }
 0x102   : > { %1237 = vst [vmem:[%s1593_s24 + $0x8] sm:$0xff] %v1150_v13   ;;  %v1145_v18 = vpack.c.bf16 %v532_v16, %v529_v53  ;;  %v817_v48 = vadd.f32 %v532_v16, %v529_v53  ;;  %v855_v34 = vmul.f32 %v532_v16, %v532_v16 }
 0x103   : > { %v1298_v49 = vpop.f32.mrf.mxu0 }
 0x104   : > { %1146 = vst [vmem:[%s1593_s24] sm:$0xff] %v1145_v18   ;;  %v818_v21 = vadd.f32 %v1294_v14, %v817_v48  ;;  %v886_v19 = vadd.f32 %v855_v34, %v854_v17  ;;  %v1597_v22 = vpop.f32.mrf.mxu1  ;;  %v860_v36 = vmul.f32 %v1298_v49, %v1298_v49 }
 0x105   : > { %v545_v23 = vpop.f32.mrf.mxu0 }
 0x106   : > { %v887_v25 = vadd.f32 %v886_v19, %v856_v20  ;;  %v819_v45 = vadd.f32 %v1295_v15, %v818_v21  ;;  %v1599_v60 = vpop.f32.mrf.mxu1  ;;  %v858_v62 = vmul.f32 %v545_v23, %v545_v23 }
 0x107   : > { %v1299_v26 = vpop.f32.mrf.mxu0 }
 0x108   : > { %v820_v27 = vadd.f32 %v819_v45, %v545_v23  ;;  %v888_v50 = vadd.f32 %v887_v25, %v857_v24  ;;  %v1160_v63 = vpack.c.bf16 %v1299_v26, %v1298_v49  ;;  %v1601_v28 = vpop.f32.mrf.mxu1  ;;  %v861_v40 = vmul.f32 %v1299_v26, %v1299_v26 }
 0x109   : > { %v548_v29 = vpop.f32.mrf.mxu0  ;;  %v1190_v0 = vpack.c.bf16 %v1601_v28, %v1597_v22 }
 0x10a   : > { %v889_v30 = vadd.f32 %v888_v50, %v858_v62  ;;  %1239 = vst [vmem:[%s1593_s24 + $0x18] sm:$0xff] %v1160_v63   ;;  %v1155_v31 = vpack.c.bf16 %v548_v29, %v545_v23  ;;  %v821_v32 = vadd.f32 %v820_v27, %v548_v29  ;;  %v859_v51 = vmul.f32 %v548_v29, %v548_v29  ;;  %v1606_v2 = vpop.f32.mrf.mxu1 }
 0x10b   : > { %v1302_v33 = vpop.f32.mrf.mxu0  ;;  %1245 = vst [vmem:[%s1593_s24 + $0x48] sm:$0xff] %v1190_v0   ;;  %v1185_v35 = vpack.c.bf16 %v1606_v2, %v1599_v60 }
 0x10c   : > { %1238 = vst [vmem:[%s1593_s24 + $0x10] sm:$0xff] %v1155_v31   ;;  %v822_v37 = vadd.f32 %v1298_v49, %v821_v32  ;;  %v890_v38 = vadd.f32 %v889_v30, %v859_v51  ;;  %v1612_v3 = vpop.f32.mrf.mxu1  ;;  %v864_v10 = vmul.f32 %v1302_v33, %v1302_v33  ;;  %v870_v31 = vmul.f32 %v1599_v60, %v1599_v60 }
 0x10d   : > { %v561_v39 = vpop.f32.mrf.mxu0  ;;  %1244 = vst [vmem:[%s1593_s24 + $0x40] sm:$0xff] %v1185_v35  }
 0x10e   : > { %v891_v41 = vadd.f32 %v890_v38, %v860_v36  ;;  %v823_v42 = vadd.f32 %v1299_v26, %v822_v37  ;;  %v1615_v43 = vpop.f32.mrf.mxu1  ;;  %v862_v44 = vmul.f32 %v561_v39, %v561_v39  ;;  %v871_v37 = vmul.f32 %v1606_v2, %v1606_v2 }
 0x10f   : > { %v1303_v56 = vpop.f32.mrf.mxu0 }
 0x110   : > { %v824_v4 = vadd.f32 %v823_v42, %v561_v39  ;;  %v892_v46 = vadd.f32 %v891_v41, %v861_v40  ;;  %v1170_v47 = vpack.c.bf16 %v1303_v56, %v1302_v33  ;;  %v1617_v52 = vpop.f32.mrf.mxu1  ;;  %v865_v59 = vmul.f32 %v1303_v56, %v1303_v56 }
 0x111   : > { %v564_v54 = vpop.f32.mrf.mxu0  ;;  %v1200_v61 = vpack.c.bf16 %v1617_v52, %v1612_v3  ;;  %v872_v41 = vmul.f32 %v1597_v22, %v1597_v22 }
 0x112   : > { %v893_v1 = vadd.f32 %v892_v46, %v862_v44  ;;  %1241 = vst [vmem:[%s1593_s24 + $0x28] sm:$0xff] %v1170_v47   ;;  %v1165_v5 = vpack.c.bf16 %v564_v54, %v561_v39  ;;  %v825_v6 = vadd.f32 %v824_v4, %v564_v54  ;;  %v863_v7 = vmul.f32 %v564_v54, %v564_v54  ;;  %v1622_v8 = vpop.f32.mrf.mxu1 }
 0x113   : > { %v1306_v9 = vpop.f32.mrf.mxu0  ;;  %1247 = vst [vmem:[%s1593_s24 + $0x58] sm:$0xff] %v1200_v61   ;;  %v1195_v55 = vpack.c.bf16 %v1622_v8, %v1615_v43 }
 0x114   : > { %1240 = vst [vmem:[%s1593_s24 + $0x20] sm:$0xff] %v1165_v5   ;;  %v826_v57 = vadd.f32 %v1302_v33, %v825_v6  ;;  %v894_v58 = vadd.f32 %v893_v1, %v863_v7  ;;  %v1628_v11 = vpop.f32.mrf.mxu1  ;;  %v868_v26 = vmul.f32 %v1306_v9, %v1306_v9  ;;  %v876_v1 = vmul.f32 %v1612_v3, %v1612_v3 }
 0x115   : > { %v577_v12 = vpop.f32.mrf.mxu0  ;;  %1246 = vst [vmem:[%s1593_s24 + $0x50] sm:$0xff] %v1195_v55  }
 0x116   : > { %v895_v14 = vadd.f32 %v894_v58, %v864_v10  ;;  %v827_v53 = vadd.f32 %v1303_v56, %v826_v57  ;;  %v625_v15 = vpop.f32.mrf.mxu1  ;;  %v866_v17 = vmul.f32 %v577_v12, %v577_v12 }
 0x117   : > { %v1307_v13 = vpop.f32.mrf.mxu0  ;;  %v878_v55 = vmul.f32 %v625_v15, %v625_v15 }
 0x118   : > { %v828_v16 = vadd.f32 %v827_v53, %v577_v12  ;;  %v896_v18 = vadd.f32 %v895_v14, %v865_v59  ;;  %v1180_v48 = vpack.c.bf16 %v1307_v13, %v1306_v9  ;;  %v1319_v34 = vpop.f32.mrf.mxu1  ;;  %v869_v63 = vmul.f32 %v1307_v13, %v1307_v13 }
 0x119   : > { %v580_v49 = vpop.f32.mrf.mxu0  ;;  %v1210_v20 = vpack.c.bf16 %v1319_v34, %v1628_v11 }
 0x11a   : > { %v897_v21 = vadd.f32 %v896_v18, %v866_v17  ;;  %1243 = vst [vmem:[%s1593_s24 + $0x38] sm:$0xff] %v1180_v48   ;;  %v1175_v19 = vpack.c.bf16 %v580_v49, %v577_v12  ;;  %v829_v23 = vadd.f32 %v828_v16, %v580_v49  ;;  %v867_v24 = vmul.f32 %v580_v49, %v580_v49  ;;  %v628_v25 = vpop.f32.mrf.mxu1 }
 0x11b   : > { %1249 = vst [vmem:[%s1593_s24 + $0x68] sm:$0xff] %v1210_v20   ;;  %v1205_v45 = vpack.c.bf16 %v628_v25, %v625_v15  ;;  %v879_v12 = vmul.f32 %v628_v25, %v628_v25 }
 0x11c   : > { %1242 = vst [vmem:[%s1593_s24 + $0x30] sm:$0xff] %v1175_v19   ;;  %v830_v27 = vadd.f32 %v1306_v9, %v829_v23  ;;  %v898_v62 = vadd.f32 %v897_v21, %v867_v24  ;;  %v1322_v50 = vpop.f32.mrf.mxu1 }
 0x11d   : > { %1248 = vst [vmem:[%s1593_s24 + $0x60] sm:$0xff] %v1205_v45  }
 0x11e   : > { %v831_v29 = vadd.f32 %v1307_v13, %v830_v27  ;;  %v899_v0 = vadd.f32 %v898_v62, %v868_v26  ;;  %v641_v30 = vpop.f32.mrf.mxu1 }
 0x11f   : > { %v882_v17 = vmul.f32 %v641_v30, %v641_v30 }
 0x120   : > { %v900_v32 = vadd.f32 %v899_v0, %v869_v63  ;;  %v832_v51 = vadd.f32 %v831_v29, %v1599_v60  ;;  %v1323_v33 = vpop.f32.mrf.mxu1  ;;  %v873_v60 = vmul.f32 %v1601_v28, %v1601_v28 }
 0x121   : > { %v1220_v35 = vpack.c.bf16 %v1323_v33, %v1322_v50  ;;  %v885_v19 = vmul.f32 %v1323_v33, %v1323_v33 }
 0x122   : > { %v833_v36 = vadd.f32 %v832_v51, %v1606_v2  ;;  %v901_v38 = vadd.f32 %v900_v32, %v870_v31  ;;  %v644_v39 = vpop.f32.mrf.mxu1  ;;  %v874_v2 = vmul.f32 %v1615_v43, %v1615_v43 }
 0x123   : > { %1251 = vst [vmem:[%s1593_s24 + $0x78] sm:$0xff] %v1220_v35   ;;  %v1215_v40 = vpack.c.bf16 %v644_v39, %v641_v30  ;;  %v883_v49 = vmul.f32 %v644_v39, %v644_v39 }
 0x124   : > { %v834_v42 = vadd.f32 %v1597_v22, %v833_v36  ;;  %v902_v56 = vadd.f32 %v901_v38, %v871_v37  ;;  %v875_v22 = vmul.f32 %v1622_v8, %v1622_v8 }
 0x125   : > { %1250 = vst [vmem:[%s1593_s24 + $0x70] sm:$0xff] %v1215_v40  }
 0x126   : > { %v903_v4 = vadd.f32 %v902_v56, %v872_v41  ;;  %v835_v44 = vadd.f32 %v1601_v28, %v834_v42  ;;  %v877_v28 = vmul.f32 %v1617_v52, %v1617_v52 }
 0x128   : > { %v836_v46 = vadd.f32 %v835_v44, %v1615_v43  ;;  %v904_v47 = vadd.f32 %v903_v4, %v873_v60 }
 0x12a   : > { %v905_v54 = vadd.f32 %v904_v47, %v874_v2  ;;  %v837_v61 = vadd.f32 %v836_v46, %v1622_v8  ;;  %v880_v8 = vmul.f32 %v1628_v11, %v1628_v11 }
 0x12c   : > { %v838_v5 = vadd.f32 %v1612_v3, %v837_v61  ;;  %v906_v6 = vadd.f32 %v905_v54, %v875_v22  ;;  %v881_v3 = vmul.f32 %v1319_v34, %v1319_v34 }
 0x12e   : > { %v907_v7 = vadd.f32 %v906_v6, %v876_v1  ;;  %v839_v9 = vadd.f32 %v1617_v52, %v838_v5 }
 0x130   : > { %v840_v43 = vadd.f32 %v839_v9, %v625_v15  ;;  %v908_v10 = vadd.f32 %v907_v7, %v877_v28  ;;  %v884_v15 = vmul.f32 %v1322_v50, %v1322_v50 }
 0x132   : > { %v909_v57 = vadd.f32 %v908_v10, %v878_v55  ;;  %v841_v58 = vadd.f32 %v840_v43, %v628_v25 }
 0x134   : > { %v842_v59 = vadd.f32 %v1628_v11, %v841_v58  ;;  %v910_v14 = vadd.f32 %v909_v57, %v879_v12 }
 0x136   : > { %v911_v53 = vadd.f32 %v910_v14, %v880_v8  ;;  %v843_v13 = vadd.f32 %v1319_v34, %v842_v59 }
 0x138   : > { %v844_v16 = vadd.f32 %v843_v13, %v641_v30  ;;  %v912_v18 = vadd.f32 %v911_v53, %v881_v3 }
 0x13a   : > { %v913_v48 = vadd.f32 %v912_v18, %v882_v17  ;;  %v845_v52 = vadd.f32 %v844_v16, %v644_v39 }
 0x13c   : > { %v846_v20 = vadd.f32 %v1322_v50, %v845_v52  ;;  %v914_v21 = vadd.f32 %v913_v48, %v883_v49 }
 0x13e   : > { %v847_v23 = vadd.f32 %v1323_v33, %v846_v20  ;;  %v915_v24 = vadd.f32 %v914_v21, %v884_v15 }
 0x140   : > { %v848_v25 = vrot.slane %v847_v23, 4  ;;  %v916_v45 = vadd.f32 %v915_v24, %v885_v19 }
 0x142   : > { %v849_v26 = vadd.f32 %v848_v25, %v847_v23  ;;  %v917_v11 = vrot.slane %v916_v45, 4 }
 0x144   : > { %v850_v27 = vrot.slane %v849_v26, 2  ;;  %v918_v62 = vadd.f32 %v917_v11, %v916_v45 }
 0x146   : > { %v851_v63 = vadd.f32 %v850_v27, %v849_v26  ;;  %v919_v34 = vrot.slane %v918_v62, 2 }
 0x148   : > { %v852_v29 = vrot.slane %v851_v63, 1  ;;  %v920_v0 = vadd.f32 %v919_v34, %v918_v62 }
 0x14a   : > { %v921_v30 = vrot.slane %v920_v0, 1  ;;  %v853_v31 = vadd.f32 %v852_v29, %v851_v63  ;;  %927 = sbr.rel (%p1043_p4) target bundleno = 337 (0x151), region = 40 }
 0x14c   : > { %v922_v32 = vadd.f32 %v921_v30, %v920_v0 }
 0x14e   : > { %v924_v51 = vsel %vm923_vm0, %v853_v31, %v922_v32 }
 0x14f   : > { %v1367_v50 = vmov 0.0  }
 0x150   : > { %928 = vst [vmem:[%s1684_s5] sm:$0x3] %v1367_v50 }
 0x151 PF:  {}
 0x157   : > { %v929_v33 = vld [vmem:[%s1684_s5] sm:$0x3] }
 0x158   : > { %v930_v35 = vadd.f32 %v929_v33, %v924_v51 }
 0x15a   : > { %931 = vst [vmem:[%s1684_s5] sm:$0x3] %v930_v35 }
 0x15b PF: > { %s16_s18 = sadd.s32 1, %s1365_s18  }
 0x15c   : > { %p13_p5 = scmp.ge.s32.totalorder %s16_s18, 4  }
 0x15e   :  { %15 = sbr.rel (!%p13_p5) target bundleno = 1 (0x1), region = 78 }

// kernel: resblock_forward.5
= control target key start
LH: loop header
LB: loop body
LE: loop exit
PB: predicated region body
PF: predicated region fallthrough
CT: control target
= control target key end

     0   :  { %s4932_s18 = smov 0   ;;  %s6664_s0 = inlined_call_operand.vmem [shape: bf16[2,16,16,128], index: 0, kind: input, shape index: {}]   ;;  %s6665_s1 = inlined_call_operand.vmem [shape: f32[2,128], index: 1, kind: input, shape index: {}]   ;;  %s6666_s2 = inlined_call_operand.vmem [shape: f32[2,128], index: 2, kind: input, shape index: {}]   ;;  %s6667_s3 = inlined_call_operand.vmem [shape: bf16[9,128,128], index: 3, kind: input, shape index: {}]   ;;  %s6668_s4 = inlined_call_operand.vmem [shape: bf16[2,256,128], index: 4, kind: output, shape index: {0}]   ;;  %s6669_s5 = inlined_call_operand.vmem [shape: f32[2,128], index: 5, kind: output, shape index: {1}]  }
   0x1 LB: > { %s4938_s19 = sadd.s32 4294967295, %s4897_s18   ;;  %p3502_p0 = scmp.ge.s32.totalorder %s4897_s18, 1  ;;  %s4897_s18 = sphi %s4932_s18, %s16_s18  }
   0x2   : > { %p185_p1 = scmp.lt.s32.totalorder %s4897_s18, 3 }
   0x4   : > { %p186_p2 = pnand %p3502_p0, %p185_p1 }
   0x6   : > { %189 = sbr.rel (%p186_p2) target bundleno = 613 (0x265), region = 36 }
   0xb   : > { %v4817_v0 = vld [vmem:[%s6667_s3 + $0x78] sm:$0xff]   ;;  %vm445_vm0 = vcmask 1040384   ;;  %v4818_v1 = vld [vmem:[%s6667_s3 + $0x70] sm:$0xff]   ;;  %v4899_v2 = vmov 0.0   ;;  %v4819_v4 = vld [vmem:[%s6667_s3 + $0x68] sm:$0xff]   ;;  %vm644_vm1 = vcmask 1046528   ;;  %v308_v30 = vlaneseq }
   0xc   : > { %4358 = vmatprep.subr.bf16.mxu0 %v4817_v0  ;;  %4790 = vmatprep.subr.bf16.mxu1 %v4817_v0  ;;  %v4948_v3 = vrot.slane %v4899_v2, 7  ;;  %v4820_v9 = vld [vmem:[%s6667_s3 + $0x60] sm:$0xff]   ;;  %v4821_v17 = vld [vmem:[%s6667_s3 + $0x58] sm:$0xff]   ;;  %p213_p3 = scmp.lt.s32.totalorder %s4938_s19, 1  ;;  %v4822_v20 = vld [vmem:[%s6667_s3 + $0x50] sm:$0xff]   ;;  %vm1208_vm2 = vcmask 1045504  }
   0xd   : > { %4359 = vmatpush3.bf16.msra.mxu0 %v4817_v0  ;;  %4798 = vmatpush3.bf16.msra.mxu1 %v4817_v0  ;;  %v224_v11 = vld [vmem:[%s6665_s1] sm:$0x3]  ;;  %v4823_v28 = vld [vmem:[%s6667_s3 + $0x48] sm:$0xff]   ;;  %v5006_v32 = vld [vmem:[%s6667_s3 + $0x38] sm:$0xff]   ;;  %v5016_v35 = vshrl.u32 %v308_v30, 7  ;;  %vm4900_vm4 = vmmov 1  }
   0xe   : > { %4360 = vmatprep.subr.bf16.mxu0 %v4818_v1  ;;  %4791 = vmatprep.subr.bf16.mxu1 %v4818_v1  ;;  %v546_v5 = vsel %vm445_vm0, 0.0, %v4948_v3  ;;  %v563_v6 = vsel %vm445_vm0, %v4948_v3, 0.0  ;;  %v646_v8 = vrot.slane %v4948_v3, 1  ;;  %v4965_v13 = vmul.f32 0.001953125, %v224_v11  ;;  %s4983_s9 = scalar_select %p213_p3, %s4938_s19, 1  ;;  %v4824_v31 = vld [vmem:[%s6667_s3 + $0x40] sm:$0xff]   ;;  %vm3539_vm3 = vmneg %vm445_vm0 }
   0xf   : > { %v645_v7 = vrot.slane %v546_v5, 1  ;;  %v648_v10 = vrot.slane %v563_v6, 1  ;;  %v1209_v19 = vrot.slane %v546_v5, 2  ;;  %v1212_v21 = vrot.slane %v563_v6, 2  ;;  %v5011_v33 = vld [vmem:[%s6667_s3 + $0xb8] sm:$0xff]   ;;  %vm5608_vm5 = vmpackc.low %vm4900_vm4, %vm3539_vm3  ;;  %p3931_p4 = scmp.ne.s32.totalorder %s4938_s19, 0 }
  0x10   : > { %v227_v16 = vmul.f32 %v4965_v13, %v4965_v13  ;;  %v1210_v23 = vrot.slane %v4948_v3, 2  ;;  %s3934_s12 = sshll.u32 %s4983_s9, 7  ;;  %v310_v42 = vsub.s32 0, %v5016_v35  ;;  %v225_v45 = vld [vmem:[%s6666_s2] sm:$0x3]  ;;  %v346_v48 = vsub.s32 1, %v5016_v35 }
  0x11   : > { %4361 = vmatpush3.bf16.msra.mxu0 %v4818_v1  ;;  %4799 = vmatpush3.bf16.msra.mxu1 %v4818_v1  ;;  %v647_v12 = vsel %vm644_vm1, %v645_v7, %v646_v8  ;;  %v649_v14 = vsel %vm644_vm1, %v646_v8, %v648_v10  ;;  %s5001_s17 = scalar_lea.vmem %s6664_s0, %s3934_s12  ;;  %s6555_s29 = scalar_lea.vmem %s6668_s4, %s3934_s12 }
  0x12   : > { %4362 = vmatprep.subr.bf16.mxu0 %v4819_v4  ;;  %4792 = vmatprep.subr.bf16.mxu1 %v4819_v4  ;;  %v4968_v15 = vpack.c.bf16 %v649_v14, %v647_v12  ;;  %v229_v18 = vrot.slane %v227_v16, 7  ;;  %v1211_v26 = vsel %vm1208_vm2, %v1209_v19, %v1210_v23  ;;  %v1213_v27 = vsel %vm1208_vm2, %v1210_v23, %v1212_v21  ;;  %v5014_v34 = vld [vmem:[%s5001_s17] sm:$0xff]   ;;  %v4118_v36 = vld [vmem:[%s5001_s17 + $0x38] sm:$0xff]   ;;  %v5021_v38 = vld [vmem:[%s5001_s17 + $0x8] sm:$0xff]  }
  0x13   : > { %v4990_v29 = vpack.c.bf16 %v1213_v27, %v1211_v26  ;;  %v4119_v37 = vld [vmem:[%s5001_s17 + $0x40] sm:$0xff]   ;;  %v5024_v39 = vld [vmem:[%s5001_s17 + $0x10] sm:$0xff]   ;;  %v5027_v40 = vld [vmem:[%s5001_s17 + $0x48] sm:$0xff]   ;;  %v3970_v46 = vunpack.c.l.bf16 %v5014_v34  ;;  %v3971_v47 = vunpack.c.h.bf16 %v5014_v34  ;;  %v3998_v50 = vunpack.c.l.bf16 %v4118_v36 }
  0x14   : > { %6718 = vst [vmem:[#allocation2_spill] sm:$0xff] %v4968_v15  ;;  %4374 = vmatprep.mubr.bf16.mxu0 %v4968_v15  ;;  %v231_v22 = vsub.f32 %v4965_v13, %v229_v18  ;;  %v5030_v41 = vld [vmem:[%s5001_s17 + $0x50] sm:$0xff]   ;;  %v5034_v43 = vld [vmem:[%s5001_s17 + $0x18] sm:$0xff]   ;;  %v5037_v44 = vld [vmem:[%s5001_s17 + $0x20] sm:$0xff]   ;;  %v3999_v51 = vunpack.c.h.bf16 %v4118_v36  ;;  %v4002_v52 = vunpack.c.l.bf16 %v4119_v37  ;;  %v4003_v53 = vunpack.c.h.bf16 %v4119_v37 }
  0x15   : > { %4363 = vmatpush3.bf16.msra.mxu0 %v4819_v4  ;;  %4800 = vmatpush3.bf16.msra.mxu1 %v4819_v4  ;;  %6719 = vst [vmem:[#allocation3_spill] sm:$0xff] %v4990_v29  ;;  %v4122_v49 = vld [vmem:[%s5001_s17 + $0x58] sm:$0xff]   ;;  %v5049_v54 = vld [vmem:[%s5001_s17 + $0x60] sm:$0xff]   ;;  %v3974_v56 = vunpack.c.l.bf16 %v5021_v38  ;;  %v3975_v57 = vunpack.c.h.bf16 %v5021_v38  ;;  %v3978_v58 = vunpack.c.l.bf16 %v5024_v39  ;;  %v3979_v59 = vunpack.c.h.bf16 %v5024_v39  ;;  %v5056_v60 = vld [vmem:[%s5001_s17 + $0x28] sm:$0xff]  }
  0x16   : > { %4364 = vmatprep.subr.bf16.mxu0 %v4820_v9  ;;  %4793 = vmatprep.subr.bf16.mxu1 %v4820_v9  ;;  %v232_v24 = vmax.f32 %v231_v22, 0.0  ;;  %v4006_v62 = vunpack.c.l.bf16 %v5027_v40  ;;  %v4007_v63 = vunpack.c.h.bf16 %v5027_v40  ;;  %v4010_v0 = vunpack.c.l.bf16 %v5030_v41  ;;  %v5062_v1 = vld [vmem:[%s5001_s17 + $0x30] sm:$0xff]   ;;  %v5069_v7 = vld [vmem:[%s5001_s17 + $0x68] sm:$0xff]  }
  0x17   : > { %v4011_v2 = vunpack.c.h.bf16 %v5030_v41  ;;  %v3982_v4 = vunpack.c.l.bf16 %v5034_v43  ;;  %v3983_v5 = vunpack.c.h.bf16 %v5034_v43  ;;  %v3986_v6 = vunpack.c.l.bf16 %v5037_v44  ;;  %v5073_v12 = vld [vmem:[%s5001_s17 + $0x70] sm:$0xff]  }
  0x18   : > { %v233_v25 = vadd.f32 1e-05, %v232_v24  ;;  %v4014_v10 = vunpack.c.l.bf16 %v4122_v49  ;;  %v4015_v11 = vunpack.c.h.bf16 %v4122_v49  ;;  %v4018_v14 = vunpack.c.l.bf16 %v5049_v54 }
  0x19   : > { %4365 = vmatpush3.bf16.msra.mxu0 %v4820_v9  ;;  %4801 = vmatpush3.bf16.msra.mxu1 %v4820_v9  ;;  %v3987_v9 = vunpack.c.h.bf16 %v5037_v44 }
  0x1a   : > { %4366 = vmatprep.subr.bf16.mxu0 %v4821_v17  ;;  %4794 = vmatprep.subr.bf16.mxu1 %v4821_v17  ;;  %4889 = vrsqrt.f32 %v233_v25 }
  0x1d   : > { %4367 = vmatpush3.bf16.msra.mxu0 %v4821_v17  ;;  %4802 = vmatpush3.bf16.msra.mxu1 %v4821_v17 }
  0x1e   : > { %4368 = vmatprep.subr.bf16.mxu0 %v4822_v20  ;;  %4795 = vmatprep.subr.bf16.mxu1 %v4822_v20 }
  0x21   : > { %4369 = vmatpush3.bf16.msra.mxu0 %v4822_v20  ;;  %4803 = vmatpush3.bf16.msra.mxu1 %v4822_v20 }
  0x22   : > { %4370 = vmatprep.subr.bf16.mxu0 %v4823_v28  ;;  %4796 = vmatprep.subr.bf16.mxu1 %v4823_v28 }
  0x25   : > { %4371 = vmatpush3.bf16.msra.mxu0 %v4823_v28  ;;  %4804 = vmatpush3.bf16.msra.mxu1 %v4823_v28 }
  0x26   : > { %4372 = vmatprep.subr.bf16.mxu0 %v4824_v31  ;;  %4797 = vmatprep.subr.bf16.mxu1 %v4824_v31 }
  0x27   : > { %v4890_v55 = vpop.eup %4889 }
  0x28   : > { %v236_v61 = vrot.slane %v4890_v55, 1 }
  0x29   : > { %4373 = vmatpush3.bf16.msra.mxu0 %v4824_v31  ;;  %4805 = vmatpush3.bf16.msra.mxu1 %v4824_v31 }
  0x2a   : > { %4406 = vmatprep.subr.bf16.mxu1 %v5006_v32  ;;  %4454 = vmatprep.subr.bf16.mxu0 %v5011_v33  ;;  %v238_v8 = vmul.f32 %v236_v61, %v225_v45 }
  0x2c   : > { %v239_v19 = vmul.f32 %v238_v8, %v4965_v13  ;;  %v5080_v20 = vrot.slane %v238_v8, %v310_v42 }
  0x2e   : > { %6720 = vst [vmem:[#allocation4_spill] sm:$0xff] %v5080_v20  ;;  %v241_v27 = vrot.slane %v239_v19, 7  ;;  %v312_v28 = vmul.f32 %v3970_v46, %v5080_v20  ;;  %v313_v30 = vmul.f32 %v3971_v47, %v5080_v20  ;;  %v326_v13 = vmul.f32 %v3998_v50, %v5080_v20 }
  0x2f   : > { %v327_v31 = vmul.f32 %v3999_v51, %v5080_v20  ;;  %v328_v34 = vmul.f32 %v4002_v52, %v5080_v20  ;;  %v329_v35 = vmul.f32 %v4003_v53, %v5080_v20  ;;  %v314_v36 = vmul.f32 %v3974_v56, %v5080_v20 }
  0x30   : > { %v243_v37 = vsub.f32 %v225_v45, %v241_v27  ;;  %v315_v38 = vmul.f32 %v3975_v57, %v5080_v20  ;;  %v5097_v39 = vmul.f32 %v3978_v58, %v5080_v20  ;;  %v5100_v40 = vmul.f32 %v3979_v59, %v5080_v20 }
  0x31   : > { %v5103_v41 = vmul.f32 %v4006_v62, %v5080_v20  ;;  %v5106_v42 = vmul.f32 %v4007_v63, %v5080_v20  ;;  %v5109_v43 = vmul.f32 %v4010_v0, %v5080_v20  ;;  %v5112_v44 = vmul.f32 %v4011_v2, %v5080_v20 }
  0x32   : > { %v5114_v45 = vrot.slane %v243_v37, %v346_v48  ;;  %v5117_v46 = vmul.f32 %v3982_v4, %v5080_v20  ;;  %v5120_v47 = vmul.f32 %v3983_v5, %v5080_v20  ;;  %v5123_v49 = vmul.f32 %v3986_v6, %v5080_v20 }
  0x33   : > { %v5126_v50 = vmul.f32 %v3987_v9, %v5080_v20  ;;  %v5129_v51 = vmul.f32 %v4014_v10, %v5080_v20  ;;  %v5132_v52 = vmul.f32 %v4015_v11, %v5080_v20  ;;  %v5135_v48 = vmul.f32 %v4018_v14, %v5080_v20 }
  0x34   : > { %6721 = vst [vmem:[#allocation5_spill] sm:$0xff] %v5114_v45  ;;  %v348_v53 = vadd.f32 %v5114_v45, %v312_v28  ;;  %v349_v55 = vadd.f32 %v5114_v45, %v313_v30  ;;  %v362_v56 = vadd.f32 %v5114_v45, %v326_v13  ;;  %v363_v57 = vadd.f32 %v5114_v45, %v327_v31 }
  0x35   : > { %v364_v58 = vadd.f32 %v5114_v45, %v328_v34  ;;  %v365_v59 = vadd.f32 %v5114_v45, %v329_v35  ;;  %v350_v61 = vadd.f32 %v5114_v45, %v314_v36  ;;  %v351_v62 = vadd.f32 %v5114_v45, %v315_v38 }
  0x36   : > { %v380_v63 = vmax.f32 %v348_v53, 0.0  ;;  %v381_v0 = vmax.f32 %v349_v55, 0.0  ;;  %v394_v2 = vmax.f32 %v362_v56, 0.0  ;;  %v395_v4 = vmax.f32 %v363_v57, 0.0 }
  0x37   : > { %v396_v5 = vmax.f32 %v364_v58, 0.0  ;;  %v397_v6 = vmax.f32 %v365_v59, 0.0  ;;  %v382_v8 = vmax.f32 %v350_v61, 0.0  ;;  %v383_v9 = vmax.f32 %v351_v62, 0.0 }
  0x38   : > { %v448_v10 = vrot.slane %v380_v63, 7  ;;  %v449_v11 = vrot.slane %v381_v0, 7  ;;  %v5145_v14 = vrot.slane %v394_v2, 7  ;;  %v470_v19 = vrot.slane %v395_v4, 7 }
  0x39   : > { %v5147_v27 = vrot.slane %v396_v5, 7  ;;  %v473_v28 = vrot.slane %v397_v6, 7  ;;  %v5149_v30 = vrot.slane %v382_v8, 7  ;;  %v452_v13 = vrot.slane %v383_v9, 7  ;;  %v4828_v8 = vld [vmem:[%s6667_s3 + $0xb0] sm:$0xff]  }
  0x3a   : > { %v5152_v31 = vsel %vm445_vm0, %v448_v10, %v449_v11  ;;  %v5155_v34 = vsel %vm445_vm0, 0.0, %v448_v10  ;;  %v5158_v35 = vsel %vm445_vm0, %v449_v11, 0.0  ;;  %v5162_v36 = vsel %vm445_vm0, %v5145_v14, %v470_v19 }
  0x3b   : > { %v650_v37 = vrot.slane %v5155_v34, 1  ;;  %v651_v38 = vrot.slane %v5152_v31, 1  ;;  %v653_v53 = vrot.slane %v5158_v35, 1  ;;  %v5168_v55 = vpack.c.bf16 %v5152_v31, %v448_v10 }
  0x3c   : > { %v5175_v59 = vsel %vm445_vm0, 0.0, %v5145_v14  ;;  %v5180_v63 = vsel %vm445_vm0, %v470_v19, 0.0  ;;  %v686_v4 = vrot.slane %v5162_v36, 1  ;;  %v5189_v6 = vsel %vm445_vm0, %v5147_v27, %v473_v28 }
  0x3d   : > { %v652_v61 = vsel %vm644_vm1, %v650_v37, %v651_v38  ;;  %v654_v62 = vsel %vm644_vm1, %v651_v38, %v653_v53  ;;  %v685_v0 = vrot.slane %v5175_v59, 1  ;;  %v688_v5 = vrot.slane %v5180_v63, 1 }
  0x3e   : > { %v5183_v2 = vpack.c.bf16 %v654_v62, %v652_v61  ;;  %v5196_v9 = vsel %vm445_vm0, 0.0, %v5147_v27  ;;  %v5199_v10 = vsel %vm445_vm0, %v473_v28, 0.0  ;;  %v691_v11 = vrot.slane %v5189_v6, 1  ;;  %v4827_v28 = vld [vmem:[%s6667_s3 + $0x30] sm:$0xff]  }
  0x3f   : > { %v5204_v19 = vsel %vm445_vm0, %v5149_v30, %v452_v13  ;;  %v687_v37 = vsel %vm644_vm1, %v685_v0, %v686_v4  ;;  %v689_v38 = vsel %vm644_vm1, %v686_v4, %v688_v5  ;;  %v690_v53 = vrot.slane %v5196_v9, 1  ;;  %v4830_v5 = vld [vmem:[%s6667_s3 + $0xa8] sm:$0xff]  }
  0x40   : > { %6722 = vst [vmem:[#allocation6_spill] sm:$0xff] %v5183_v2  ;;  %4375 = vmatmul.mubr.bf16.vlgmr.msra.gmra.mxu0 %v5183_v2  ;;  %v693_v61 = vrot.slane %v5199_v10, 1  ;;  %v5211_v62 = vpack.c.bf16 %v689_v38, %v687_v37  ;;  %v5219_v58 = vsel %vm445_vm0, 0.0, %v5149_v30  ;;  %v5222_v0 = vsel %vm445_vm0, %v452_v13, 0.0 }
  0x41   : > { %4455 = vmatpush3.bf16.msra.mxu0 %v5011_v33  ;;  %v656_v4 = vrot.slane %v5204_v19, 1  ;;  %v692_v37 = vsel %vm644_vm1, %v690_v53, %v691_v11  ;;  %v655_v38 = vrot.slane %v5219_v58, 1  ;;  %v658_v56 = vrot.slane %v5222_v0, 1 }
  0x42   : > { %6723 = vst [vmem:[#allocation7_spill] sm:$0xff] %v5211_v62  ;;  %v694_v33 = vsel %vm644_vm1, %v691_v11, %v693_v61  ;;  %4456 = vmatprep.subr.bf16.mxu0 %v4828_v8  ;;  %4390 = vmatprep.mubr.bf16.mxu1 %v5211_v62  ;;  %v352_v13 = vadd.f32 %v5114_v45, %v5097_v39  ;;  %v6735_v2 = vunpack.c.l.bf16 %v5056_v60 }
  0x43   : > { %v5233_v57 = vpack.c.bf16 %v694_v33, %v692_v37  ;;  %v353_v26 = vadd.f32 %v5114_v45, %v5100_v40  ;;  %v366_v53 = vadd.f32 %v5114_v45, %v5103_v41  ;;  %v657_v11 = vsel %vm644_vm1, %v655_v38, %v656_v4 }
  0x44   : > { %v659_v61 = vsel %vm644_vm1, %v656_v4, %v658_v56  ;;  %v367_v25 = vadd.f32 %v5114_v45, %v5106_v42  ;;  %v368_v37 = vadd.f32 %v5114_v45, %v5109_v43  ;;  %v384_v33 = vmax.f32 %v352_v13, 0.0  ;;  %v4832_v42 = vld [vmem:[%s6667_s3 + $0xa0] sm:$0xff]  }
  0x45   : > { %6724 = vst [vmem:[#allocation8_spill] sm:$0xff] %v5233_v57  ;;  %4391 = vmatmul.mubr.bf16.vlgmr.msra.gmra.mxu1 %v5233_v57  ;;  %4457 = vmatpush3.bf16.msra.mxu0 %v4828_v8  ;;  %v5248_v39 = vpack.c.bf16 %v659_v61, %v657_v11  ;;  %v385_v40 = vmax.f32 %v353_v26, 0.0  ;;  %v398_v24 = vmax.f32 %v366_v53, 0.0  ;;  %v369_v56 = vadd.f32 %v5114_v45, %v5112_v44 }
  0x46   : > { %4407 = vmatpush3.bf16.msra.mxu1 %v5006_v32  ;;  %v399_v41 = vmax.f32 %v367_v25, 0.0  ;;  %4458 = vmatprep.subr.bf16.mxu0 %v4830_v5  ;;  %v400_v4 = vmax.f32 %v368_v37, 0.0  ;;  %v354_v43 = vadd.f32 %v5114_v45, %v5117_v46  ;;  %v5259_v26 = vrot.slane %v384_v33, 7  ;;  %v4829_v25 = vld [vmem:[%s6667_s3 + $0x28] sm:$0xff]  }
  0x47   : > { %6725 = vst [vmem:[#allocation9_spill] sm:$0xff] %v5248_v39  ;;  %4408 = vmatprep.subr.bf16.mxu1 %v4827_v28  ;;  %4378 = vmatprep.mubr.bf16.mxu0 %v5248_v39  ;;  %v455_v8 = vrot.slane %v385_v40, 7  ;;  %v5261_v32 = vrot.slane %v398_v24, 7  ;;  %v355_v44 = vadd.f32 %v5114_v45, %v5120_v47  ;;  %v401_v13 = vmax.f32 %v369_v56, 0.0  ;;  %v4831_v47 = vld [vmem:[%s6667_s3 + $0x20] sm:$0xff]  }
  0x48   : > { %v476_v38 = vrot.slane %v399_v41, 7  ;;  %v5268_v53 = vrot.slane %v400_v4, 7  ;;  %v386_v46 = vmax.f32 %v354_v43, 0.0  ;;  %v5276_v24 = vsel %vm445_vm0, 0.0, %v5259_v26 }
  0x49   : > { %v5272_v11 = vsel %vm445_vm0, %v5259_v26, %v455_v8  ;;  %v5279_v61 = vsel %vm445_vm0, %v455_v8, 0.0  ;;  %v5283_v37 = vsel %vm445_vm0, 0.0, %v5261_v32  ;;  %4459 = vmatpush3.bf16.msra.mxu0 %v4830_v5  ;;  %v660_v33 = vrot.slane %v5276_v24, 1  ;;  %v4834_v5 = vld [vmem:[%s6667_s3 + $0x98] sm:$0xff]  }
  0x4a   : > { %4409 = vmatpush3.bf16.msra.mxu1 %v4827_v28  ;;  %v661_v40 = vrot.slane %v5272_v11, 1  ;;  %v663_v41 = vrot.slane %v5279_v61, 1  ;;  %v5293_v56 = vsel %vm445_vm0, %v5261_v32, %v476_v38  ;;  %4460 = vmatprep.subr.bf16.mxu0 %v4832_v42  ;;  %v5299_v4 = vsel %vm445_vm0, %v476_v38, 0.0 }
  0x4b   : > { %v695_v28 = vrot.slane %v5283_v37, 1  ;;  %v696_v43 = vrot.slane %v5293_v56, 1  ;;  %4410 = vmatprep.subr.bf16.mxu1 %v4829_v25  ;;  %v479_v8 = vrot.slane %v401_v13, 7  ;;  %v698_v21 = vrot.slane %v5299_v4, 1 }
  0x4c   : > { %v662_v23 = vsel %vm644_vm1, %v660_v33, %v661_v40  ;;  %v664_v22 = vsel %vm644_vm1, %v661_v40, %v663_v41  ;;  %v5308_v18 = vsel %vm445_vm0, 0.0, %v5268_v53  ;;  %v4833_v33 = vld [vmem:[%s6667_s3 + $0x18] sm:$0xff]   ;;  %v5333_v15 = vrot.slane %v386_v46, 7 }
  0x4d   : > { %v5310_v17 = vpack.c.bf16 %v664_v22, %v662_v23  ;;  %v697_v38 = vsel %vm644_vm1, %v695_v28, %v696_v43  ;;  %v5315_v16 = vsel %vm445_vm0, %v5268_v53, %v479_v8  ;;  %v5318_v13 = vsel %vm445_vm0, %v479_v8, 0.0  ;;  %4461 = vmatpush3.bf16.msra.mxu0 %v4832_v42  ;;  %v4836_v28 = vld [vmem:[%s6667_s3 + $0x90] sm:$0xff]  }
  0x4e   : > { %v699_v40 = vsel %vm644_vm1, %v696_v43, %v698_v21  ;;  %v700_v41 = vrot.slane %v5308_v18, 1  ;;  %v701_v22 = vrot.slane %v5315_v16, 1  ;;  %v703_v23 = vrot.slane %v5318_v13, 1  ;;  %4411 = vmatpush3.bf16.msra.mxu1 %v4829_v25  ;;  %4462 = vmatprep.subr.bf16.mxu0 %v4834_v5  ;;  %6728 = vst [vmem:[#allocation12_spill] sm:$0xff] %v5333_v15 }
  0x4f   : > { %6726 = vst [vmem:[#allocation10_spill] sm:$0xff] %v5310_v17  ;;  %4379 = vmatmul.mubr.bf16.gmra.mxu0 %v5310_v17  ;;  %v5331_v42 = vpack.c.bf16 %v699_v40, %v697_v38  ;;  %4412 = vmatprep.subr.bf16.mxu1 %v4831_v47  ;;  %v387_v8 = vmax.f32 %v355_v44, 0.0  ;;  %v356_v21 = vadd.f32 %v5114_v45, %v5123_v49  ;;  %v5348_v46 = vsel %vm445_vm0, 0.0, %v5333_v15  ;;  %v4835_v40 = vld [vmem:[%s6667_s3 + $0x10] sm:$0xff]  }
  0x50   : > { %v702_v43 = vsel %vm644_vm1, %v700_v41, %v701_v22  ;;  %v704_v25 = vsel %vm644_vm1, %v701_v22, %v703_v23  ;;  %v357_v57 = vadd.f32 %v5114_v45, %v5126_v50  ;;  %v370_v62 = vadd.f32 %v5114_v45, %v5129_v51  ;;  %v4838_v23 = vld [vmem:[%s6667_s3 + $0x88] sm:$0xff]  }
  0x51   : > { %6727 = vst [vmem:[#allocation11_spill] sm:$0xff] %v5331_v42  ;;  %4394 = vmatprep.mubr.bf16.mxu1 %v5331_v42  ;;  %v5344_v38 = vpack.c.bf16 %v704_v25, %v702_v43  ;;  %v458_v44 = vrot.slane %v387_v8, 7  ;;  %v388_v49 = vmax.f32 %v356_v21, 0.0  ;;  %4463 = vmatpush3.bf16.msra.mxu0 %v4834_v5  ;;  %v665_v50 = vrot.slane %v5348_v46, 1 }
  0x52   : > { %4413 = vmatpush3.bf16.msra.mxu1 %v4831_v47  ;;  %v389_v41 = vmax.f32 %v357_v57, 0.0  ;;  %v371_v51 = vadd.f32 %v5114_v45, %v5132_v52  ;;  %v402_v22 = vmax.f32 %v370_v62, 0.0  ;;  %4464 = vmatprep.subr.bf16.mxu0 %v4836_v28  ;;  %v6731_v52 = vunpack.c.h.bf16 %v5049_v54 }
  0x53   : > { %6729 = vst [vmem:[#allocation13_spill] sm:$0xff] %v5344_v38  ;;  %4395 = vmatmul.mubr.bf16.gmra.mxu1 %v5344_v38  ;;  %v5362_v5 = vsel %vm445_vm0, %v5333_v15, %v458_v44  ;;  %v5365_v47 = vsel %vm445_vm0, %v458_v44, 0.0  ;;  %v5367_v8 = vrot.slane %v388_v49, 7  ;;  %4414 = vmatprep.subr.bf16.mxu1 %v4833_v33  ;;  %v372_v44 = vadd.f32 %v5114_v45, %v5135_v48  ;;  %v4840_v48 = vld [vmem:[%s6667_s3 + $0x80] sm:$0xff]  }
  0x54   : > { %v337_v57 = vmul.f32 %v6731_v52, %v5080_v20  ;;  %v666_v62 = vrot.slane %v5362_v5, 1  ;;  %v668_v21 = vrot.slane %v5365_v47, 1  ;;  %v461_v43 = vrot.slane %v389_v41, 7 }
  0x55   : > { %6730 = vst [vmem:[#allocation14_spill] sm:$0xff] %v5367_v8  ;;  %v403_v25 = vmax.f32 %v371_v51, 0.0  ;;  %v5376_v38 = vsel %vm445_vm0, 0.0, %v5367_v8  ;;  %v5378_v42 = vrot.slane %v402_v22, 7  ;;  %4465 = vmatpush3.bf16.msra.mxu0 %v4836_v28 }
  0x56   : > { %v373_v49 = vadd.f32 %v5114_v45, %v337_v57  ;;  %v667_v54 = vsel %vm644_vm1, %v665_v50, %v666_v62  ;;  %v669_v52 = vsel %vm644_vm1, %v666_v62, %v668_v21  ;;  %v5387_v41 = vsel %vm445_vm0, %v5367_v8, %v461_v43  ;;  %4415 = vmatpush3.bf16.msra.mxu1 %v4833_v33  ;;  %v4837_v62 = vld [vmem:[%s6667_s3 + $0x8] sm:$0xff]  }
  0x57   : > { %6732 = vst [vmem:[#allocation15_spill] sm:$0xff] %v5378_v42  ;;  %v5390_v51 = vsel %vm445_vm0, %v461_v43, 0.0  ;;  %4466 = vmatprep.subr.bf16.mxu0 %v4838_v23  ;;  %v5395_v22 = vpack.c.bf16 %v669_v52, %v667_v54  ;;  %v670_v28 = vrot.slane %v5376_v38, 1  ;;  %v671_v50 = vrot.slane %v5387_v41, 1  ;;  %4416 = vmatprep.subr.bf16.mxu1 %v4835_v40 }
  0x58   : > { %v673_v57 = vrot.slane %v5390_v51, 1  ;;  %v482_v21 = vrot.slane %v403_v25, 7  ;;  %v5405_v33 = vsel %vm445_vm0, 0.0, %v5378_v42  ;;  %v404_v43 = vmax.f32 %v372_v44, 0.0  ;;  %v5417_v25 = vld [vmem:[%s6667_s3 + $0x138] sm:$0xff]  }
  0x59   : > { %6733 = vst [vmem:[#allocation16_spill] sm:$0xff] %v5395_v22  ;;  %6734 = vst [vmem:[#allocation17_spill] sm:$0xff] %v5405_v33  ;;  %v405_v17 = vmax.f32 %v373_v49, 0.0  ;;  %4382 = vmatprep.mubr.bf16.mxu0 %v5395_v22  ;;  %v672_v54 = vsel %vm644_vm1, %v670_v28, %v671_v50  ;;  %v705_v39 = vrot.slane %v5405_v33, 1  ;;  %v322_v8 = vmul.f32 %v6735_v2, %v5080_v20  ;;  %v4839_v22 = vld [vmem:[%s6667_s3] sm:$0xff]  }
  0x5a   : > { %v674_v52 = vsel %vm644_vm1, %v671_v50, %v673_v57  ;;  %4467 = vmatpush3.bf16.msra.mxu0 %v4838_v23  ;;  %v5423_v49 = vsel %vm445_vm0, %v5378_v42, %v482_v21  ;;  %v5426_v28 = vsel %vm445_vm0, %v482_v21, 0.0  ;;  %v5428_v50 = vrot.slane %v404_v43, 7  ;;  %4417 = vmatpush3.bf16.msra.mxu1 %v4835_v40 }
  0x5b   : > { %v5419_v44 = vpack.c.bf16 %v674_v52, %v672_v54  ;;  %6737 = vst [vmem:[#allocation19_spill] sm:$0xff] %v5423_v49  ;;  %6738 = vst [vmem:[#allocation20_spill] sm:$0xff] %v5426_v28  ;;  %4468 = vmatprep.subr.bf16.mxu0 %v4840_v48  ;;  %v706_v2 = vrot.slane %v5423_v49, 1  ;;  %v708_v23 = vrot.slane %v5426_v28, 1  ;;  %v485_v57 = vrot.slane %v405_v17, 7  ;;  %4418 = vmatprep.subr.bf16.mxu1 %v4837_v62 }
  0x5c   : > { %6739 = vst [vmem:[#allocation21_spill] sm:$0xff] %v5428_v50  ;;  %v6740_v54 = vunpack.c.h.bf16 %v5056_v60  ;;  %v5441_v40 = vsel %vm445_vm0, 0.0, %v5428_v50  ;;  %v358_v21 = vadd.f32 %v5114_v45, %v322_v8  ;;  %v6742_v17 = vunpack.c.l.bf16 %v5062_v1 }
  0x5d   : > { %6736 = vst [vmem:[#allocation18_spill] sm:$0xff] %v5419_v44  ;;  %4383 = vmatmul.mubr.bf16.gmra.mxu0 %v5419_v44  ;;  %6741 = vst [vmem:[#allocation22_spill] sm:$0xff] %v5441_v40  ;;  %v6743_v60 = vunpack.c.h.bf16 %v5062_v1  ;;  %v707_v28 = vsel %vm644_vm1, %v705_v39, %v706_v2  ;;  %v709_v33 = vsel %vm644_vm1, %v706_v2, %v708_v23  ;;  %v5457_v49 = vsel %vm445_vm0, %v485_v57, 0.0 }
  0x5e   : > { %v323_v52 = vmul.f32 %v6740_v54, %v5080_v20  ;;  %v324_v43 = vmul.f32 %v6742_v17, %v5080_v20  ;;  %v5454_v44 = vsel %vm445_vm0, %v5428_v50, %v485_v57  ;;  %6745 = vst [vmem:[#allocation24_spill] sm:$0xff] %v5457_v49  ;;  %4469 = vmatpush3.bf16.msra.mxu0 %v4840_v48  ;;  %v710_v17 = vrot.slane %v5441_v40, 1  ;;  %v5471_v48 = vld [vmem:[%s6667_s3 + $0xf8] sm:$0xff]  }
  0x5f   : > { %v325_v54 = vmul.f32 %v6743_v60, %v5080_v20  ;;  %6744 = vst [vmem:[#allocation23_spill] sm:$0xff] %v5454_v44  ;;  %v5459_v8 = vpack.c.bf16 %v709_v33, %v707_v28  ;;  %v711_v42 = vrot.slane %v5454_v44, 1  ;;  %v713_v1 = vrot.slane %v5457_v49, 1  ;;  %4419 = vmatpush3.bf16.msra.mxu1 %v4837_v62  ;;  %4550 = vmatprep.subr.bf16.mxu0 %v5417_v25 }
  0x60   : > { %v359_v39 = vadd.f32 %v5114_v45, %v323_v52  ;;  %v390_v2 = vmax.f32 %v358_v21, 0.0  ;;  %v360_v23 = vadd.f32 %v5114_v45, %v324_v43  ;;  %4420 = vmatprep.subr.bf16.mxu1 %v4839_v22  ;;  %v6747_v28 = vunpack.c.l.bf16 %v5069_v7 }
  0x61   : > { %6746 = vst [vmem:[#allocation25_spill] sm:$0xff] %v5459_v8  ;;  %v361_v57 = vadd.f32 %v5114_v45, %v325_v54  ;;  %4398 = vmatprep.mubr.bf16.mxu1 %v5459_v8  ;;  %v712_v33 = vsel %vm644_vm1, %v710_v17, %v711_v42  ;;  %v714_v62 = vsel %vm644_vm1, %v711_v42, %v713_v1  ;;  %v6748_v21 = vunpack.c.h.bf16 %v5069_v7 }
  0x62   : > { %v338_v52 = vmul.f32 %v6747_v28, %v5080_v20  ;;  %v5482_v60 = vpack.c.bf16 %v714_v62, %v712_v33  ;;  %v391_v54 = vmax.f32 %v359_v39, 0.0  ;;  %v5484_v50 = vrot.slane %v390_v2, 7 }
  0x63   : > { %v339_v43 = vmul.f32 %v6748_v21, %v5080_v20  ;;  %v392_v49 = vmax.f32 %v360_v23, 0.0  ;;  %v393_v44 = vmax.f32 %v361_v57, 0.0  ;;  %v6751_v42 = vunpack.c.l.bf16 %v5073_v12  ;;  %4421 = vmatpush3.bf16.msra.mxu1 %v4839_v22 }
  0x64   : > { %6749 = vst [vmem:[#allocation26_spill] sm:$0xff] %v5482_v60  ;;  %6750 = vst [vmem:[#allocation27_spill] sm:$0xff] %v5484_v50  ;;  %v374_v8 = vadd.f32 %v5114_v45, %v338_v52  ;;  %4399 = vmatmul.mubr.bf16.gmra.mxu1 %v5482_v60  ;;  %v464_v7 = vrot.slane %v391_v54, 7  ;;  %v5494_v33 = vsel %vm445_vm0, 0.0, %v5484_v50  ;;  %v6753_v2 = vunpack.c.h.bf16 %v5073_v12  ;;  %4502 = vmatprep.subr.bf16.mxu1 %v5471_v48 }
  0x65   : > { %v375_v17 = vadd.f32 %v5114_v45, %v339_v43  ;;  %v340_v1 = vmul.f32 %v6751_v42, %v5080_v20  ;;  %v5496_v39 = vrot.slane %v392_v49, 7  ;;  %v675_v57 = vrot.slane %v5494_v33, 1 }
  0x66   : > { %v341_v23 = vmul.f32 %v6753_v2, %v5080_v20  ;;  %v467_v62 = vrot.slane %v393_v44, 7  ;;  %v406_v28 = vmax.f32 %v374_v8, 0.0  ;;  %v5505_v52 = vsel %vm445_vm0, %v5484_v50, %v464_v7 }
  0x67   : > { %6752 = vst [vmem:[#allocation28_spill] sm:$0xff] %v5496_v39  ;;  %v407_v22 = vmax.f32 %v375_v17, 0.0  ;;  %v5508_v21 = vsel %vm445_vm0, %v464_v7, 0.0  ;;  %v5512_v49 = vsel %vm445_vm0, 0.0, %v5496_v39  ;;  %v376_v12 = vadd.f32 %v5114_v45, %v340_v1 }
  0x68   : > { %v676_v43 = vrot.slane %v5505_v52, 1  ;;  %v678_v54 = vrot.slane %v5508_v21, 1  ;;  %v5519_v44 = vsel %vm445_vm0, %v5496_v39, %v467_v62  ;;  %v5522_v8 = vsel %vm445_vm0, %v467_v62, 0.0 }
  0x69   : > { %6754 = vst [vmem:[#allocation29_spill] sm:$0xff] %v5522_v8  ;;  %v680_v17 = vrot.slane %v5512_v49, 1  ;;  %v681_v42 = vrot.slane %v5519_v44, 1  ;;  %v683_v7 = vrot.slane %v5522_v8, 1  ;;  %v5527_v2 = vrot.slane %v406_v28, 7 }
  0x6a   : > { %v677_v1 = vsel %vm644_vm1, %v675_v57, %v676_v43  ;;  %v679_v60 = vsel %vm644_vm1, %v676_v43, %v678_v54  ;;  %v488_v20 = vrot.slane %v407_v22, 7  ;;  %v377_v50 = vadd.f32 %v5114_v45, %v341_v23 }
  0x6b   : > { %v5532_v39 = vpack.c.bf16 %v679_v60, %v677_v1  ;;  %v682_v62 = vsel %vm644_vm1, %v680_v17, %v681_v42  ;;  %v684_v40 = vsel %vm644_vm1, %v681_v42, %v683_v7  ;;  %v5538_v15 = vsel %vm445_vm0, 0.0, %v5527_v2 }
  0x6c   : > { %v5540_v8 = vpack.c.bf16 %v684_v40, %v682_v62  ;;  %v5544_v57 = vsel %vm445_vm0, %v5527_v2, %v488_v20  ;;  %v5547_v28 = vsel %vm445_vm0, %v488_v20, 0.0  ;;  %v715_v60 = vrot.slane %v5538_v15, 1 }
  0x6d   : > { %6755 = vst [vmem:[#allocation30_spill] sm:$0xff] %v5532_v39  ;;  %4386 = vmatprep.mubr.bf16.mxu0 %v5532_v39  ;;  %v716_v23 = vrot.slane %v5544_v57, 1  ;;  %v718_v22 = vrot.slane %v5547_v28, 1  ;;  %v408_v43 = vmax.f32 %v376_v12, 0.0  ;;  %v409_v54 = vmax.f32 %v377_v50, 0.0 }
  0x6e   : > { %6756 = vst [vmem:[#allocation31_spill] sm:$0xff] %v5540_v8  ;;  %4387 = vmatmul.mubr.bf16.gmra.mxu0 %v5540_v8  ;;  %v6757_v40 = vrot.slane %v5152_v31, 2  ;;  %v6758_v17 = vrot.slane %v5155_v34, 2  ;;  %v6759_v20 = vrot.slane %v5158_v35, 2  ;;  %v1219_v62 = vrot.slane %v5219_v58, 2 }
  0x6f   : > { %v1220_v39 = vrot.slane %v5204_v19, 2  ;;  %v717_v50 = vsel %vm644_vm1, %v715_v60, %v716_v23  ;;  %v719_v12 = vsel %vm644_vm1, %v716_v23, %v718_v22  ;;  %v5568_v8 = vrot.slane %v408_v43, 7  ;;  %4470 = vmatprep.mubr.bf16.mxu0 %v4990_v29 }
  0x70   : > { %v1216_v42 = vsel %vm1208_vm2, %v6758_v17, %v6757_v40  ;;  %v6760_v7 = vmov %v6757_v40  ;;  %v491_v45 = vrot.slane %v409_v54, 7  ;;  %v5571_v34 = vpack.c.bf16 %v719_v12, %v717_v50 }
  0x71   : > { %v1218_v1 = vsel %vm1208_vm2, %v6760_v7, %v6759_v20  ;;  %v1222_v31 = vrot.slane %v5222_v0, 2  ;;  %v5582_v60 = vsel %vm445_vm0, 0.0, %v5568_v8  ;;  %v1221_v22 = vsel %vm1208_vm2, %v1219_v62, %v1220_v39 }
  0x72   : > { %v5573_v35 = vpack.c.bf16 %v1218_v1, %v1216_v42  ;;  %v5578_v58 = vsel %vm445_vm0, %v5568_v8, %v491_v45  ;;  %v5585_v23 = vsel %vm445_vm0, %v491_v45, 0.0  ;;  %4402 = vmatprep.mubr.bf16.mxu1 %v5571_v34  ;;  %v720_v43 = vrot.slane %v5582_v60, 1 }
  0x73   : > { %v721_v54 = vrot.slane %v5578_v58, 1  ;;  %v723_v0 = vrot.slane %v5585_v23, 1  ;;  %v1223_v40 = vsel %vm1208_vm2, %v1220_v39, %v1222_v31  ;;  %v5596_v17 = vpack.c.bf16 %v4948_v3, %v4948_v3 }
  0x74   : > { %v1224_v45 = vrot.slane %v5276_v24, 2  ;;  %v1225_v42 = vrot.slane %v5272_v11, 2  ;;  %v1227_v20 = vrot.slane %v5279_v61, 2  ;;  %v5603_v62 = vpack.c.bf16 %v1223_v40, %v1221_v22  ;;  %v4844_v24 = vld [vmem:[%s6667_s3 + $0x130] sm:$0xff]  }
  0x75   : > { %v722_v7 = vsel %vm644_vm1, %v720_v43, %v721_v54  ;;  %v724_v1 = vsel %vm644_vm1, %v721_v54, %v723_v0  ;;  %v1229_v50 = vrot.slane %v5348_v46, 2  ;;  %v1230_v61 = vrot.slane %v5362_v5, 2 }
  0x76   : > { %v5606_v12 = vpack.c.bf16 %v724_v1, %v722_v7  ;;  %4471 = vmatmul.mubr.bf16.vlgmr.msra.gmra.mxu0 %v5573_v35  ;;  %v1226_v39 = vsel %vm1208_vm2, %v1224_v45, %v1225_v42  ;;  %v1232_v31 = vrot.slane %v5365_v47, 2  ;;  %v1234_v46 = vrot.slane %v5376_v38, 2  ;;  %v4846_v47 = vld [vmem:[%s6667_s3 + $0x128] sm:$0xff]  }
  0x77   : > { %4551 = vmatpush3.bf16.msra.mxu0 %v5417_v25  ;;  %v1228_v22 = vsel %vm1208_vm2, %v1225_v42, %v1227_v20  ;;  %v1231_v43 = vsel %vm1208_vm2, %v1229_v50, %v1230_v61  ;;  %v1235_v54 = vrot.slane %v5387_v41, 2  ;;  %v1237_v0 = vrot.slane %v5390_v51, 2  ;;  %4474 = vmatprep.mubr.bf16.mxu0 %v5603_v62 }
  0x78   : > { %6761 = vst [vmem:[#allocation32_spill] sm:$0xff] %v5606_v12  ;;  %4403 = vmatmul.mubr.bf16.gmra.mxu1 %v5606_v12  ;;  %v1233_v38 = vsel %vm1208_vm2, %v1230_v61, %v1232_v31  ;;  %v1239_v25 = vrot.slane %v5494_v33, 2  ;;  %v1240_v40 = vrot.slane %v5505_v52, 2  ;;  %v1242_v45 = vrot.slane %v5508_v21, 2  ;;  %4552 = vmatprep.subr.bf16.mxu0 %v4844_v24 }
  0x79   : > { %4422 = vmatprep.mubr.msk.bf16.mxu1 %vm5608_vm5, %v5596_v17  ;;  %v5639_v51 = vpack.c.bf16 %v5204_v19, %v5149_v30  ;;  %v5641_v42 = vpack.c.bf16 %v1228_v22, %v1226_v39  ;;  %v1236_v20 = vsel %vm1208_vm2, %v1234_v46, %v1235_v54  ;;  %v1238_v7 = vsel %vm1208_vm2, %v1235_v54, %v1237_v0 }
  0x7a   : > { %v5647_v1 = vpack.c.bf16 %v5272_v11, %v5259_v26  ;;  %v5649_v33 = vpack.c.bf16 %v1233_v38, %v1231_v43  ;;  %v1241_v21 = vsel %vm1208_vm2, %v1239_v25, %v1240_v40  ;;  %v1243_v50 = vsel %vm1208_vm2, %v1240_v40, %v1242_v45  ;;  %v4843_v26 = vld [vmem:[%s6667_s3 + $0xf0] sm:$0xff]  }
  0x7b   : > { %4553 = vmatpush3.bf16.msra.mxu0 %v4844_v24  ;;  %v1249_v30 = vrot.slane %v5175_v59, 2  ;;  %v1250_v19 = vrot.slane %v5162_v36, 2  ;;  %v1252_v61 = vrot.slane %v5180_v63, 2  ;;  %v5658_v39 = vpack.c.bf16 %v5162_v36, %v5145_v14  ;;  %v4848_v14 = vld [vmem:[%s6667_s3 + $0x120] sm:$0xff]  }
  0x7c   : > { %4554 = vmatprep.subr.bf16.mxu0 %v4846_v47  ;;  %v5663_v11 = vpack.c.bf16 %v1238_v7, %v1236_v20  ;;  %v1244_v24 = vrot.slane %v5512_v49, 2  ;;  %v1254_v31 = vrot.slane %v5196_v9, 2  ;;  %v1255_v59 = vrot.slane %v5189_v6, 2 }
  0x7d   : > { %v5669_v46 = vpack.c.bf16 %v1243_v50, %v1241_v21  ;;  %v1251_v36 = vsel %vm1208_vm2, %v1249_v30, %v1250_v19  ;;  %v1253_v63 = vsel %vm1208_vm2, %v1250_v19, %v1252_v61  ;;  %v1257_v22 = vrot.slane %v5199_v10, 2  ;;  %v6765_v50 = vld [vmem:[#allocation12_spill] sm:$0xff]  ;;  %v6766_v61 = vld [vmem:[#allocation15_spill] sm:$0xff] }
  0x7e   : > { %4475 = vmatmul.mubr.bf16.gmra.mxu0 %v5641_v42  ;;  %v5681_v9 = vpack.c.bf16 %v1253_v63, %v1251_v36  ;;  %v1256_v49 = vsel %vm1208_vm2, %v1254_v31, %v1255_v59  ;;  %v5686_v43 = vpack.c.bf16 %v5189_v6, %v5147_v27  ;;  %v1259_v54 = vrot.slane %v5283_v37, 2  ;;  %v4845_v27 = vld [vmem:[%s6667_s3 + $0xe8] sm:$0xff]   ;;  %v4847_v36 = vld [vmem:[%s6667_s3 + $0xe0] sm:$0xff]  }
  0x7f   : > { %4478 = vmatprep.mubr.bf16.mxu0 %v5649_v33  ;;  %v1258_v10 = vsel %vm1208_vm2, %v1255_v59, %v1257_v22  ;;  %v1260_v0 = vrot.slane %v5293_v56, 2  ;;  %v1262_v38 = vrot.slane %v5299_v4, 2  ;;  %v5698_v25 = vpack.c.bf16 %v5293_v56, %v5261_v32  ;;  %4555 = vmatpush3.bf16.msra.mxu0 %v4846_v47  ;;  %v4850_v32 = vld [vmem:[%s6667_s3 + $0x118] sm:$0xff]   ;;  %v6767_v31 = vld [vmem:[#allocation19_spill] sm:$0xff]  ;;  %v6770_v22 = vld [vmem:[#allocation24_spill] sm:$0xff] }
  0x80   : > { %4423 = vmatmul.mubr.msk.bf16.vlgmr.msra.gmra.mxu1 %vm5608_vm5, %v5168_v55  ;;  %v5703_v6 = vpack.c.bf16 %v1258_v10, %v1256_v49  ;;  %v1264_v37 = vrot.slane %v5308_v18, 2  ;;  %v1267_v40 = vrot.slane %v5318_v13, 2  ;;  %v1245_v4 = vrot.slane %v5519_v44, 2  ;;  %4556 = vmatprep.subr.bf16.mxu0 %v4848_v14  ;;  %v6764_v18 = vld [vmem:[#allocation29_spill] sm:$0xff]  ;;  %v6769_v63 = vld [vmem:[#allocation23_spill] sm:$0xff] }
  0x81   : > { %4503 = vmatpush3.bf16.msra.mxu1 %v5471_v48  ;;  %4426 = vmatprep.mubr.msk.bf16.mxu1 %vm5608_vm5, %v5639_v51  ;;  %v1265_v48 = vrot.slane %v5315_v16, 2  ;;  %v1261_v56 = vsel %vm1208_vm2, %v1259_v54, %v1260_v0  ;;  %v1263_v45 = vsel %vm1208_vm2, %v1260_v0, %v1262_v38  ;;  %v5716_v47 = vpack.c.bf16 %v5315_v16, %v5268_v53  ;;  %v6768_v16 = vld [vmem:[#allocation22_spill] sm:$0xff]  ;;  %v4852_v0 = vld [vmem:[%s6667_s3 + $0x110] sm:$0xff]  }
  0x82   : > { %4504 = vmatprep.subr.bf16.mxu1 %v4843_v26  ;;  %v1247_v20 = vrot.slane %v6764_v18, 2  ;;  %v5719_v7 = vpack.c.bf16 %v1263_v45, %v1261_v56  ;;  %v5725_v30 = vpack.c.bf16 %v5362_v5, %v6765_v50  ;;  %v5731_v59 = vpack.c.bf16 %v6767_v31, %v6766_v61  ;;  %v6771_v5 = vld [vmem:[#allocation21_spill] sm:$0xff]  ;;  %v6772_v45 = vld [vmem:[#allocation14_spill] sm:$0xff] }
  0x83   : > { %v1266_v13 = vsel %vm1208_vm2, %v1264_v37, %v1265_v48  ;;  %v1268_v21 = vsel %vm1208_vm2, %v1265_v48, %v1267_v40  ;;  %v1274_v53 = vrot.slane %v6768_v16, 2  ;;  %4557 = vmatpush3.bf16.msra.mxu0 %v4848_v14  ;;  %v1277_v49 = vrot.slane %v6770_v22, 2  ;;  %v4849_v48 = vld [vmem:[%s6667_s3 + $0xd8] sm:$0xff]  }
  0x84   : > { %v5727_v19 = vpack.c.bf16 %v1268_v21, %v1266_v13  ;;  %v5741_v54 = vpack.c.bf16 %v6769_v63, %v6771_v5  ;;  %v1246_v10 = vsel %vm1208_vm2, %v1244_v24, %v1245_v4  ;;  %4558 = vmatprep.subr.bf16.mxu0 %v4850_v32  ;;  %v1248_v14 = vsel %vm1208_vm2, %v1245_v4, %v1247_v20  ;;  %v6774_v13 = vld [vmem:[#allocation28_spill] sm:$0xff]  ;;  %v6775_v50 = vld [vmem:[#allocation17_spill] sm:$0xff] }
  0x85   : > { %4505 = vmatpush3.bf16.msra.mxu1 %v4843_v26  ;;  %v1275_v26 = vrot.slane %v6769_v63, 2  ;;  %v5765_v40 = vpack.c.bf16 %v5544_v57, %v5527_v2  ;;  %v5769_v4 = vpack.c.bf16 %v5578_v58, %v5568_v8  ;;  %v5771_v56 = vpack.c.bf16 %v1248_v14, %v1246_v10  ;;  %v4851_v8 = vld [vmem:[%s6667_s3 + $0xd0] sm:$0xff]   ;;  %v4856_v2 = vld [vmem:[%s6667_s3 + $0x100] sm:$0xff]   ;;  %v4126_v22 = vld [vmem:[%s5001_s17 + $0x78] sm:$0xff]  }
  0x86   : > { %4506 = vmatprep.subr.bf16.mxu1 %v4845_v27  ;;  %4479 = vmatmul.mubr.bf16.gmra.mxu0 %v5663_v11  ;;  %v5778_v18 = vpack.c.bf16 %v5387_v41, %v6772_v45  ;;  %v4853_v41 = vld [vmem:[%s6667_s3 + $0xc8] sm:$0xff]   ;;  %v5808_v21 = vpack.c.bf16 %v5519_v44, %v6774_v13  ;;  %v1269_v61 = vrot.slane %v6775_v50, 2  ;;  %v1270_v16 = vrot.slane %v6767_v31, 2  ;;  %v4855_v63 = vld [vmem:[%s6667_s3 + $0xc0] sm:$0xff]  }
  0x87   : > { %4482 = vmatprep.mubr.bf16.mxu0 %v5669_v46  ;;  %v1276_v38 = vsel %vm1208_vm2, %v1274_v53, %v1275_v26  ;;  %v1278_v37 = vsel %vm1208_vm2, %v1275_v26, %v1277_v49  ;;  %4559 = vmatpush3.bf16.msra.mxu0 %v4850_v32  ;;  %v6773_v32 = vld [vmem:[#allocation27_spill] sm:$0xff]  ;;  %v6776_v53 = vld [vmem:[#allocation20_spill] sm:$0xff]  ;;  %v4857_v26 = vld [vmem:[%s6667_s3 + $0x178] sm:$0xff]   ;;  %v1279_v5 = vrot.slane %v5538_v15, 2  ;;  %v1280_v10 = vrot.slane %v5544_v57, 2 }
  0x88   : > { %4427 = vmatmul.mubr.msk.bf16.gmra.mxu1 %vm5608_vm5, %v5647_v1  ;;  %v5758_v24 = vpack.c.bf16 %v1278_v37, %v1276_v38  ;;  %4560 = vmatprep.subr.bf16.mxu0 %v4852_v0  ;;  %v5782_v20 = vpack.c.bf16 %v5505_v52, %v6773_v32  ;;  %v5804_v52 = vld [vmem:[%s6667_s3 + $0x1b8] sm:$0xff]   ;;  %v1271_v44 = vsel %vm1208_vm2, %v1269_v61, %v1270_v16  ;;  %v4030_v14 = vunpack.c.l.bf16 %v4126_v22 }
  0x89   : > { %4430 = vmatprep.mubr.msk.bf16.mxu1 %vm5608_vm5, %v5725_v30  ;;  %4507 = vmatpush3.bf16.msra.mxu1 %v4845_v27  ;;  %v4854_v27 = vld [vmem:[%s6667_s3 + $0x108] sm:$0xff]   ;;  %v4031_v38 = vunpack.c.h.bf16 %v4126_v22  ;;  %v1281_v15 = vsel %vm1208_vm2, %v1279_v5, %v1280_v10  ;;  %v1284_v45 = vrot.slane %v5582_v60, 2  ;;  %v1285_v32 = vrot.slane %v5578_v58, 2 }
  0x8a   : > { %4508 = vmatprep.subr.bf16.mxu1 %v4847_v36 }
  0x8b   : > { %4561 = vmatpush3.bf16.msra.mxu0 %v4852_v0  ;;  %v1282_v0 = vrot.slane %v5547_v28, 2  ;;  %v6777_v28 = vld [vmem:[#allocation4_spill] sm:$0xff]  ;;  %v1286_v50 = vsel %vm1208_vm2, %v1284_v45, %v1285_v32 }
  0x8c   : > { %4562 = vmatprep.subr.bf16.mxu0 %v4854_v27  ;;  %v342_v37 = vmul.f32 %v4030_v14, %v6777_v28  ;;  %v6782_v45 = vld [vmem:[#allocation16_spill] sm:$0xff] }
  0x8d   : > { %4509 = vmatpush3.bf16.msra.mxu1 %v4847_v36  ;;  %v1272_v36 = vrot.slane %v6776_v53, 2  ;;  %v1283_v57 = vsel %vm1208_vm2, %v1280_v10, %v1282_v0 }
  0x8e   : > { %4510 = vmatprep.subr.bf16.mxu1 %v4849_v48  ;;  %4483 = vmatmul.mubr.bf16.gmra.mxu0 %v5771_v56 }
  0x8f   : > { %4486 = vmatprep.mubr.bf16.mxu0 %v5681_v9  ;;  %4563 = vmatpush3.bf16.msra.mxu0 %v4854_v27  ;;  %v1273_v31 = vsel %vm1208_vm2, %v1270_v16, %v1272_v36  ;;  %v5848_v27 = vpack.c.bf16 %v1283_v57, %v1281_v15  ;;  %v6779_v36 = vld [vmem:[#allocation6_spill] sm:$0xff]  ;;  %v6780_v57 = vld [vmem:[#allocation9_spill] sm:$0xff] }
  0x90   : > { %4431 = vmatmul.mubr.msk.bf16.gmra.mxu1 %vm5608_vm5, %v5778_v18  ;;  %4564 = vmatprep.subr.bf16.mxu0 %v4856_v2  ;;  %v5831_v49 = vpack.c.bf16 %v1273_v31, %v1271_v44 }
  0x91   : > { %4434 = vmatprep.mubr.msk.bf16.mxu1 %vm5608_vm5, %v5782_v20  ;;  %4511 = vmatpush3.bf16.msra.mxu1 %v4849_v48  ;;  %v343_v48 = vmul.f32 %v4031_v38, %v6777_v28  ;;  %v4860_v38 = vld [vmem:[%s6667_s3 + $0x1b0] sm:$0xff]   ;;  %v6781_v28 = vld [vmem:[#allocation10_spill] sm:$0xff] }
  0x92   : > { %4512 = vmatprep.subr.bf16.mxu1 %v4851_v8 }
  0x93   : > { %4565 = vmatpush3.bf16.msra.mxu0 %v4856_v2  ;;  %v6778_v2 = vld [vmem:[#allocation5_spill] sm:$0xff] }
  0x94   : > { %4646 = vmatprep.subr.bf16.mxu0 %v5804_v52  ;;  %v379_v13 = vadd.f32 %v6778_v2, %v343_v48  ;;  %v4859_v48 = vld [vmem:[%s6667_s3 + $0x170] sm:$0xff]  }
  0x95   : > { %4513 = vmatpush3.bf16.msra.mxu1 %v4851_v8  ;;  %v1287_v8 = vrot.slane %v5585_v23, 2 }
  0x96   : > { %4514 = vmatprep.subr.bf16.mxu1 %v4853_v41  ;;  %4487 = vmatmul.mubr.bf16.gmra.mxu0 %v5703_v6  ;;  %v411_v23 = vmax.f32 %v379_v13, 0.0  ;;  %v6785_v13 = vld [vmem:[#allocation31_spill] sm:$0xff] }
  0x97   : > { %4490 = vmatprep.mubr.bf16.mxu0 %v5719_v7  ;;  %v1288_v60 = vsel %vm1208_vm2, %v1285_v32, %v1287_v8  ;;  %v4861_v32 = vld [vmem:[%s6667_s3 + $0x168] sm:$0xff]   ;;  %v4866_v8 = vld [vmem:[%s6667_s3 + $0x198] sm:$0xff]  }
  0x98   : > { %4435 = vmatmul.mubr.msk.bf16.gmra.mxu1 %vm5608_vm5, %v5808_v21  ;;  %v5865_v61 = vpack.c.bf16 %v1288_v60, %v1286_v50  ;;  %v494_v53 = vrot.slane %v411_v23, 7  ;;  %v4865_v50 = vld [vmem:[%s6667_s3 + $0x158] sm:$0xff]   ;;  %v4870_v60 = vld [vmem:[%s6667_s3 + $0x188] sm:$0xff]  }
  0x99   : > { %4438 = vmatprep.mubr.msk.bf16.mxu1 %vm5608_vm5, %v5658_v39  ;;  %4515 = vmatpush3.bf16.msra.mxu1 %v4853_v41  ;;  %v378_v41 = vadd.f32 %v6778_v2, %v342_v37  ;;  %v4862_v37 = vld [vmem:[%s6667_s3 + $0x1a8] sm:$0xff]   ;;  %v6784_v2 = vld [vmem:[#allocation30_spill] sm:$0xff] }
  0x9a   : > { %4516 = vmatprep.subr.bf16.mxu1 %v4855_v63  ;;  %v5886_v31 = vsel %vm445_vm0, %v494_v53, 0.0  ;;  %v6786_v23 = vld [vmem:[#allocation7_spill] sm:$0xff] }
  0x9b   : > { %v410_v58 = vmax.f32 %v378_v41, 0.0  ;;  %v2125_v10 = vrot.slane %v5886_v31, 2  ;;  %v4868_v41 = vld [vmem:[%s6667_s3 + $0x190] sm:$0xff]  }
  0x9d   : > { %4517 = vmatpush3.bf16.msra.mxu1 %v4855_v63  ;;  %v5867_v16 = vrot.slane %v410_v58, 7  ;;  %v4867_v58 = vld [vmem:[%s6667_s3 + $0x150] sm:$0xff]  }
  0x9e   : > { %4598 = vmatprep.subr.bf16.mxu1 %v4857_v26  ;;  %4491 = vmatmul.mubr.bf16.gmra.mxu0 %v5727_v19 }
  0x9f   : > { %4494 = vmatprep.mubr.bf16.mxu0 %v5831_v49  ;;  %v5879_v63 = vsel %vm445_vm0, %v5867_v16, %v494_v53  ;;  %v5883_v44 = vsel %vm445_vm0, 0.0, %v5867_v16  ;;  %v4872_v53 = vld [vmem:[%s6667_s3 + $0x180] sm:$0xff]  }
  0xa0   : > { %4439 = vmatmul.mubr.msk.bf16.gmra.mxu1 %vm5608_vm5, %v5686_v43  ;;  %v2122_v22 = vrot.slane %v5883_v44, 2  ;;  %v2123_v5 = vrot.slane %v5879_v63, 2 }
  0xa1   : > { %4442 = vmatprep.mubr.msk.bf16.mxu1 %vm5608_vm5, %v5698_v25 }
  0xa2   : > { %v2124_v0 = vsel %vm1208_vm2, %v2122_v22, %v2123_v5  ;;  %v2126_v14 = vsel %vm1208_vm2, %v2123_v5, %v2125_v10  ;;  %v4869_v22 = vld [vmem:[%s6667_s3 + $0x148] sm:$0xff]   ;;  %v4874_v5 = vld [vmem:[%s6667_s3 + $0x238] sm:$0xff]   ;;  %v4871_v10 = vld [vmem:[%s6667_s3 + $0x140] sm:$0xff]  }
  0xa3   : > { %v5896_v15 = vpack.c.bf16 %v2126_v14, %v2124_v0  ;;  %v6788_v0 = vld [vmem:[#allocation11_spill] sm:$0xff]  ;;  %v6789_v14 = vld [vmem:[#allocation13_spill] sm:$0xff] }
  0xa6   : > { %4495 = vmatmul.mubr.bf16.gmra.mxu0 %v5758_v24 }
  0xa7   : > { %4498 = vmatprep.mubr.bf16.mxu0 %v5848_v27 }
  0xa8   : > { %4443 = vmatmul.mubr.msk.bf16.gmra.mxu1 %vm5608_vm5, %v5716_v47 }
  0xa9   : > { %4446 = vmatprep.mubr.msk.bf16.mxu1 %vm5608_vm5, %v5731_v59 }
  0xae   : > { %4499 = vmatmul.mubr.bf16.gmra.mxu0 %v5865_v61 }
  0xaf   : > { %4566 = vmatprep.mubr.bf16.mxu0 %v6779_v36  ;;  %v6787_v36 = vld [vmem:[#allocation8_spill] sm:$0xff] }
  0xb0   : > { %4447 = vmatmul.mubr.msk.bf16.gmra.mxu1 %vm5608_vm5, %v5741_v54 }
  0xb1   : > { %4450 = vmatprep.mubr.msk.bf16.mxu1 %vm5608_vm5, %v5765_v40 }
  0xb6   : > { %4567 = vmatmul.mubr.bf16.vlgmr.msra.gmra.mxu0 %v6780_v57 }
  0xb7   : > { %4647 = vmatpush3.bf16.msra.mxu0 %v5804_v52  ;;  %4570 = vmatprep.mubr.bf16.mxu0 %v6781_v28  ;;  %v4864_v52 = vld [vmem:[%s6667_s3 + $0x1a0] sm:$0xff]  }
  0xb8   : > { %4451 = vmatmul.mubr.msk.bf16.gmra.mxu1 %vm5608_vm5, %v5769_v4  ;;  %4648 = vmatprep.subr.bf16.mxu0 %v4860_v38 }
  0xb9   : > { %4518 = vmatprep.mubr.msk.bf16.mxu1 %vm5608_vm5, %v5168_v55  ;;  %v6783_v55 = vld [vmem:[#allocation18_spill] sm:$0xff] }
  0xbb   : > { %4649 = vmatpush3.bf16.msra.mxu0 %v4860_v38  ;;  %v4873_v38 = vld [vmem:[%s6667_s3 + $0x1f8] sm:$0xff]  }
  0xbc   : > { %4650 = vmatprep.subr.bf16.mxu0 %v4862_v37 }
  0xbe   : > { %4571 = vmatmul.mubr.bf16.gmra.mxu0 %v6782_v45 }
  0xbf   : > { %4574 = vmatprep.mubr.bf16.mxu0 %v6783_v55  ;;  %4651 = vmatpush3.bf16.msra.mxu0 %v4862_v37  ;;  %v6790_v37 = vld [vmem:[#allocation25_spill] sm:$0xff] }
  0xc0   : > { %4519 = vmatmul.mubr.msk.bf16.vlgmr.msra.gmra.mxu1 %vm5608_vm5, %v5639_v51  ;;  %4652 = vmatprep.subr.bf16.mxu0 %v4864_v52 }
  0xc1   : > { %4599 = vmatpush3.bf16.msra.mxu1 %v4857_v26  ;;  %4522 = vmatprep.mubr.msk.bf16.mxu1 %vm5608_vm5, %v5647_v1  ;;  %v4863_v26 = vld [vmem:[%s6667_s3 + $0x160] sm:$0xff]  }
  0xc2   : > { %4600 = vmatprep.subr.bf16.mxu1 %v4859_v48 }
  0xc3   : > { %4653 = vmatpush3.bf16.msra.mxu0 %v4864_v52  ;;  %v1856_v52 = vrot.slane %v5883_v44, 1 }
  0xc4   : > { %4654 = vmatprep.subr.bf16.mxu0 %v4866_v8 }
  0xc5   : > { %4601 = vmatpush3.bf16.msra.mxu1 %v4859_v48  ;;  %v6791_v48 = vld [vmem:[#allocation26_spill] sm:$0xff] }
  0xc6   : > { %4602 = vmatprep.subr.bf16.mxu1 %v4861_v32  ;;  %4575 = vmatmul.mubr.bf16.gmra.mxu0 %v6784_v2 }
  0xc7   : > { %4578 = vmatprep.mubr.bf16.mxu0 %v6785_v13  ;;  %4655 = vmatpush3.bf16.msra.mxu0 %v4866_v8  ;;  %v1859_v8 = vrot.slane %v5886_v31, 1  ;;  %v6019_v31 = vpack.c.bf16 %v5879_v63, %v5867_v16  ;;  %v4882_v16 = vld [vmem:[%s6667_s3 + $0x218] sm:$0xff]  }
  0xc8   : > { %4523 = vmatmul.mubr.msk.bf16.gmra.mxu1 %vm5608_vm5, %v5725_v30  ;;  %4656 = vmatprep.subr.bf16.mxu0 %v4868_v41 }
  0xc9   : > { %4526 = vmatprep.mubr.msk.bf16.mxu1 %vm5608_vm5, %v5778_v18  ;;  %4603 = vmatpush3.bf16.msra.mxu1 %v4861_v32  ;;  %v1857_v32 = vrot.slane %v5879_v63, 1 }
  0xca   : > { %4604 = vmatprep.subr.bf16.mxu1 %v4863_v26 }
  0xcb   : > { %4657 = vmatpush3.bf16.msra.mxu0 %v4868_v41  ;;  %v1860_v41 = vsel %vm644_vm1, %v1857_v32, %v1859_v8 }
  0xcc   : > { %4658 = vmatprep.subr.bf16.mxu0 %v4870_v60 }
  0xcd   : > { %4605 = vmatpush3.bf16.msra.mxu1 %v4863_v26  ;;  %v1858_v26 = vsel %vm644_vm1, %v1856_v52, %v1857_v32 }
  0xce   : > { %4606 = vmatprep.subr.bf16.mxu1 %v4865_v50  ;;  %4579 = vmatmul.mubr.bf16.gmra.mxu0 %v6786_v23  ;;  %v6005_v44 = vpack.c.bf16 %v1860_v41, %v1858_v26 }
  0xcf   : > { %4582 = vmatprep.mubr.bf16.mxu0 %v6787_v36  ;;  %4659 = vmatpush3.bf16.msra.mxu0 %v4870_v60  ;;  %v4884_v60 = vld [vmem:[%s6667_s3 + $0x210] sm:$0xff]  }
  0xd0   : > { %4527 = vmatmul.mubr.msk.bf16.gmra.mxu1 %vm5608_vm5, %v5782_v20  ;;  %4660 = vmatprep.subr.bf16.mxu0 %v4872_v53  ;;  %6792 = vst [vmem:[#allocation29_spill] sm:$0xff] %v6005_v44 }
  0xd1   : > { %4530 = vmatprep.mubr.msk.bf16.mxu1 %vm5608_vm5, %v5808_v21  ;;  %4607 = vmatpush3.bf16.msra.mxu1 %v4865_v50  ;;  %v4876_v50 = vld [vmem:[%s6667_s3 + $0x230] sm:$0xff]  }
  0xd2   : > { %4608 = vmatprep.subr.bf16.mxu1 %v4867_v58 }
  0xd3   : > { %4661 = vmatpush3.bf16.msra.mxu0 %v4872_v53 }
  0xd4   : > { %4742 = vmatprep.subr.bf16.mxu0 %v4874_v5 }
  0xd5   : > { %4609 = vmatpush3.bf16.msra.mxu1 %v4867_v58 }
  0xd6   : > { %4610 = vmatprep.subr.bf16.mxu1 %v4869_v22  ;;  %4583 = vmatmul.mubr.bf16.gmra.mxu0 %v6788_v0 }
  0xd7   : > { %4586 = vmatprep.mubr.bf16.mxu0 %v6789_v14 }
  0xd8   : > { %4531 = vmatmul.mubr.msk.bf16.gmra.mxu1 %vm5608_vm5, %v5658_v39 }
  0xd9   : > { %4534 = vmatprep.mubr.msk.bf16.mxu1 %vm5608_vm5, %v5686_v43  ;;  %4611 = vmatpush3.bf16.msra.mxu1 %v4869_v22  ;;  %v4886_v22 = vld [vmem:[%s6667_s3 + $0x208] sm:$0xff]  }
  0xda   : > { %4612 = vmatprep.subr.bf16.mxu1 %v4871_v10 }
  0xdd   : > { %4613 = vmatpush3.bf16.msra.mxu1 %v4871_v10  ;;  %v4883_v10 = vld [vmem:[%s6667_s3 + $0x1d0] sm:$0xff]  }
  0xde   : > { %4694 = vmatprep.subr.bf16.mxu1 %v4873_v38  ;;  %4587 = vmatmul.mubr.bf16.gmra.mxu0 %v6790_v37 }
  0xdf   : > { %4590 = vmatprep.mubr.bf16.mxu0 %v6791_v48 }
  0xe0   : > { %4535 = vmatmul.mubr.msk.bf16.gmra.mxu1 %vm5608_vm5, %v5698_v25 }
  0xe1   : > { %4538 = vmatprep.mubr.msk.bf16.mxu1 %vm5608_vm5, %v5716_v47 }
  0xe6   : > { %4591 = vmatmul.mubr.bf16.gmra.mxu0 %v5571_v34 }
  0xe7   : > { %4594 = vmatprep.mubr.bf16.mxu0 %v5606_v12 }
  0xe8   : > { %4539 = vmatmul.mubr.msk.bf16.gmra.mxu1 %vm5608_vm5, %v5731_v59 }
  0xe9   : > { %4542 = vmatprep.mubr.msk.bf16.mxu1 %vm5608_vm5, %v5741_v54 }
  0xee   : > { %4595 = vmatmul.mubr.bf16.gmra.mxu0 %v6005_v44 }
  0xef   : > { %4662 = vmatprep.mubr.msk.bf16.mxu0 %vm5608_vm5, %v5639_v51  ;;  %v4878_v51 = vld [vmem:[%s6667_s3 + $0x228] sm:$0xff]  }
  0xf0   : > { %4543 = vmatmul.mubr.msk.bf16.gmra.mxu1 %vm5608_vm5, %v5765_v40 }
  0xf1   : > { %4546 = vmatprep.mubr.msk.bf16.mxu1 %vm5608_vm5, %v5769_v4 }
  0xf6   : > { %4663 = vmatmul.mubr.msk.bf16.vlgmr.msra.gmra.mxu0 %vm5608_vm5, %v5647_v1  ;;  %v4875_v1 = vld [vmem:[%s6667_s3 + $0x1f0] sm:$0xff]  }
  0xf7   : > { %4743 = vmatpush3.bf16.msra.mxu0 %v4874_v5  ;;  %4666 = vmatprep.mubr.msk.bf16.mxu0 %vm5608_vm5, %v5725_v30  ;;  %v4877_v30 = vld [vmem:[%s6667_s3 + $0x1e8] sm:$0xff]  }
  0xf8   : > { %4547 = vmatmul.mubr.msk.bf16.gmra.mxu1 %vm5608_vm5, %v6019_v31  ;;  %4744 = vmatprep.subr.bf16.mxu0 %v4876_v50 }
  0xf9   : > { %4614 = vmatprep.mubr.bf16.mxu1 %v5573_v35  ;;  %v4880_v35 = vld [vmem:[%s6667_s3 + $0x220] sm:$0xff]  }
  0xfb   : > { %4745 = vmatpush3.bf16.msra.mxu0 %v4876_v50 }
  0xfc   : > { %4746 = vmatprep.subr.bf16.mxu0 %v4878_v51 }
  0xfe   : > { %4667 = vmatmul.mubr.msk.bf16.gmra.mxu0 %vm5608_vm5, %v5778_v18 }
  0xff   : > { %4670 = vmatprep.mubr.msk.bf16.mxu0 %vm5608_vm5, %v5782_v20  ;;  %4747 = vmatpush3.bf16.msra.mxu0 %v4878_v51  ;;  %v4879_v20 = vld [vmem:[%s6667_s3 + $0x1e0] sm:$0xff]  }
 0x100   : > { %4615 = vmatmul.mubr.bf16.vlgmr.msra.gmra.mxu1 %v5603_v62  ;;  %4748 = vmatprep.subr.bf16.mxu0 %v4880_v35  ;;  %v6054_v18 = vpop.f32.mrf.mxu0 }
 0x101   : > { %4695 = vmatpush3.bf16.msra.mxu1 %v4873_v38  ;;  %4618 = vmatprep.mubr.bf16.mxu1 %v5641_v42  ;;  %v4888_v38 = vld [vmem:[%s6667_s3 + $0x200] sm:$0xff]  }
 0x102   : > { %4696 = vmatprep.subr.bf16.mxu1 %v4875_v1  ;;  %v6062_v63 = vpop.f32.mrf.mxu0 }
 0x103   : > { %4749 = vmatpush3.bf16.msra.mxu0 %v4880_v35 }
 0x104   : > { %4750 = vmatprep.subr.bf16.mxu0 %v4882_v16  ;;  %v6080_v53 = vpop.f32.mrf.mxu0 }
 0x105   : > { %4697 = vmatpush3.bf16.msra.mxu1 %v4875_v1  ;;  %v6074_v58 = vpop.f32.mrf.mxu1 }
 0x106   : > { %4698 = vmatprep.subr.bf16.mxu1 %v4877_v30  ;;  %4671 = vmatmul.mubr.msk.bf16.gmra.mxu0 %vm5608_vm5, %v5808_v21  ;;  %v4881_v21 = vld [vmem:[%s6667_s3 + $0x1d8] sm:$0xff]  }
 0x107   : > { %4674 = vmatprep.mubr.msk.bf16.mxu0 %vm5608_vm5, %v5658_v39  ;;  %4751 = vmatpush3.bf16.msra.mxu0 %v4882_v16  ;;  %v6085_v5 = vpop.f32.mrf.mxu1  ;;  %v6087_v39 = vpop.f32.mrf.mxu0 }
 0x108   : > { %4619 = vmatmul.mubr.bf16.gmra.mxu1 %v5649_v33  ;;  %4752 = vmatprep.subr.bf16.mxu0 %v4884_v60 }
 0x109   : > { %4622 = vmatprep.mubr.bf16.mxu1 %v5663_v11  ;;  %4699 = vmatpush3.bf16.msra.mxu1 %v4877_v30  ;;  %v6102_v52 = vpop.f32.mrf.mxu1 }
 0x10a   : > { %4700 = vmatprep.subr.bf16.mxu1 %v4879_v20 }
 0x10b   : > { %4753 = vmatpush3.bf16.msra.mxu0 %v4884_v60  ;;  %v6110_v8 = vpop.f32.mrf.mxu1 }
 0x10c   : > { %4754 = vmatprep.subr.bf16.mxu0 %v4886_v22 }
 0x10d   : > { %4701 = vmatpush3.bf16.msra.mxu1 %v4879_v20 }
 0x10e   : > { %4702 = vmatprep.subr.bf16.mxu1 %v4881_v21  ;;  %4675 = vmatmul.mubr.msk.bf16.gmra.mxu0 %vm5608_vm5, %v5686_v43  ;;  %v4885_v43 = vld [vmem:[%s6667_s3 + $0x1c8] sm:$0xff]  }
 0x10f   : > { %4678 = vmatprep.mubr.msk.bf16.mxu0 %vm5608_vm5, %v5698_v25  ;;  %v6105_v32 = vpop.f32.mrf.mxu0  ;;  %4755 = vmatpush3.bf16.msra.mxu0 %v4886_v22  ;;  %v4887_v25 = vld [vmem:[%s6667_s3 + $0x1c0] sm:$0xff]  }
 0x110   : > { %4623 = vmatmul.mubr.bf16.gmra.mxu1 %v5669_v46  ;;  %4756 = vmatprep.subr.bf16.mxu0 %v4888_v38 }
 0x111   : > { %4626 = vmatprep.mubr.bf16.mxu1 %v5771_v56  ;;  %4703 = vmatpush3.bf16.msra.mxu1 %v4881_v21  ;;  %v6112_v26 = vpop.f32.mrf.mxu0 }
 0x112   : > { %4704 = vmatprep.subr.bf16.mxu1 %v4883_v10 }
 0x113   : > { %4757 = vmatpush3.bf16.msra.mxu0 %v4888_v38  ;;  %v6120_v41 = vpop.f32.mrf.mxu0  ;;  %v6126_v50 = vpop.f32.mrf.mxu1 }
 0x115   : > { %4705 = vmatpush3.bf16.msra.mxu1 %v4883_v10  ;;  %v6129_v51 = vpop.f32.mrf.mxu0  ;;  %v6131_v1 = vpop.f32.mrf.mxu1 }
 0x116   : > { %4706 = vmatprep.subr.bf16.mxu1 %v4885_v43  ;;  %4679 = vmatmul.mubr.msk.bf16.gmra.mxu0 %vm5608_vm5, %v5716_v47 }
 0x117   : > { %4682 = vmatprep.mubr.msk.bf16.mxu0 %vm5608_vm5, %v5731_v59  ;;  %v6139_v59 = vpop.f32.mrf.mxu1 }
 0x118   : > { %4627 = vmatmul.mubr.bf16.gmra.mxu1 %v5681_v9 }
 0x119   : > { %4630 = vmatprep.mubr.bf16.mxu1 %v5703_v6  ;;  %4707 = vmatpush3.bf16.msra.mxu1 %v4885_v43  ;;  %v6147_v30 = vpop.f32.mrf.mxu1 }
 0x11a   : > { %4708 = vmatprep.subr.bf16.mxu1 %v4887_v25 }
 0x11d   : > { %4709 = vmatpush3.bf16.msra.mxu1 %v4887_v25  ;;  %v6136_v47 = vpop.f32.mrf.mxu0 }
 0x11e   : > { %4683 = vmatmul.mubr.msk.bf16.gmra.mxu0 %vm5608_vm5, %v5741_v54 }
 0x11f   : > { %4686 = vmatprep.mubr.msk.bf16.mxu0 %vm5608_vm5, %v5765_v40  ;;  %v6145_v35 = vpop.f32.mrf.mxu0 }
 0x120   : > { %4631 = vmatmul.mubr.bf16.gmra.mxu1 %v5719_v7 }
 0x121   : > { %4634 = vmatprep.mubr.bf16.mxu1 %v5727_v19  ;;  %v6152_v54 = vpop.f32.mrf.mxu0 }
 0x123   : > { %v6161_v40 = vpop.f32.mrf.mxu0 }
 0x124   : > { %v6155_v16 = vpop.f32.mrf.mxu1 }
 0x125   : > { %6793 = vst [vmem:[#allocation12_spill] sm:$0xff] %v6155_v16 }
 0x126   : > { %4687 = vmatmul.mubr.msk.bf16.gmra.mxu0 %vm5608_vm5, %v5769_v4  ;;  %v6163_v20 = vpop.f32.mrf.mxu1 }
 0x127   : > { %4690 = vmatprep.mubr.msk.bf16.mxu0 %vm5608_vm5, %v6019_v31  ;;  %6794 = vst [vmem:[#allocation15_spill] sm:$0xff] %v6163_v20 }
 0x128   : > { %4635 = vmatmul.mubr.bf16.gmra.mxu1 %v5831_v49  ;;  %v6171_v4 = vpop.f32.mrf.mxu1 }
 0x129   : > { %4638 = vmatprep.mubr.bf16.mxu1 %v5758_v24  ;;  %6795 = vst [vmem:[#allocation19_spill] sm:$0xff] %v6171_v4 }
 0x12a   : > { %v6179_v22 = vpop.f32.mrf.mxu1 }
 0x12b   : > { %6796 = vst [vmem:[#allocation22_spill] sm:$0xff] %v6179_v22 }
 0x12e   : > { %v6165_v60 = vpop.f32.mrf.mxu0  ;;  %4691 = vmatmul.mubr.msk.bf16.gmra.mxu0 %vm5608_vm5, %v5596_v17 }
 0x12f   : > { %4758 = vmatprep.mubr.bf16.mxu0 %v5603_v62 }
 0x130   : > { %4639 = vmatmul.mubr.bf16.gmra.mxu1 %v5848_v27  ;;  %v6175_v31 = vpop.f32.mrf.mxu0 }
 0x131   : > { %4642 = vmatprep.mubr.bf16.mxu1 %v5865_v61 }
 0x132   : > { %v6177_v21 = vpop.f32.mrf.mxu0 }
 0x134   : > { %v6181_v10 = vpop.f32.mrf.mxu0 }
 0x136   : > { %v4472_v38 = vpop.f32.mrf.mxu0  ;;  %4759 = vmatmul.mubr.bf16.vlgmr.msra.gmra.mxu0 %v5641_v42 }
 0x137   : > { %4762 = vmatprep.mubr.bf16.mxu0 %v5649_v33 }
 0x138   : > { %v6184_v17 = vpop.f32.mrf.mxu1  ;;  %4643 = vmatmul.mubr.bf16.gmra.mxu1 %v5896_v15  ;;  %v1436_v62 = vpop.f32.mrf.mxu0 }
 0x139   : > { %6797 = vst [vmem:[#allocation23_spill] sm:$0xff] %v6184_v17  ;;  %4710 = vmatprep.mubr.bf16.mxu1 %v6780_v57 }
 0x13a   : > { %v6189_v3 = vpop.f32.mrf.mxu1  ;;  %v4473_v43 = vpop.f32.mrf.mxu0 }
 0x13b   : > { %6798 = vst [vmem:[#allocation24_spill] sm:$0xff] %v6189_v3 }
 0x13c   : > { %v6191_v25 = vpop.f32.mrf.mxu1  ;;  %v1439_v22 = vpop.f32.mrf.mxu0 }
 0x13d   : > { %6799 = vst [vmem:[#allocation21_spill] sm:$0xff] %v6191_v25 }
 0x13e   : > { %v6193_v4 = vpop.f32.mrf.mxu1  ;;  %v4476_v20 = vpop.f32.mrf.mxu0  ;;  %4763 = vmatmul.mubr.bf16.gmra.mxu0 %v5663_v11 }
 0x13f   : > { %6800 = vst [vmem:[#allocation14_spill] sm:$0xff] %v6193_v4  ;;  %4766 = vmatprep.mubr.bf16.mxu0 %v5669_v46 }
 0x140   : > { %v4424_v42 = vpop.f32.mrf.mxu1  ;;  %4711 = vmatmul.mubr.bf16.vlgmr.msra.gmra.mxu1 %v6781_v28  ;;  %v1452_v57 = vpop.f32.mrf.mxu0 }
 0x141   : > { %v1090_v33 = vadd.f32 %v4424_v42, %v6054_v18  ;;  %4714 = vmatprep.mubr.bf16.mxu1 %v6782_v45 }
 0x142   : > { %v1081_v3 = vpop.f32.mrf.mxu1  ;;  %v4477_v25 = vpop.f32.mrf.mxu0 }
 0x143   : > { %v1082_v17 = vadd.f32 %v1081_v3, %v6062_v63  ;;  %v6201_v44 = vadd.f32 %v4472_v38, %v1090_v33 }
 0x144   : > { %v4425_v4 = vpop.f32.mrf.mxu1  ;;  %v1455_v11 = vpop.f32.mrf.mxu0 }
 0x145   : > { %v1093_v16 = vadd.f32 %v4425_v4, %v6080_v53  ;;  %v6204_v12 = vadd.f32 %v1436_v62, %v1082_v17 }
 0x146   : > { %v1084_v28 = vpop.f32.mrf.mxu1  ;;  %v4480_v29 = vpop.f32.mrf.mxu0  ;;  %4767 = vmatmul.mubr.bf16.gmra.mxu0 %v5771_v56 }
 0x147   : > { %v1085_v46 = vadd.f32 %v1084_v28, %v6087_v39  ;;  %v6208_v45 = vadd.f32 %v4473_v43, %v1093_v16  ;;  %4770 = vmatprep.mubr.bf16.mxu0 %v5681_v9 }
 0x148   : > { %v4428_v18 = vpop.f32.mrf.mxu1  ;;  %4715 = vmatmul.mubr.bf16.gmra.mxu1 %v6783_v55  ;;  %v1468_v53 = vpop.f32.mrf.mxu0 }
 0x149   : > { %v1106_v63 = vadd.f32 %v4428_v18, %v6105_v32  ;;  %4718 = vmatprep.mubr.bf16.mxu1 %v6784_v2  ;;  %v6214_v4 = vadd.f32 %v1439_v22, %v1085_v46 }
 0x14a   : > { %v1097_v38 = vpop.f32.mrf.mxu1  ;;  %v4481_v17 = vpop.f32.mrf.mxu0 }
 0x14b   : > { %v1098_v39 = vadd.f32 %v1097_v38, %v6112_v26  ;;  %v6217_v62 = vadd.f32 %v4476_v20, %v1106_v63 }
 0x14c   : > { %v4429_v56 = vpop.f32.mrf.mxu1  ;;  %v1471_v3 = vpop.f32.mrf.mxu0 }
 0x14d   : > { %v1109_v16 = vadd.f32 %v4429_v56, %v6120_v41  ;;  %v6220_v55 = vadd.f32 %v1452_v57, %v1098_v39 }
 0x14e   : > { %v1100_v9 = vpop.f32.mrf.mxu1  ;;  %v4484_v43 = vpop.f32.mrf.mxu0  ;;  %4771 = vmatmul.mubr.bf16.gmra.mxu0 %v5703_v6 }
 0x14f   : > { %v1101_v32 = vadd.f32 %v1100_v9, %v6129_v51  ;;  %v6224_v2 = vadd.f32 %v4477_v25, %v1109_v16  ;;  %4774 = vmatprep.mubr.bf16.mxu0 %v5719_v7 }
 0x150   : > { %v4432_v22 = vpop.f32.mrf.mxu1  ;;  %4719 = vmatmul.mubr.bf16.gmra.mxu1 %v6785_v13  ;;  %v1484_v41 = vpop.f32.mrf.mxu0 }
 0x151   : > { %v1122_v26 = vadd.f32 %v4432_v22, %v6136_v47  ;;  %4722 = vmatprep.mubr.bf16.mxu1 %v6786_v23  ;;  %v6230_v20 = vadd.f32 %v1455_v11, %v1101_v32 }
 0x152   : > { %v1113_v42 = vpop.f32.mrf.mxu1  ;;  %v4485_v33 = vpop.f32.mrf.mxu0 }
 0x153   : > { %v1114_v51 = vadd.f32 %v1113_v42, %v6145_v35  ;;  %v6233_v57 = vadd.f32 %v4480_v29, %v1122_v26 }
 0x154   : > { %v4433_v6 = vpop.f32.mrf.mxu1  ;;  %v1487_v28 = vpop.f32.mrf.mxu0 }
 0x155   : > { %v1125_v25 = vadd.f32 %v4433_v6, %v6152_v54  ;;  %v6236_v13 = vadd.f32 %v1468_v53, %v1114_v51 }
 0x156   : > { %v1116_v7 = vpop.f32.mrf.mxu1  ;;  %v4488_v46 = vpop.f32.mrf.mxu0  ;;  %4775 = vmatmul.mubr.bf16.gmra.mxu0 %v5727_v19 }
 0x157   : > { %v1117_v47 = vadd.f32 %v1116_v7, %v6161_v40  ;;  %v6240_v23 = vadd.f32 %v4481_v17, %v1125_v25  ;;  %4778 = vmatprep.mubr.bf16.mxu0 %v5831_v49 }
 0x158   : > { %v4436_v11 = vpop.f32.mrf.mxu1  ;;  %4723 = vmatmul.mubr.bf16.gmra.mxu1 %v6787_v36  ;;  %v1500_v35 = vpop.f32.mrf.mxu0 }
 0x159   : > { %v1138_v29 = vadd.f32 %v4436_v11, %v6165_v60  ;;  %4726 = vmatprep.mubr.bf16.mxu1 %v6788_v0  ;;  %v6246_v54 = vadd.f32 %v1471_v3, %v1117_v47  ;;  %v6802_v11 = vld [vmem:[#allocation32_spill] sm:$0xff] }
 0x15a   : > { %v1129_v18 = vpop.f32.mrf.mxu1  ;;  %v4489_v63 = vpop.f32.mrf.mxu0 }
 0x15b   : > { %v1130_v40 = vadd.f32 %v1129_v18, %v6175_v31  ;;  %v6249_v53 = vadd.f32 %v4484_v43, %v1138_v29 }
 0x15c   : > { %v4437_v19 = vpop.f32.mrf.mxu1  ;;  %v1503_v39 = vpop.f32.mrf.mxu0 }
 0x15d   : > { %v1141_v38 = vadd.f32 %v4437_v19, %v6177_v21  ;;  %v6252_v36 = vadd.f32 %v1484_v41, %v1130_v40 }
 0x15e   : > { %v1132_v49 = vpop.f32.mrf.mxu1  ;;  %v4492_v17 = vpop.f32.mrf.mxu0  ;;  %4779 = vmatmul.mubr.bf16.gmra.mxu0 %v5758_v24 }
 0x15f   : > { %v1133_v60 = vadd.f32 %v1132_v49, %v6181_v10  ;;  %v6256_v0 = vadd.f32 %v4485_v33, %v1141_v38  ;;  %4782 = vmatprep.mubr.bf16.mxu0 %v5848_v27  ;;  %v6806_v49 = vld [vmem:[#allocation19_spill] sm:$0xff] }
 0x160   : > { %v4440_v56 = vpop.f32.mrf.mxu1  ;;  %4727 = vmatmul.mubr.bf16.gmra.mxu1 %v6789_v14  ;;  %v1516_v21 = vpop.f32.mrf.mxu0 }
 0x161   : > { %v1154_v31 = vadd.f32 %v4440_v56, %v6074_v58  ;;  %4730 = vmatprep.mubr.bf16.mxu1 %v6790_v37  ;;  %v6262_v16 = vadd.f32 %v1487_v28, %v1133_v60 }
 0x162   : > { %v1145_v3 = vpop.f32.mrf.mxu1  ;;  %v4493_v9 = vpop.f32.mrf.mxu0 }
 0x163   : > { %v1146_v10 = vadd.f32 %v1145_v3, %v6085_v5  ;;  %v6265_v32 = vadd.f32 %v4488_v46, %v1154_v31 }
 0x164   : > { %v4441_v24 = vpop.f32.mrf.mxu1  ;;  %v1519_v22 = vpop.f32.mrf.mxu0 }
 0x165   : > { %v1157_v43 = vadd.f32 %v4441_v24, %v6102_v52  ;;  %v6268_v14 = vadd.f32 %v1500_v35, %v1146_v10  ;;  %v6804_v35 = vld [vmem:[#allocation29_spill] sm:$0xff] }
 0x166   : > { %v1148_v27 = vpop.f32.mrf.mxu1  ;;  %v4496_v26 = vpop.f32.mrf.mxu0  ;;  %4783 = vmatmul.mubr.bf16.gmra.mxu0 %v5865_v61 }
 0x167   : > { %v1149_v58 = vadd.f32 %v1148_v27, %v6110_v8  ;;  %v6272_v37 = vadd.f32 %v4489_v63, %v1157_v43  ;;  %4786 = vmatprep.mubr.bf16.mxu0 %v5896_v15  ;;  %v6805_v63 = vld [vmem:[#allocation15_spill] sm:$0xff]  ;;  %v6808_v43 = vld [vmem:[#allocation2_spill] sm:$0xff] }
 0x168   : > { %v4444_v41 = vpop.f32.mrf.mxu1  ;;  %4731 = vmatmul.mubr.bf16.gmra.mxu1 %v6791_v48  ;;  %v1532_v52 = vpop.f32.mrf.mxu0 }
 0x169   : > { %v1170_v5 = vadd.f32 %v4444_v41, %v6126_v50  ;;  %4734 = vmatprep.mubr.bf16.mxu1 %v5571_v34  ;;  %v6278_v42 = vadd.f32 %v1503_v39, %v1149_v58  ;;  %v6801_v34 = vld [vmem:[#allocation3_spill] sm:$0xff] }
 0x16a   : > { %v1161_v51 = vpop.f32.mrf.mxu1  ;;  %v4497_v33 = vpop.f32.mrf.mxu0 }
 0x16b   : > { %v1162_v8 = vadd.f32 %v1161_v51, %v6131_v1  ;;  %v6281_v6 = vadd.f32 %v4492_v17, %v1170_v5  ;;  %v6803_v1 = vld [vmem:[#allocation12_spill] sm:$0xff] }
 0x16c   : > { %v4445_v61 = vpop.f32.mrf.mxu1  ;;  %v1535_v28 = vpop.f32.mrf.mxu0  ;;  %v6810_v5 = vld [vmem:[#allocation24_spill] sm:$0xff] }
 0x16d   : > { %v1173_v25 = vadd.f32 %v4445_v61, %v6139_v59  ;;  %v6284_v48 = vadd.f32 %v1516_v21, %v1162_v8  ;;  %v6807_v21 = vld [vmem:[#allocation22_spill] sm:$0xff] }
 0x16e   : > { %v1164_v15 = vpop.f32.mrf.mxu1  ;;  %v4500_v7 = vpop.f32.mrf.mxu0  ;;  %4787 = vmatmul.mubr.bf16.gmra.mxu0 %v6801_v34 }
 0x16f   : > { %v1165_v50 = vadd.f32 %v1164_v15, %v6147_v30  ;;  %v6288_v47 = vadd.f32 %v4493_v9, %v1173_v25  ;;  %v6811_v25 = vld [vmem:[#allocation21_spill] sm:$0xff] }
 0x170   : > { %v4448_v46 = vpop.f32.mrf.mxu1  ;;  %4735 = vmatmul.mubr.bf16.gmra.mxu1 %v6802_v11  ;;  %v1548_v18 = vpop.f32.mrf.mxu0 }
 0x171   : > { %v1186_v29 = vadd.f32 %v4448_v46, %v6803_v1  ;;  %4738 = vmatprep.mubr.bf16.mxu1 %v6804_v35  ;;  %v6293_v59 = vadd.f32 %v1519_v22, %v1165_v50  ;;  %v6809_v22 = vld [vmem:[#allocation23_spill] sm:$0xff]  ;;  %v6812_v46 = vld [vmem:[#allocation14_spill] sm:$0xff] }
 0x172   : > { %v1177_v40 = vpop.f32.mrf.mxu1  ;;  %v4501_v38 = vpop.f32.mrf.mxu0 }
 0x173   : > { %v1178_v19 = vadd.f32 %v1177_v40, %v6805_v63  ;;  %v6296_v30 = vadd.f32 %v4496_v26, %v1186_v29 }
 0x174   : > { %v4449_v39 = vpop.f32.mrf.mxu1  ;;  %v1551_v17 = vpop.f32.mrf.mxu0 }
 0x175   : > { %v1189_v60 = vadd.f32 %v4449_v39, %v6806_v49  ;;  %v6299_v56 = vadd.f32 %v1532_v52, %v1178_v19 }
 0x176   : > { %v1180_v31 = vpop.f32.mrf.mxu1  ;;  %v4568_v10 = vpop.f32.mrf.mxu0 }
 0x177   : > { %v1181_v3 = vadd.f32 %v1180_v31, %v6807_v21  ;;  %v6302_v9 = vadd.f32 %v4497_v33, %v1189_v60 }
 0x178   : > { %v4452_v24 = vpop.f32.mrf.mxu1  ;;  %4739 = vmatmul.mubr.bf16.gmra.mxu1 %v6808_v43  ;;  %v1963_v58 = vpop.f32.mrf.mxu0 }
 0x179   : > { %v1202_v27 = vadd.f32 %v4452_v24, %v6809_v22  ;;  %v6306_v26 = vadd.f32 %v1535_v28, %v1181_v3 }
 0x17a   : > { %v1193_v41 = vpop.f32.mrf.mxu1  ;;  %v4569_v8 = vpop.f32.mrf.mxu0 }
 0x17b   : > { %v1194_v51 = vadd.f32 %v1193_v41, %v6810_v5  ;;  %v6309_v52 = vadd.f32 %v4500_v7, %v1202_v27 }
 0x17c   : > { %v4453_v61 = vpop.f32.mrf.mxu1  ;;  %v1966_v50 = vpop.f32.mrf.mxu0 }
 0x17d   : > { %v1205_v15 = vadd.f32 %v4453_v61, %v6811_v25  ;;  %v6312_v33 = vadd.f32 %v1548_v18, %v1194_v51 }
 0x17e   : > { %v1196_v34 = vpop.f32.mrf.mxu1  ;;  %v4572_v1 = vpop.f32.mrf.mxu0 }
 0x17f   : > { %v1197_v11 = vadd.f32 %v1196_v34, %v6812_v46  ;;  %v6315_v29 = vadd.f32 %v4501_v38, %v1205_v15 }
 0x180   : > { %v4520_v28 = vpop.f32.mrf.mxu1  ;;  %v1979_v40 = vpop.f32.mrf.mxu0 }
 0x181   : > { %v1824_v35 = vadd.f32 %v4520_v28, %v6201_v44  ;;  %v6318_v63 = vadd.f32 %v1551_v17, %v1197_v11 }
 0x182   : > { %v1695_v7 = vpop.f32.mrf.mxu1  ;;  %v4573_v39 = vpop.f32.mrf.mxu0 }
 0x183   : > { %v1822_v19 = vadd.f32 %v1695_v7, %v6204_v12  ;;  %v6321_v49 = vadd.f32 %v4568_v10, %v1824_v35 }
 0x184   : > { %v4521_v18 = vpop.f32.mrf.mxu1  ;;  %v1982_v31 = vpop.f32.mrf.mxu0 }
 0x185   : > { %v1825_v60 = vadd.f32 %v4521_v18, %v6208_v45  ;;  %v6324_v21 = vadd.f32 %v1963_v58, %v1822_v19 }
 0x186   : > { %v1698_v38 = vpop.f32.mrf.mxu1  ;;  %v4576_v24 = vpop.f32.mrf.mxu0 }
 0x187   : > { %v1823_v3 = vadd.f32 %v1698_v38, %v6214_v4  ;;  %v6327_v44 = vadd.f32 %v4569_v8, %v1825_v60 }
 0x188   : > { %v4524_v17 = vpop.f32.mrf.mxu1  ;;  %v1995_v22 = vpop.f32.mrf.mxu0 }
 0x189   : > { %v1828_v43 = vadd.f32 %v4524_v17, %v6217_v62  ;;  %v6330_v12 = vadd.f32 %v1966_v50, %v1823_v3 }
 0x18a   : > { %v1711_v10 = vpop.f32.mrf.mxu1  ;;  %v4577_v41 = vpop.f32.mrf.mxu0 }
 0x18b   : > { %v1826_v27 = vadd.f32 %v1711_v10, %v6220_v55  ;;  %v6333_v45 = vadd.f32 %v4572_v1, %v1828_v43 }
 0x18c   : > { %v4525_v58 = vpop.f32.mrf.mxu1  ;;  %v1998_v51 = vpop.f32.mrf.mxu0 }
 0x18d   : > { %v1829_v5 = vadd.f32 %v4525_v58, %v6224_v2  ;;  %v6336_v4 = vadd.f32 %v1979_v40, %v1826_v27 }
 0x18e   : > { %v1714_v8 = vpop.f32.mrf.mxu1  ;;  %v4580_v25 = vpop.f32.mrf.mxu0 }
 0x18f   : > { %v1827_v61 = vadd.f32 %v1714_v8, %v6230_v20  ;;  %v6339_v62 = vadd.f32 %v4573_v39, %v1829_v5 }
 0x190   : > { %v4528_v15 = vpop.f32.mrf.mxu1  ;;  %v2011_v34 = vpop.f32.mrf.mxu0 }
 0x191   : > { %v1832_v50 = vadd.f32 %v4528_v15, %v6233_v57  ;;  %v6342_v55 = vadd.f32 %v1982_v31, %v1827_v61 }
 0x192   : > { %v1727_v46 = vpop.f32.mrf.mxu1  ;;  %v4581_v1 = vpop.f32.mrf.mxu0 }
 0x193   : > { %v1830_v11 = vadd.f32 %v1727_v46, %v6236_v13  ;;  %v6345_v2 = vadd.f32 %v4576_v24, %v1832_v50 }
 0x194   : > { %v4529_v28 = vpop.f32.mrf.mxu1  ;;  %v2014_v40 = vpop.f32.mrf.mxu0 }
 0x195   : > { %v1833_v35 = vadd.f32 %v4529_v28, %v6240_v23  ;;  %v6348_v20 = vadd.f32 %v1995_v22, %v1830_v11 }
 0x196   : > { %v1730_v7 = vpop.f32.mrf.mxu1  ;;  %v4584_v39 = vpop.f32.mrf.mxu0 }
 0x197   : > { %v1831_v19 = vadd.f32 %v1730_v7, %v6246_v54  ;;  %v6351_v57 = vadd.f32 %v4577_v41, %v1833_v35 }
 0x198   : > { %v4532_v18 = vpop.f32.mrf.mxu1  ;;  %v2027_v31 = vpop.f32.mrf.mxu0 }
 0x199   : > { %v1836_v60 = vadd.f32 %v4532_v18, %v6249_v53  ;;  %v6354_v13 = vadd.f32 %v1998_v51, %v1831_v19 }
 0x19a   : > { %v1743_v38 = vpop.f32.mrf.mxu1  ;;  %v4585_v24 = vpop.f32.mrf.mxu0 }
 0x19b   : > { %v1834_v3 = vadd.f32 %v1743_v38, %v6252_v36  ;;  %v6357_v23 = vadd.f32 %v4580_v25, %v1836_v60 }
 0x19c   : > { %v4533_v17 = vpop.f32.mrf.mxu1  ;;  %v2030_v22 = vpop.f32.mrf.mxu0 }
 0x19d   : > { %v1837_v43 = vadd.f32 %v4533_v17, %v6256_v0  ;;  %v6360_v54 = vadd.f32 %v2011_v34, %v1834_v3 }
 0x19e   : > { %v1746_v10 = vpop.f32.mrf.mxu1  ;;  %v4588_v41 = vpop.f32.mrf.mxu0 }
 0x19f   : > { %v1835_v27 = vadd.f32 %v1746_v10, %v6262_v16  ;;  %v6363_v53 = vadd.f32 %v4581_v1, %v1837_v43 }
 0x1a0   : > { %v4536_v58 = vpop.f32.mrf.mxu1  ;;  %v2043_v51 = vpop.f32.mrf.mxu0 }
 0x1a1   : > { %v1840_v5 = vadd.f32 %v4536_v58, %v6265_v32  ;;  %v6366_v36 = vadd.f32 %v2014_v40, %v1835_v27 }
 0x1a2   : > { %v1759_v8 = vpop.f32.mrf.mxu1  ;;  %v4589_v25 = vpop.f32.mrf.mxu0 }
 0x1a3   : > { %v1838_v61 = vadd.f32 %v1759_v8, %v6268_v14  ;;  %v6369_v0 = vadd.f32 %v4584_v39, %v1840_v5 }
 0x1a4   : > { %v4537_v15 = vpop.f32.mrf.mxu1  ;;  %v2046_v34 = vpop.f32.mrf.mxu0 }
 0x1a5   : > { %v1841_v50 = vadd.f32 %v4537_v15, %v6272_v37  ;;  %v6372_v16 = vadd.f32 %v2027_v31, %v1838_v61 }
 0x1a6   : > { %v1762_v46 = vpop.f32.mrf.mxu1  ;;  %v4592_v1 = vpop.f32.mrf.mxu0 }
 0x1a7   : > { %v1839_v11 = vadd.f32 %v1762_v46, %v6278_v42  ;;  %v6375_v32 = vadd.f32 %v4585_v24, %v1841_v50 }
 0x1a8   : > { %v4540_v28 = vpop.f32.mrf.mxu1  ;;  %v2059_v40 = vpop.f32.mrf.mxu0 }
 0x1a9   : > { %v1844_v35 = vadd.f32 %v4540_v28, %v6281_v6  ;;  %v6378_v14 = vadd.f32 %v2030_v22, %v1839_v11 }
 0x1aa   : > { %v1775_v7 = vpop.f32.mrf.mxu1  ;;  %v4593_v39 = vpop.f32.mrf.mxu0 }
 0x1ab   : > { %v1842_v19 = vadd.f32 %v1775_v7, %v6284_v48  ;;  %v6381_v37 = vadd.f32 %v4588_v41, %v1844_v35 }
 0x1ac   : > { %v4541_v18 = vpop.f32.mrf.mxu1  ;;  %v2062_v31 = vpop.f32.mrf.mxu0 }
 0x1ad   : > { %v1845_v60 = vadd.f32 %v4541_v18, %v6288_v47  ;;  %v6384_v42 = vadd.f32 %v2043_v51, %v1842_v19 }
 0x1ae   : > { %v1778_v38 = vpop.f32.mrf.mxu1  ;;  %v4596_v24 = vpop.f32.mrf.mxu0 }
 0x1af   : > { %6813 = vst [vmem:[#allocation27_spill] sm:$0xff] %v6384_v42  ;;  %v1843_v3 = vadd.f32 %v1778_v38, %v6293_v59  ;;  %v6387_v6 = vadd.f32 %v4589_v25, %v1845_v60 }
 0x1b0   : > { %v4544_v17 = vpop.f32.mrf.mxu1  ;;  %v2075_v22 = vpop.f32.mrf.mxu0 }
 0x1b1   : > { %6814 = vst [vmem:[#allocation28_spill] sm:$0xff] %v6387_v6  ;;  %v1848_v43 = vadd.f32 %v4544_v17, %v6296_v30  ;;  %v6390_v48 = vadd.f32 %v2046_v34, %v1843_v3 }
 0x1b2   : > { %v1791_v10 = vpop.f32.mrf.mxu1  ;;  %v4597_v41 = vpop.f32.mrf.mxu0 }
 0x1b3   : > { %6815 = vst [vmem:[#allocation17_spill] sm:$0xff] %v6390_v48  ;;  %v1846_v27 = vadd.f32 %v1791_v10, %v6299_v56  ;;  %v6393_v47 = vadd.f32 %v4592_v1, %v1848_v43 }
 0x1b4   : > { %v4545_v58 = vpop.f32.mrf.mxu1  ;;  %v2078_v51 = vpop.f32.mrf.mxu0 }
 0x1b5   : > { %v1849_v5 = vadd.f32 %v4545_v58, %v6302_v9  ;;  %v6396_v59 = vadd.f32 %v2059_v40, %v1846_v27 }
 0x1b6   : > { %v1794_v8 = vpop.f32.mrf.mxu1  ;;  %v4664_v25 = vpop.f32.mrf.mxu0 }
 0x1b7   : > { %6816 = vst [vmem:[#allocation20_spill] sm:$0xff] %v6396_v59  ;;  %v1847_v61 = vadd.f32 %v1794_v8, %v6306_v26  ;;  %v6399_v30 = vadd.f32 %v4593_v39, %v1849_v5 }
 0x1b8   : > { %v4548_v15 = vpop.f32.mrf.mxu1  ;;  %v2487_v34 = vpop.f32.mrf.mxu0 }
 0x1b9   : > { %6817 = vst [vmem:[#allocation4_spill] sm:$0xff] %v6399_v30  ;;  %v1852_v50 = vadd.f32 %v4548_v15, %v6309_v52  ;;  %v6402_v56 = vadd.f32 %v2062_v31, %v1847_v61 }
 0x1ba   : > { %v1807_v46 = vpop.f32.mrf.mxu1  ;;  %v6405_v1 = vpop.f32.mrf.mxu0 }
 0x1bb   : > { %6818 = vst [vmem:[#allocation5_spill] sm:$0xff] %v6402_v56  ;;  %v1850_v11 = vadd.f32 %v1807_v46, %v6312_v33  ;;  %v6407_v9 = vadd.f32 %v4596_v24, %v1852_v50 }
 0x1bc   : > { %v4549_v28 = vpop.f32.mrf.mxu1  ;;  %v6410_v26 = vpop.f32.mrf.mxu0 }
 0x1bd   : > { %v1853_v35 = vadd.f32 %v4549_v28, %v6315_v29  ;;  %v6412_v40 = vadd.f32 %v2075_v22, %v1850_v11 }
 0x1be   : > { %v1810_v7 = vpop.f32.mrf.mxu1  ;;  %v4668_v19 = vpop.f32.mrf.mxu0 }
 0x1bf   : > { %6819 = vst [vmem:[#allocation6_spill] sm:$0xff] %v6412_v40  ;;  %v1851_v52 = vadd.f32 %v1810_v7, %v6318_v63  ;;  %v6415_v39 = vadd.f32 %v4597_v41, %v1853_v35 }
 0x1c0   : > { %v4616_v18 = vpop.f32.mrf.mxu1  ;;  %v6418_v60 = vpop.f32.mrf.mxu0 }
 0x1c1   : > { %6820 = vst [vmem:[#allocation9_spill] sm:$0xff] %v6415_v39  ;;  %v2358_v33 = vadd.f32 %v4616_v18, %v6321_v49  ;;  %v6420_v31 = vadd.f32 %v2078_v51, %v1851_v52 }
 0x1c2   : > { %v2229_v38 = vpop.f32.mrf.mxu1  ;;  %v6423_v3 = vpop.f32.mrf.mxu0 }
 0x1c3   : > { %6821 = vst [vmem:[#allocation10_spill] sm:$0xff] %v6420_v31  ;;  %v2356_v29 = vadd.f32 %v2229_v38, %v6324_v21  ;;  %v6425_v24 = vadd.f32 %v4664_v25, %v2358_v33 }
 0x1c4   : > { %v6427_v17 = vpop.f32.mrf.mxu1  ;;  %v6429_v63 = vpop.f32.mrf.mxu0 }
 0x1c5   : > { %v6431_v43 = vadd.f32 %v2487_v34, %v2356_v29 }
 0x1c6   : > { %v6433_v22 = vpop.f32.mrf.mxu1  ;;  %v4672_v49 = vpop.f32.mrf.mxu0 }
 0x1c8   : > { %v4620_v10 = vpop.f32.mrf.mxu1  ;;  %v6436_v41 = vpop.f32.mrf.mxu0 }
 0x1c9   : > { %v2362_v27 = vadd.f32 %v4620_v10, %v6333_v45 }
 0x1ca   : > { %v6438_v58 = vpop.f32.mrf.mxu1  ;;  %v6440_v21 = vpop.f32.mrf.mxu0 }
 0x1cb   : > { %v6442_v5 = vadd.f32 %v4668_v19, %v2362_v27 }
 0x1cc   : > { %v6444_v51 = vpop.f32.mrf.mxu1  ;;  %v6446_v8 = vpop.f32.mrf.mxu0 }
 0x1ce   : > { %v6448_v61 = vpop.f32.mrf.mxu1  ;;  %v4676_v25 = vpop.f32.mrf.mxu0 }
 0x1d0   : > { %v4624_v15 = vpop.f32.mrf.mxu1  ;;  %v6451_v34 = vpop.f32.mrf.mxu0 }
 0x1d1   : > { %v2366_v50 = vadd.f32 %v4624_v15, %v6345_v2 }
 0x1d2   : > { %v6453_v45 = vpop.f32.mrf.mxu1  ;;  %v6455_v46 = vpop.f32.mrf.mxu0 }
 0x1d3   : > { %v6457_v11 = vadd.f32 %v4672_v49, %v2366_v50 }
 0x1d4   : > { %v6459_v28 = vpop.f32.mrf.mxu1  ;;  %v6461_v35 = vpop.f32.mrf.mxu0 }
 0x1d6   : > { %v6463_v7 = vpop.f32.mrf.mxu1  ;;  %v4680_v52 = vpop.f32.mrf.mxu0 }
 0x1d8   : > { %v4628_v19 = vpop.f32.mrf.mxu1  ;;  %v6466_v33 = vpop.f32.mrf.mxu0 }
 0x1d9   : > { %v2370_v18 = vadd.f32 %v4628_v19, %v6357_v23 }
 0x1da   : > { %v6468_v2 = vpop.f32.mrf.mxu1  ;;  %v6470_v38 = vpop.f32.mrf.mxu0 }
 0x1db   : > { %v6472_v29 = vadd.f32 %v4676_v25, %v2370_v18 }
 0x1dc   : > { %v6474_v49 = vpop.f32.mrf.mxu1  ;;  %v6476_v10 = vpop.f32.mrf.mxu0 }
 0x1dd   : > { %6822 = vst [vmem:[#allocation16_spill] sm:$0xff] %v6476_v10 }
 0x1de   : > { %v6478_v27 = vpop.f32.mrf.mxu1  ;;  %v4684_v15 = vpop.f32.mrf.mxu0 }
 0x1e0   : > { %v4632_v50 = vpop.f32.mrf.mxu1  ;;  %v6481_v39 = vpop.f32.mrf.mxu0 }
 0x1e1   : > { %v2374_v31 = vadd.f32 %v4632_v50, %v6369_v0  ;;  %6823 = vst [vmem:[#allocation18_spill] sm:$0xff] %v6481_v39 }
 0x1e2   : > { %v6483_v23 = vpop.f32.mrf.mxu1  ;;  %v6485_v19 = vpop.f32.mrf.mxu0 }
 0x1e3   : > { %6824 = vst [vmem:[#allocation30_spill] sm:$0xff] %v6485_v19  ;;  %v6487_v40 = vadd.f32 %v4680_v52, %v2374_v31 }
 0x1e4   : > { %v6489_v25 = vpop.f32.mrf.mxu1  ;;  %v6491_v18 = vpop.f32.mrf.mxu0 }
 0x1e5   : > { %6825 = vst [vmem:[#allocation31_spill] sm:$0xff] %v6487_v40  ;;  %6826 = vst [vmem:[#allocation7_spill] sm:$0xff] %v6491_v18 }
 0x1e6   : > { %v6493_v56 = vpop.f32.mrf.mxu1  ;;  %v4688_v30 = vpop.f32.mrf.mxu0 }
 0x1e8   : > { %v4636_v59 = vpop.f32.mrf.mxu1  ;;  %v6496_v10 = vpop.f32.mrf.mxu0 }
 0x1e9   : > { %v2378_v48 = vadd.f32 %v4636_v59, %v6381_v37  ;;  %6827 = vst [vmem:[#allocation8_spill] sm:$0xff] %v6496_v10 }
 0x1ea   : > { %v6498_v0 = vpop.f32.mrf.mxu1  ;;  %v6500_v50 = vpop.f32.mrf.mxu0 }
 0x1eb   : > { %6828 = vst [vmem:[#allocation11_spill] sm:$0xff] %v6498_v0  ;;  %6829 = vst [vmem:[#allocation13_spill] sm:$0xff] %v6500_v50  ;;  %v6502_v39 = vadd.f32 %v4684_v15, %v2378_v48 }
 0x1ec   : > { %v6504_v31 = vpop.f32.mrf.mxu1  ;;  %v6506_v52 = vpop.f32.mrf.mxu0 }
 0x1ed   : > { %6830 = vst [vmem:[#allocation25_spill] sm:$0xff] %v6502_v39  ;;  %6831 = vst [vmem:[#allocation26_spill] sm:$0xff] %v6504_v31 }
 0x1ee   : > { %6832 = vst [vmem:[#allocation3_spill] sm:$0xff] %v6506_v52  ;;  %v6508_v19 = vpop.f32.mrf.mxu1  ;;  %v4692_v18 = vpop.f32.mrf.mxu0 }
 0x1ef   : > { %6833 = vst [vmem:[#allocation32_spill] sm:$0xff] %v6508_v19 }
 0x1f0   : > { %v4640_v6 = vpop.f32.mrf.mxu1  ;;  %v6511_v40 = vpop.f32.mrf.mxu0 }
 0x1f1   : > { %v2382_v42 = vadd.f32 %v4640_v6, %v6393_v47  ;;  %6834 = vst [vmem:[#allocation12_spill] sm:$0xff] %v6511_v40 }
 0x1f2   : > { %v6513_v37 = vpop.f32.mrf.mxu1  ;;  %v6515_v59 = vpop.f32.mrf.mxu0 }
 0x1f3   : > { %6835 = vst [vmem:[#allocation29_spill] sm:$0xff] %v6513_v37  ;;  %6836 = vst [vmem:[#allocation15_spill] sm:$0xff] %v6515_v59  ;;  %v6517_v10 = vadd.f32 %v4688_v30, %v2382_v42 }
 0x1f4   : > { %v6519_v48 = vpop.f32.mrf.mxu1  ;;  %v6521_v15 = vpop.f32.mrf.mxu0 }
 0x1f5   : > { %6837 = vst [vmem:[#allocation19_spill] sm:$0xff] %v6517_v10  ;;  %6838 = vst [vmem:[#allocation22_spill] sm:$0xff] %v6519_v48 }
 0x1f6   : > { %6839 = vst [vmem:[#allocation2_spill] sm:$0xff] %v6521_v15  ;;  %v6523_v50 = vpop.f32.mrf.mxu1  ;;  %v4760_v52 = vpop.f32.mrf.mxu0  ;;  %v2359_v15 = vadd.f32 %v6427_v17, %v6327_v44  ;;  %v2360_v17 = vadd.f32 %v6438_v58, %v6336_v4 }
 0x1f7   : > { %6840 = vst [vmem:[#allocation23_spill] sm:$0xff] %v6523_v50  ;;  %v2357_v50 = vadd.f32 %v6433_v22, %v6330_v12  ;;  %v2363_v12 = vadd.f32 %v6444_v51, %v6339_v62 }
 0x1f8   : > { %v4644_v39 = vpop.f32.mrf.mxu1  ;;  %v3003_v31 = vpop.f32.mrf.mxu0 }
 0x1f9   : > { %v2386_v19 = vadd.f32 %v4644_v39, %v6407_v9  ;;  %v2615_v48 = vadd.f32 %v6410_v26, %v2357_v50  ;;  %v2618_v50 = vadd.f32 %v6418_v60, %v2360_v17 }
 0x1fa   : > { %v6526_v6 = vpop.f32.mrf.mxu1  ;;  %v4761_v47 = vpop.f32.mrf.mxu0 }
 0x1fb   : > { %6841 = vst [vmem:[#allocation24_spill] sm:$0xff] %v6526_v6  ;;  %v6528_v40 = vadd.f32 %v4692_v18, %v2386_v19  ;;  %v2617_v18 = vadd.f32 %v6405_v1, %v2359_v15  ;;  %v2361_v1 = vadd.f32 %v6448_v61, %v6342_v55 }
 0x1fc   : > { %v6530_v37 = vpop.f32.mrf.mxu1  ;;  %v3006_v42 = vpop.f32.mrf.mxu0 }
 0x1fd   : > { %6842 = vst [vmem:[#allocation21_spill] sm:$0xff] %v6528_v40  ;;  %6843 = vst [vmem:[#allocation14_spill] sm:$0xff] %v6530_v37 }
 0x1fe   : > { %v6532_v30 = vpop.f32.mrf.mxu1  ;;  %v4764_v59 = vpop.f32.mrf.mxu0 }
 0x1ff   : > { %6844 = vst [vmem:[#allocation33_spill] sm:$0xff] %v6532_v30 }
 0x200   : > { %v4712_v10 = vpop.f32.mrf.mxu1  ;;  %v3019_v9 = vpop.f32.mrf.mxu0 }
 0x201   : > { %v2874_v6 = vadd.f32 %v4712_v10, %v6425_v24 }
 0x202   : > { %v2745_v39 = vpop.f32.mrf.mxu1  ;;  %v4765_v40 = vpop.f32.mrf.mxu0 }
 0x203   : > { %v2872_v19 = vadd.f32 %v2745_v39, %v6431_v43  ;;  %v3132_v0 = vadd.f32 %v4760_v52, %v2874_v6  ;;  %v2621_v52 = vadd.f32 %v6423_v3, %v2363_v12  ;;  %v2364_v6 = vadd.f32 %v6453_v45, %v6348_v20 }
 0x204   : > { %v4713_v37 = vpop.f32.mrf.mxu1  ;;  %v3022_v44 = vpop.f32.mrf.mxu0  ;;  %v2367_v3 = vadd.f32 %v6459_v28, %v6351_v57 }
 0x205   : > { %v2875_v30 = vadd.f32 %v4713_v37, %v2617_v18  ;;  %v3130_v24 = vadd.f32 %v3003_v31, %v2872_v19  ;;  %v3362_v19 = vmul.f32 %v3132_v0, %v3132_v0 }
 0x206   : > { %v2748_v22 = vpop.f32.mrf.mxu1  ;;  %v6546_v39 = vpop.f32.mrf.mxu0 }
 0x207   : > { %v3133_v10 = vadd.f32 %v4761_v47, %v2875_v30  ;;  %v2873_v43 = vadd.f32 %v2748_v22, %v2615_v48  ;;  %v3360_v55 = vmul.f32 %v3130_v24, %v3130_v24  ;;  %v2619_v30 = vadd.f32 %v6429_v63, %v2361_v1 }
 0x208   : > { %v4716_v4 = vpop.f32.mrf.mxu1  ;;  %v3035_v58 = vpop.f32.mrf.mxu0  ;;  %v2365_v63 = vadd.f32 %v6463_v7, %v6354_v13  ;;  %v2622_v1 = vadd.f32 %v6436_v41, %v2364_v6 }
 0x209   : > { %v4040_v26 = vpack.c.bf16 %v3133_v10, %v3132_v0  ;;  %v3131_v62 = vadd.f32 %v3006_v42, %v2873_v43  ;;  %v2878_v51 = vadd.f32 %v4716_v4, %v6442_v5  ;;  %v3363_v12 = vmul.f32 %v3133_v10, %v3133_v10 }
 0x20a   : > { %v2761_v31 = vpop.f32.mrf.mxu1  ;;  %v4769_v15 = vpop.f32.mrf.mxu0 }
 0x20b   : > { %4127 = vst [vmem:[%s6555_s29 + $0x8] sm:$0xff] %v4040_v26   ;;  %v4035_v61 = vpack.c.bf16 %v3131_v62, %v3130_v24  ;;  %v3323_v37 = vadd.f32 %v3131_v62, %v3130_v24  ;;  %v3361_v48 = vmul.f32 %v3131_v62, %v3131_v62  ;;  %v2876_v47 = vadd.f32 %v2761_v31, %v2618_v50 }
 0x20c   : > { %v4717_v42 = vpop.f32.mrf.mxu1  ;;  %v3038_v17 = vpop.f32.mrf.mxu0  ;;  %v3136_v22 = vadd.f32 %v4764_v59, %v2878_v51 }
 0x20d   : > { %4036 = vst [vmem:[%s6555_s29] sm:$0xff] %v4035_v61   ;;  %v3324_v5 = vadd.f32 %v3323_v37, %v3132_v0  ;;  %v3392_v60 = vadd.f32 %v3361_v48, %v3360_v55  ;;  %v2879_v18 = vadd.f32 %v4717_v42, %v2621_v52  ;;  %v3134_v24 = vadd.f32 %v3019_v9, %v2876_v47 }
 0x20e   : > { %v2764_v43 = vpop.f32.mrf.mxu1  ;;  %v6567_v62 = vpop.f32.mrf.mxu0  ;;  %v2625_v55 = vadd.f32 %v6440_v21, %v2367_v3  ;;  %v2368_v48 = vadd.f32 %v6468_v2, %v6360_v54  ;;  %v2623_v47 = vadd.f32 %v6446_v8, %v2365_v63  ;;  %v2369_v8 = vadd.f32 %v6478_v27, %v6366_v36 }
 0x20f   : > { %v3393_v4 = vadd.f32 %v3392_v60, %v3362_v19  ;;  %v3325_v20 = vadd.f32 %v3324_v5, %v3133_v10  ;;  %v3137_v45 = vadd.f32 %v4765_v40, %v2879_v18  ;;  %v2877_v26 = vadd.f32 %v2764_v43, %v2619_v30 }
 0x210   : > { %v4720_v0 = vpop.f32.mrf.mxu1  ;;  %v3364_v31 = vmul.f32 %v3134_v24, %v3134_v24  ;;  %v3051_v59 = vpop.f32.mrf.mxu0  ;;  %v3366_v30 = vmul.f32 %v3136_v22, %v3136_v22 }
 0x211   : > { %v3326_v50 = vadd.f32 %v3325_v20, %v3134_v24  ;;  %v3394_v57 = vadd.f32 %v3393_v4, %v3363_v12  ;;  %v4050_v28 = vpack.c.bf16 %v3137_v45, %v3136_v22  ;;  %v3135_v9 = vadd.f32 %v3022_v44, %v2877_v26 }
 0x212   : > { %v2777_v51 = vpop.f32.mrf.mxu1  ;;  %v2882_v40 = vadd.f32 %v4720_v0, %v6457_v11  ;;  %v4773_v61 = vpop.f32.mrf.mxu0  ;;  %v2371_v44 = vadd.f32 %v6474_v49, %v6363_v53  ;;  %v3367_v54 = vmul.f32 %v3137_v45, %v3137_v45 }
 0x213   : > { %v3395_v52 = vadd.f32 %v3394_v57, %v3364_v31  ;;  %4129 = vst [vmem:[%s6555_s29 + $0x18] sm:$0xff] %v4050_v28   ;;  %v2880_v10 = vadd.f32 %v2777_v51, %v2622_v1  ;;  %v4045_v13 = vpack.c.bf16 %v3135_v9, %v3134_v24  ;;  %v3327_v7 = vadd.f32 %v3326_v50, %v3135_v9 }
 0x214   : > { %v3365_v37 = vmul.f32 %v3135_v9, %v3135_v9  ;;  %v4721_v41 = vpop.f32.mrf.mxu1  ;;  %v3054_v42 = vpop.f32.mrf.mxu0  ;;  %v3140_v60 = vadd.f32 %v6546_v39, %v2882_v40  ;;  %v2629_v26 = vadd.f32 %v6455_v46, %v2371_v44  ;;  %v2375_v31 = vadd.f32 %v6489_v25, %v6375_v32 }
 0x215   : > { %v2883_v6 = vadd.f32 %v4721_v41, %v2625_v55  ;;  %4128 = vst [vmem:[%s6555_s29 + $0x10] sm:$0xff] %v4045_v13   ;;  %v3328_v11 = vadd.f32 %v3327_v7, %v3136_v22  ;;  %v3138_v21 = vadd.f32 %v3035_v58, %v2880_v10  ;;  %v2626_v22 = vadd.f32 %v6451_v34, %v2368_v48 }
 0x216   : > { %v3396_v19 = vadd.f32 %v3395_v52, %v3365_v37  ;;  %v2780_v5 = vpop.f32.mrf.mxu1  ;;  %v6582_v12 = vpop.f32.mrf.mxu0  ;;  %v2372_v34 = vadd.f32 %v6483_v23, %v6372_v16  ;;  %v2627_v46 = vadd.f32 %v6461_v35, %v2369_v8  ;;  %v3370_v9 = vmul.f32 %v3140_v60, %v3140_v60  ;;  %v6850_v8 = vld [vmem:[#allocation16_spill] sm:$0xff] }
 0x217   : > { %v3141_v18 = vadd.f32 %v4769_v15, %v2883_v6  ;;  %v2881_v3 = vadd.f32 %v2780_v5, %v2623_v47  ;;  %v3329_v53 = vadd.f32 %v3328_v11, %v3137_v45  ;;  %v3368_v39 = vmul.f32 %v3138_v21, %v3138_v21 }
 0x218   : > { %v3397_v2 = vadd.f32 %v3396_v19, %v3366_v30  ;;  %v4724_v49 = vpop.f32.mrf.mxu1  ;;  %v3067_v58 = vpop.f32.mrf.mxu0  ;;  %v2373_v35 = vadd.f32 %v6493_v56, %v6378_v14  ;;  %v2630_v48 = vadd.f32 %v6466_v33, %v2372_v34  ;;  %v2633_v47 = vadd.f32 %v6470_v38, %v2375_v31  ;;  %v6845_v19 = vld [vmem:[#allocation31_spill] sm:$0xff]  ;;  %v6852_v34 = vld [vmem:[#allocation32_spill] sm:$0xff] }
 0x219   : > { %v4060_v24 = vpack.c.bf16 %v3141_v18, %v3140_v60  ;;  %v3139_v43 = vadd.f32 %v3038_v17, %v2881_v3  ;;  %v3330_v4 = vadd.f32 %v3329_v53, %v3138_v21  ;;  %v2886_v45 = vadd.f32 %v4724_v49, %v6472_v29  ;;  %v6847_v33 = vld [vmem:[#allocation11_spill] sm:$0xff] }
 0x21a   : > { %v3398_v15 = vadd.f32 %v3397_v2, %v3367_v54  ;;  %v2793_v20 = vpop.f32.mrf.mxu1  ;;  %v4777_v50 = vpop.f32.mrf.mxu0  ;;  %v3371_v16 = vmul.f32 %v3141_v18, %v3141_v18  ;;  %v6848_v54 = vld [vmem:[#allocation28_spill] sm:$0xff]  ;;  %v6849_v2 = vld [vmem:[#allocation26_spill] sm:$0xff]  ;;  %v2631_v38 = vadd.f32 %v6850_v8, %v2373_v35  ;;  %v6861_v8 = vld [vmem:[#allocation5_spill] sm:$0xff] }
 0x21b   : > { %4131 = vst [vmem:[%s6555_s29 + $0x28] sm:$0xff] %v4060_v24   ;;  %v4055_v63 = vpack.c.bf16 %v3139_v43, %v3138_v21  ;;  %v3369_v0 = vmul.f32 %v3139_v43, %v3139_v43  ;;  %v2884_v1 = vadd.f32 %v2793_v20, %v2626_v22  ;;  %v3331_v27 = vadd.f32 %v3330_v4, %v3139_v43 }
 0x21c   : > { %v3399_v36 = vadd.f32 %v3398_v15, %v3368_v39  ;;  %v4725_v17 = vpop.f32.mrf.mxu1  ;;  %v3070_v28 = vpop.f32.mrf.mxu0  ;;  %v3144_v10 = vadd.f32 %v6567_v62, %v2886_v45  ;;  %v2379_v53 = vadd.f32 %v6849_v2, %v6848_v54 }
 0x21d   : > { %4130 = vst [vmem:[%s6555_s29 + $0x20] sm:$0xff] %v4055_v63   ;;  %v2887_v57 = vadd.f32 %v4725_v17, %v2629_v26  ;;  %v3332_v51 = vadd.f32 %v3331_v27, %v3140_v60  ;;  %v3142_v29 = vadd.f32 %v3051_v59, %v2884_v1  ;;  %v6851_v17 = vld [vmem:[#allocation17_spill] sm:$0xff] }
 0x21e   : > { %v3400_v52 = vadd.f32 %v3399_v36, %v3369_v0  ;;  %v2796_v40 = vpop.f32.mrf.mxu1  ;;  %v6597_v7 = vpop.f32.mrf.mxu0  ;;  %v3374_v43 = vmul.f32 %v3144_v10, %v3144_v10  ;;  %v2377_v31 = vadd.f32 %v6852_v34, %v6851_v17 }
 0x21f   : > { %v3145_v55 = vadd.f32 %v4773_v61, %v2887_v57  ;;  %v2885_v13 = vadd.f32 %v2796_v40, %v2627_v46  ;;  %v3333_v32 = vadd.f32 %v3332_v51, %v3141_v18  ;;  %v3372_v62 = vmul.f32 %v3142_v29, %v3142_v29  ;;  %v6846_v18 = vld [vmem:[#allocation27_spill] sm:$0xff]  ;;  %v6854_v40 = vld [vmem:[#allocation30_spill] sm:$0xff] }
 0x220   : > { %v3401_v23 = vadd.f32 %v3400_v52, %v3370_v9  ;;  %v4728_v25 = vpop.f32.mrf.mxu1  ;;  %v3083_v59 = vpop.f32.mrf.mxu0  ;;  %v2376_v3 = vadd.f32 %v6847_v33, %v6846_v18  ;;  %v6853_v9 = vld [vmem:[#allocation18_spill] sm:$0xff] }
 0x221   : > { %v4070_v37 = vpack.c.bf16 %v3145_v55, %v3144_v10  ;;  %v3143_v41 = vadd.f32 %v3054_v42, %v2885_v13  ;;  %v3334_v44 = vadd.f32 %v3333_v32, %v3142_v29  ;;  %v2890_v21 = vadd.f32 %v4728_v25, %v6845_v19 }
 0x222   : > { %v3402_v61 = vadd.f32 %v3401_v23, %v3371_v16  ;;  %v2809_v6 = vpop.f32.mrf.mxu1  ;;  %v4781_v60 = vpop.f32.mrf.mxu0  ;;  %v3375_v45 = vmul.f32 %v3145_v55, %v3145_v55  ;;  %v2634_v51 = vadd.f32 %v6853_v9, %v2376_v3  ;;  %v6867_v9 = vld [vmem:[#allocation24_spill] sm:$0xff] }
 0x223   : > { %4133 = vst [vmem:[%s6555_s29 + $0x38] sm:$0xff] %v4070_v37   ;;  %v4065_v30 = vpack.c.bf16 %v3143_v41, %v3142_v29  ;;  %v3373_v11 = vmul.f32 %v3143_v41, %v3143_v41  ;;  %v2888_v5 = vadd.f32 %v2809_v6, %v2630_v48  ;;  %v3335_v56 = vadd.f32 %v3334_v44, %v3143_v41  ;;  %v6856_v41 = vld [vmem:[#allocation20_spill] sm:$0xff]  ;;  %v6857_v48 = vld [vmem:[#allocation29_spill] sm:$0xff] }
 0x224   : > { %v3403_v14 = vadd.f32 %v3402_v61, %v3372_v62  ;;  %v4729_v42 = vpop.f32.mrf.mxu1  ;;  %v3086_v24 = vpop.f32.mrf.mxu0  ;;  %v3148_v20 = vadd.f32 %v6582_v12, %v2890_v21  ;;  %v2380_v44 = vadd.f32 %v6857_v48, %v6856_v41  ;;  %v6858_v62 = vld [vmem:[#allocation4_spill] sm:$0xff]  ;;  %v6859_v61 = vld [vmem:[#allocation22_spill] sm:$0xff] }
 0x225   : > { %4132 = vst [vmem:[%s6555_s29 + $0x30] sm:$0xff] %v4065_v30   ;;  %v2891_v49 = vadd.f32 %v4729_v42, %v2633_v47  ;;  %v3336_v22 = vadd.f32 %v3335_v56, %v3144_v10  ;;  %v3146_v39 = vadd.f32 %v3067_v58, %v2888_v5  ;;  %v2637_v10 = vadd.f32 %v6854_v40, %v2379_v53  ;;  %v6860_v30 = vld [vmem:[#allocation7_spill] sm:$0xff] }
 0x226   : > { %v3404_v4 = vadd.f32 %v3403_v14, %v3373_v11  ;;  %v2812_v15 = vpop.f32.mrf.mxu1  ;;  %v6612_v0 = vpop.f32.mrf.mxu0  ;;  %v2383_v6 = vadd.f32 %v6859_v61, %v6858_v62  ;;  %v2635_v11 = vadd.f32 %v6860_v30, %v2377_v31  ;;  %v3378_v19 = vmul.f32 %v3148_v20, %v3148_v20  ;;  %v6870_v40 = vld [vmem:[#allocation3_spill] sm:$0xff] }
 0x227   : > { %v3149_v26 = vadd.f32 %v4777_v50, %v2891_v49  ;;  %v2889_v63 = vadd.f32 %v2812_v15, %v2631_v38  ;;  %v3337_v36 = vadd.f32 %v3336_v22, %v3145_v55  ;;  %v3376_v12 = vmul.f32 %v3146_v39, %v3146_v39  ;;  %v6855_v55 = vld [vmem:[#allocation25_spill] sm:$0xff]  ;;  %v6862_v38 = vld [vmem:[#allocation23_spill] sm:$0xff] }
 0x228   : > { %v3405_v1 = vadd.f32 %v3404_v4, %v3374_v43  ;;  %v4732_v27 = vpop.f32.mrf.mxu1  ;;  %v3099_v58 = vpop.f32.mrf.mxu0  ;;  %v2381_v43 = vadd.f32 %v6862_v38, %v6861_v8 }
 0x229   : > { %v4080_v57 = vpack.c.bf16 %v3149_v26, %v3148_v20  ;;  %v3147_v46 = vadd.f32 %v3070_v28, %v2889_v63  ;;  %v3338_v52 = vadd.f32 %v3337_v36, %v3146_v39  ;;  %v2894_v23 = vadd.f32 %v4732_v27, %v6855_v55 }
 0x22a   : > { %v3406_v50 = vadd.f32 %v3405_v1, %v3375_v45  ;;  %v2825_v29 = vpop.f32.mrf.mxu1  ;;  %v4785_v28 = vpop.f32.mrf.mxu0  ;;  %v3379_v3 = vmul.f32 %v3149_v26, %v3149_v26 }
 0x22b   : > { %4135 = vst [vmem:[%s6555_s29 + $0x48] sm:$0xff] %v4080_v57   ;;  %v4075_v13 = vpack.c.bf16 %v3147_v46, %v3146_v39  ;;  %v3377_v16 = vmul.f32 %v3147_v46, %v3147_v46  ;;  %v2892_v32 = vadd.f32 %v2825_v29, %v2634_v51  ;;  %v3339_v35 = vadd.f32 %v3338_v52, %v3147_v46  ;;  %v6863_v39 = vld [vmem:[#allocation8_spill] sm:$0xff]  ;;  %v6868_v52 = vld [vmem:[#allocation9_spill] sm:$0xff] }
 0x22c   : > { %v3407_v25 = vadd.f32 %v3406_v50, %v3376_v12  ;;  %v4733_v37 = vpop.f32.mrf.mxu1  ;;  %v3152_v42 = vadd.f32 %v6597_v7, %v2894_v23  ;;  %v3102_v49 = vpop.f32.mrf.mxu0  ;;  %v2638_v15 = vadd.f32 %v6863_v39, %v2380_v44  ;;  %v6869_v12 = vld [vmem:[#allocation14_spill] sm:$0xff] }
 0x22d   : > { %4134 = vst [vmem:[%s6555_s29 + $0x40] sm:$0xff] %v4075_v13   ;;  %v2895_v47 = vadd.f32 %v4733_v37, %v2637_v10  ;;  %v3340_v21 = vadd.f32 %v3339_v35, %v3148_v20  ;;  %v3150_v14 = vadd.f32 %v3083_v59, %v2892_v32  ;;  %v2387_v50 = vadd.f32 %v6869_v12, %v6868_v52 }
 0x22e   : > { %v3408_v5 = vadd.f32 %v3407_v25, %v3377_v16  ;;  %v2828_v56 = vpop.f32.mrf.mxu1  ;;  %v4788_v46 = vpop.f32.mrf.mxu0  ;;  %v2639_v10 = vadd.f32 %v6870_v40, %v2381_v43  ;;  %v3382_v13 = vmul.f32 %v3152_v42, %v3152_v42 }
 0x22f   : > { %v3153_v18 = vadd.f32 %v4781_v60, %v2895_v47  ;;  %v2893_v33 = vadd.f32 %v2828_v56, %v2635_v11  ;;  %v3341_v2 = vadd.f32 %v3340_v21, %v3149_v26  ;;  %v3380_v59 = vmul.f32 %v3150_v14, %v3150_v14  ;;  %v6864_v60 = vld [vmem:[#allocation13_spill] sm:$0xff]  ;;  %v6865_v26 = vld [vmem:[#allocation19_spill] sm:$0xff]  ;;  %v6873_v21 = vld [vmem:[#allocation12_spill] sm:$0xff] }
 0x230   : > { %v3409_v54 = vadd.f32 %v3408_v5, %v3378_v19  ;;  %v4736_v53 = vpop.f32.mrf.mxu1  ;;  %v2641_v45 = vadd.f32 %v6864_v60, %v2383_v6  ;;  %v3115_v61 = vpop.f32.mrf.mxu0  ;;  %v6871_v6 = vld [vmem:[#allocation10_spill] sm:$0xff]  ;;  %v6872_v47 = vld [vmem:[#allocation33_spill] sm:$0xff] }
 0x231   : > { %v4090_v22 = vpack.c.bf16 %v3153_v18, %v3152_v42  ;;  %v3151_v4 = vadd.f32 %v3086_v24, %v2893_v33  ;;  %v3342_v20 = vadd.f32 %v3341_v2, %v3150_v14  ;;  %v2898_v27 = vadd.f32 %v4736_v53, %v6865_v26  ;;  %v6866_v24 = vld [vmem:[#allocation6_spill] sm:$0xff] }
 0x232   : > { %v3410_v63 = vadd.f32 %v3409_v54, %v3379_v3  ;;  %v2841_v7 = vpop.f32.mrf.mxu1  ;;  %v2384_v51 = vadd.f32 %v6867_v9, %v6866_v24  ;;  %v3383_v41 = vmul.f32 %v3153_v18, %v3153_v18  ;;  %v2385_v30 = vadd.f32 %v6872_v47, %v6871_v6  ;;  %v4789_v38 = vpop.f32.mrf.mxu0 }
 0x233   : > { %4137 = vst [vmem:[%s6555_s29 + $0x58] sm:$0xff] %v4090_v22   ;;  %v4085_v1 = vpack.c.bf16 %v3151_v4, %v3150_v14  ;;  %v3381_v36 = vmul.f32 %v3151_v4, %v3151_v4  ;;  %v2896_v17 = vadd.f32 %v2841_v7, %v2638_v15  ;;  %v3343_v31 = vadd.f32 %v3342_v20, %v3151_v4  ;;  %v6876_v22 = vld [vmem:[#allocation2_spill] sm:$0xff] }
 0x234   : > { %v3411_v34 = vadd.f32 %v3410_v63, %v3380_v59  ;;  %v4737_v57 = vpop.f32.mrf.mxu1  ;;  %v3156_v25 = vadd.f32 %v6612_v0, %v2898_v27  ;;  %v2642_v5 = vadd.f32 %v6873_v21, %v2384_v51  ;;  %v2643_v4 = vadd.f32 %v6876_v22, %v2385_v30  ;;  %v3118_v27 = vpop.f32.mrf.mxu0 }
 0x235   : > { %4136 = vst [vmem:[%s6555_s29 + $0x50] sm:$0xff] %v4085_v1   ;;  %v2899_v29 = vadd.f32 %v4737_v57, %v2641_v45  ;;  %v3344_v16 = vadd.f32 %v3343_v31, %v3152_v42  ;;  %v3154_v23 = vadd.f32 %v3099_v58, %v2896_v17 }
 0x236   : > { %v3412_v55 = vadd.f32 %v3411_v34, %v3381_v36  ;;  %v2844_v32 = vpop.f32.mrf.mxu1  ;;  %v3386_v39 = vmul.f32 %v3156_v25, %v3156_v25 }
 0x237   : > { %v3157_v35 = vadd.f32 %v4785_v28, %v2899_v29  ;;  %v2897_v37 = vadd.f32 %v2844_v32, %v2639_v10  ;;  %v3345_v44 = vadd.f32 %v3344_v16, %v3153_v18  ;;  %v3384_v14 = vmul.f32 %v3154_v23, %v3154_v23  ;;  %v6874_v28 = vld [vmem:[#allocation15_spill] sm:$0xff]  ;;  %v6875_v18 = vld [vmem:[#allocation21_spill] sm:$0xff] }
 0x238   : > { %v3413_v48 = vadd.f32 %v3412_v55, %v3382_v13  ;;  %v4740_v62 = vpop.f32.mrf.mxu1  ;;  %v2645_v42 = vadd.f32 %v6874_v28, %v2387_v50 }
 0x239   : > { %v4100_v11 = vpack.c.bf16 %v3157_v35, %v3156_v25  ;;  %v3155_v19 = vadd.f32 %v3102_v49, %v2897_v37  ;;  %v3346_v58 = vadd.f32 %v3345_v44, %v3154_v23  ;;  %v2902_v54 = vadd.f32 %v4740_v62, %v6875_v18 }
 0x23a   : > { %v3414_v56 = vadd.f32 %v3413_v48, %v3383_v41  ;;  %v2857_v0 = vpop.f32.mrf.mxu1  ;;  %v3387_v1 = vmul.f32 %v3157_v35, %v3157_v35 }
 0x23b   : > { %4139 = vst [vmem:[%s6555_s29 + $0x68] sm:$0xff] %v4100_v11   ;;  %v4095_v33 = vpack.c.bf16 %v3155_v19, %v3154_v23  ;;  %v3385_v3 = vmul.f32 %v3155_v19, %v3155_v19  ;;  %v2900_v2 = vadd.f32 %v2857_v0, %v2642_v5  ;;  %v3347_v8 = vadd.f32 %v3346_v58, %v3155_v19 }
 0x23c   : > { %v3415_v53 = vadd.f32 %v3414_v56, %v3384_v14  ;;  %v4741_v43 = vpop.f32.mrf.mxu1  ;;  %v3160_v7 = vadd.f32 %v4788_v46, %v2902_v54 }
 0x23d   : > { %4138 = vst [vmem:[%s6555_s29 + $0x60] sm:$0xff] %v4095_v33   ;;  %v2903_v49 = vadd.f32 %v4741_v43, %v2645_v42  ;;  %v3348_v15 = vadd.f32 %v3347_v8, %v3156_v25  ;;  %v3158_v59 = vadd.f32 %v3115_v61, %v2900_v2 }
 0x23e   : > { %v3416_v20 = vadd.f32 %v3415_v53, %v3385_v3  ;;  %v2860_v63 = vpop.f32.mrf.mxu1  ;;  %v3390_v50 = vmul.f32 %v3160_v7, %v3160_v7 }
 0x23f   : > { %v3161_v60 = vadd.f32 %v4789_v38, %v2903_v49  ;;  %v2901_v45 = vadd.f32 %v2860_v63, %v2643_v4  ;;  %v3349_v26 = vadd.f32 %v3348_v15, %v3157_v35  ;;  %v3388_v57 = vmul.f32 %v3158_v59, %v3158_v59 }
 0x240   : > { %v3417_v36 = vadd.f32 %v3416_v20, %v3386_v39 }
 0x241   : > { %v4110_v17 = vpack.c.bf16 %v3161_v60, %v3160_v7  ;;  %v3159_v34 = vadd.f32 %v3118_v27, %v2901_v45  ;;  %v3350_v31 = vadd.f32 %v3349_v26, %v3158_v59  ;;  %v3391_v40 = vmul.f32 %v3161_v60, %v3161_v60 }
 0x242   : > { %v3418_v24 = vadd.f32 %v3417_v36, %v3387_v1 }
 0x243   : > { %4141 = vst [vmem:[%s6555_s29 + $0x78] sm:$0xff] %v4110_v17   ;;  %v4105_v9 = vpack.c.bf16 %v3159_v34, %v3158_v59  ;;  %v3389_v51 = vmul.f32 %v3159_v34, %v3159_v34  ;;  %v3351_v12 = vadd.f32 %v3350_v31, %v3159_v34 }
 0x244   : > { %v3419_v52 = vadd.f32 %v3418_v24, %v3388_v57 }
 0x245   : > { %4140 = vst [vmem:[%s6555_s29 + $0x70] sm:$0xff] %v4105_v9   ;;  %v3352_v46 = vadd.f32 %v3351_v12, %v3160_v7 }
 0x246   : > { %v3420_v29 = vadd.f32 %v3419_v52, %v3389_v51 }
 0x247   : > { %v3353_v10 = vadd.f32 %v3352_v46, %v3161_v60 }
 0x248   : > { %v3421_v13 = vadd.f32 %v3420_v29, %v3390_v50 }
 0x249   : > { %v3354_v16 = vrot.slane %v3353_v10, 4 }
 0x24a   : > { %v3422_v55 = vadd.f32 %v3421_v13, %v3391_v40 }
 0x24b   : > { %v3355_v23 = vadd.f32 %v3354_v16, %v3353_v10 }
 0x24c   : > { %v3423_v32 = vrot.slane %v3422_v55, 4 }
 0x24d   : > { %v3356_v25 = vrot.slane %v3355_v23, 2 }
 0x24e   : > { %v3424_v35 = vadd.f32 %v3423_v32, %v3422_v55 }
 0x24f   : > { %v3357_v37 = vadd.f32 %v3356_v25, %v3355_v23 }
 0x250   : > { %v3425_v41 = vrot.slane %v3424_v35, 2 }
 0x251   : > { %v3358_v48 = vrot.slane %v3357_v37, 1 }
 0x252   : > { %v3426_v44 = vadd.f32 %v3425_v41, %v3424_v35 }
 0x253   : > { %v3359_v61 = vadd.f32 %v3358_v48, %v3357_v37 }
 0x254   : > { %v3427_v62 = vrot.slane %v3426_v44, 1  ;;  %3432 = sbr.rel (%p3931_p4) target bundleno = 603 (0x25b), region = 40 }
 0x256   : > { %v3428_v6 = vadd.f32 %v3427_v62, %v3426_v44 }
 0x258   : > { %v3429_v47 = vsel %vm445_vm0, %v3359_v61, %v3428_v6 }
 0x259   : > { %v4901_v30 = vmov 0.0  }
 0x25a   : > { %3433 = vst [vmem:[%s6669_s5] sm:$0x3] %v4901_v30 }
 0x25b PF:  {}
 0x261   : > { %v3434_v11 = vld [vmem:[%s6669_s5] sm:$0x3] }
 0x262   : > { %v3435_v19 = vadd.f32 %v3434_v11, %v3429_v47 }
 0x264   : > { %3436 = vst [vmem:[%s6669_s5] sm:$0x3] %v3435_v19 }
 0x265 PF: > { %s16_s18 = sadd.s32 1, %s4897_s18  }
 0x266   : > { %p13_p5 = scmp.ge.s32.totalorder %s16_s18, 4  }
 0x268   :  { %15 = sbr.rel (!%p13_p5) target bundleno = 1 (0x1), region = 86 }

</bundles_post_ra>
